<compile_context>
chip_gen: v7x
topology: tpu7x:2x2x1
jax: 0.10.0
libtpu: 0.0.40
codegen_flags: <defaults>
</compile_context>

<pallas_src>
import functools

import jax
import jax.numpy as jnp
from jax.experimental import pallas as pl
from jax.experimental.pallas import tpu as pltpu

CIN = 320            # channels entering conv_head in efficientnet_b0
CHEAD = 1280         # enet_out_size
NUM_CLASSES = 1
BN_EPS = 1e-3        # timm efficientnet BatchNorm eps
MAX_BATCH_TILE = 32  # per-tile activations at S=64: ~0.66 MB/image -> <=~21 MB/tile,
                     # comfortably inside v7x's 64 MiB VMEM with double buffering


def _elementwise_dtype():
    """bf16 elementwise chain on v6e/v7x; f32 on v5e/older (no bf16 VPU/EUP)."""
    kind = jax.devices()[0].device_kind.lower()
    if any(tag in kind for tag in ("v2", "v3", "v4", "v5")):
        return jnp.float32
    return jnp.bfloat16


def _choose_batch_tile(n):
    """Pick (batch_tile, padded_batch).

    - n < 16: one block covering the whole batch (block == full dim, no pad).
    - otherwise: a multiple-of-8 tile (output-block sublane rule when grid > 1),
      preferring a divisor of n (no zero-pad, no dead tail compute) and >= 2 grid
      steps so dimension_semantics=('parallel',) can feed both v7x TensorCores.
    """
    if n < 16:
        return n, n
    cap = min(MAX_BATCH_TILE, max(8, ((n // 2) // 8) * 8))
    bt = cap
    while bt > 8 and n % bt:
        bt -= 8
    if n % bt == 0:
        return bt, n
    n_pad = -(-n // cap) * cap   # fallback: zero-pad (only if n has no mult-of-8 divisor <= cap)
    return cap, n_pad


def _head_kernel(x_ref, wh_ref, bs_ref, wct_ref, bc_ref, o_ref, *, elem_dtype):
    # x_ref:   (bt, S, CIN)         f32        feature tiles, channels lane-dense
    # wh_ref:  (CIN, CHEAD)         bf16       conv_head weight with BN scale folded in
    # bs_ref:  (1, CHEAD)           elem_dtype folded BN bias
    # wct_ref: (NUM_CLASSES, CHEAD) f32        classifier weight, transposed (lane-dense)
    # bc_ref:  (1, NUM_CLASSES)     f32        classifier bias
    # o_ref:   (bt, NUM_CLASSES)    f32
    bt, s, _ = x_ref.shape

    # In-kernel bf16 cast (free VPU work); features stay f32 in HBM so the wrapper
    # does not spend a separate XLA pass (full HBM read+write) casting them.
    # NOTE: the (bt, S, CIN) -> (bt*S, CIN) reshape is layout-free when S % 8 == 0
    # (demo S = 64); for S like 7*7 = 49, pad S in the wrapper or switch to a
    # rank-3 contraction.
    x = x_ref[...].reshape(bt * s, CIN).astype(jnp.bfloat16)

    # 1x1 conv_head: one large (bt*S, 320) x (320, 1280) bf16 MXU matmul, f32 acc.
    y = jnp.dot(x, wh_ref[...], preferred_element_type=jnp.float32)     # (bt*S, CHEAD)

    # Folded BN bias + SiLU in elem_dtype (bf16 on v6e/v7x, f32 on v5e).
    y = y.astype(elem_dtype) + bs_ref[...]
    # SiLU via the single-EUP-op tanh identity: sigmoid(y) = 0.5*(tanh(y/2)+1).
    y = y * (0.5 * (jnp.tanh(y * 0.5) + 1.0))

    # Global average pool: f32-accumulated sum over S; single 1/S scale at the end.
    pooled = jnp.sum(y.reshape(bt, s, CHEAD), axis=1, dtype=jnp.float32)  # (bt, CHEAD)

    # Classifier Linear(1280, 1): lane-dense VPU multiply + XLU lane reduction
    # (a (1,1280)@(1280,1) MXU matmul would have near-zero utilization).
    # NOTE: this lane-reduction formulation assumes NUM_CLASSES == 1.
    logits = jnp.sum(pooled * wct_ref[...], axis=-1, keepdims=True)       # (bt, 1) f32
    o_ref[...] = (logits * (1.0 / s) + bc_ref[...]).astype(o_ref.dtype)


def face_classifier_head(feat_nhwc, params):
    """feat_nhwc: (N, H, W, CIN) float32 backbone feature map -> (N, NUM_CLASSES)."""
    n, h, w, cin = feat_nhwc.shape
    assert cin == CIN
    assert NUM_CLASSES == 1, "lane-reduction classifier path assumes a single class"
    s = h * w

    elem_dtype = _elementwise_dtype()

    # Fold BN (gamma, beta, running_mean, running_var) into the conv weight + bias.
    scale = params["bn_gamma"] * jax.lax.rsqrt(params["bn_var"] + BN_EPS)   # (CHEAD,)
    bias = params["bn_beta"] - params["bn_mean"] * scale                    # (CHEAD,)
    wh_folded = (params["conv_head_w"] * scale[None, :]).astype(jnp.bfloat16)
    bias2d = bias.reshape(1, CHEAD).astype(elem_dtype)
    wct = params["cls_w"].reshape(CHEAD, NUM_CLASSES).T.astype(jnp.float32)  # (1, CHEAD)
    bc2d = params["cls_b"].reshape(1, NUM_CLASSES).astype(jnp.float32)

    bt, n_pad = _choose_batch_tile(n)
    x = feat_nhwc.reshape(n, s, CIN)                 # stays f32; cast inside the kernel
    if n_pad != n:
        # Fallback only; padded rows produce SiLU(bias) garbage logits, sliced off below.
        x = jnp.concatenate([x, jnp.zeros((n_pad - n, s, CIN), x.dtype)], axis=0)

    kernel = functools.partial(_head_kernel, elem_dtype=elem_dtype)
    out = pl.pallas_call(
        kernel,
        out_shape=jax.ShapeDtypeStruct((n_pad, NUM_CLASSES), jnp.float32),
        grid_spec=pltpu.PrefetchScalarGridSpec(
            num_scalar_prefetch=0,
            grid=(n_pad // bt,),
            in_specs=[
                pl.BlockSpec((bt, s, CIN), lambda b: (b, 0, 0)),          # features
                pl.BlockSpec((CIN, CHEAD), lambda b: (0, 0)),             # conv_head W (BN-folded)
                pl.BlockSpec((1, CHEAD), lambda b: (0, 0)),               # BN bias
                pl.BlockSpec((NUM_CLASSES, CHEAD), lambda b: (0, 0)),     # classifier W^T
                pl.BlockSpec((1, NUM_CLASSES), lambda b: (0, 0)),         # classifier b
            ],
            out_specs=pl.BlockSpec((bt, NUM_CLASSES), lambda b: (b, 0)),
        ),
        compiler_params=pltpu.CompilerParams(
            dimension_semantics=("parallel",),       # megacore split over batch tiles
            vmem_limit_bytes=64 * 1024 * 1024,       # >= actual use (~20 MB at bt=32, S=64)
        ),
    )(x, wh_folded, bias2d, wct, bc2d)
    return out[:n]


def init_params(key):
    ks = jax.random.split(key, 6)
    return {
        # conv_head weight, torch layout (1280, 320, 1, 1) -> stored as (320, 1280)
        "conv_head_w": jax.random.normal(ks[0], (CIN, CHEAD), jnp.float32) * 0.02,
        "bn_gamma": jnp.ones((CHEAD,), jnp.float32),
        "bn_beta": jnp.zeros((CHEAD,), jnp.float32),
        "bn_mean": jax.random.normal(ks[1], (CHEAD,), jnp.float32) * 0.1,
        "bn_var": jnp.abs(jax.random.normal(ks[2], (CHEAD,), jnp.float32)) + 0.5,
        # nn.Linear(1280, 1): torch weight (1, 1280) -> stored as (1280, 1)
        "cls_w": jax.random.normal(ks[3], (CHEAD, NUM_CLASSES), jnp.float32) * 0.02,
        "cls_b": jax.random.normal(ks[4], (NUM_CLASSES,), jnp.float32) * 0.01,
    }


def _reference(feat_nhwc, params, elem_dtype):
    # Pure-JAX reference of the same head with matching matmul/elementwise dtypes
    # (bf16 MXU operands, elem_dtype SiLU chain) but the standard jax.nn.sigmoid,
    # so the comparison stays tight while remaining an independent formulation.
    n, h, w, cin = feat_nhwc.shape
    s = h * w
    scale = params["bn_gamma"] * jax.lax.rsqrt(params["bn_var"] + BN_EPS)
    bias = params["bn_beta"] - params["bn_mean"] * scale
    w_folded = (params["conv_head_w"] * scale[None, :]).astype(jnp.bfloat16)
    x = feat_nhwc.reshape(n, s, cin).astype(jnp.bfloat16)
    y = jnp.einsum("nsc,cd->nsd", x, w_folded, preferred_element_type=jnp.float32)
    y = y.astype(elem_dtype) + bias.astype(elem_dtype)
    y = y * jax.nn.sigmoid(y)
    pooled = jnp.mean(y.astype(jnp.float32), axis=1)          # (N, CHEAD)
    return pooled @ params["cls_w"] + params["cls_b"]         # (N, 1)


if __name__ == "__main__":
    key = jax.random.PRNGKey(0)
    pkey, fkey = jax.random.split(key)
    params = init_params(pkey)

    # Synthetic backbone feature map (what the efficientnet_b0 blocks would emit
    # for a small image, e.g. (2, 3, 256, 256) NCHW -> (2, 8, 8, 320) NHWC).
    feat = jax.random.normal(fkey, (2, 8, 8, CIN), jnp.float32)

    out = jax.block_until_ready(face_classifier_head(feat, params))
    ref = _reference(feat, params, _elementwise_dtype())

    assert out.shape == (2, NUM_CLASSES)
    assert jnp.allclose(out, ref, atol=2e-3, rtol=2e-3), float(jnp.max(jnp.abs(out - ref)))
    print("KERNEL_OK")
</pallas_src>

<mosaic_0001>
module attributes {stable_mosaic.version = 11 : i64} {
  func.func @_head_kernel(%arg0: i32, %arg1: memref<2x64x320xf32, #tpu.memory_space<vmem>>, %arg2: memref<320x1280xbf16, #tpu.memory_space<vmem>>, %arg3: memref<1x1280xbf16, #tpu.memory_space<vmem>>, %arg4: memref<1x1280xf32, #tpu.memory_space<vmem>>, %arg5: memref<1x1xf32, #tpu.memory_space<vmem>>, %arg6: memref<2x1xf32, #tpu.memory_space<vmem>>) attributes {dimension_semantics = [#tpu.dimension_semantics<parallel>], iteration_bounds = array<i64: 1>, scalar_prefetch = 0 : i64, scratch_operands = 0 : i64, tpu.core_type = #tpu.core_type<tc>, window_params = [{transform_indices = @transform_0, window_bounds = array<i64: 2, 64, 320>}, {pipeline_mode = #tpu.pipeline_mode<synchronous>, transform_indices = @transform_1, window_bounds = array<i64: 320, 1280>}, {pipeline_mode = #tpu.pipeline_mode<synchronous>, transform_indices = @transform_2, window_bounds = array<i64: 1, 1280>}, {pipeline_mode = #tpu.pipeline_mode<synchronous>, transform_indices = @transform_3, window_bounds = array<i64: 1, 1280>}, {pipeline_mode = #tpu.pipeline_mode<synchronous>, transform_indices = @transform_4, window_bounds = array<i64: 1, 1>}, {transform_indices = @transform_5, window_bounds = array<i64: 2, 1>}]} {
    %c0 = arith.constant 0 : index
    %c0_0 = arith.constant 0 : index
    %c0_1 = arith.constant 0 : index
    %0 = vector.load %arg1[%c0, %c0_0, %c0_1] : memref<2x64x320xf32, #tpu.memory_space<vmem>>, vector<2x64x320xf32>
    %1 = vector.shape_cast %0 : vector<2x64x320xf32> to vector<128x320xf32>
    %2 = arith.truncf %1 : vector<128x320xf32> to vector<128x320xbf16>
    %c0_2 = arith.constant 0 : index
    %c0_3 = arith.constant 0 : index
    %3 = vector.load %arg2[%c0_2, %c0_3] : memref<320x1280xbf16, #tpu.memory_space<vmem>>, vector<320x1280xbf16>
    %cst = arith.constant dense<0.000000e+00> : vector<128x1280xf32>
    %4 = tpu.matmul %2, %3, %cst {dimension_numbers = #tpu.dot_dimension_numbers<[1], [0], [0], [1], [0, 0, 1, 1], [], []>} : vector<128x320xbf16>, vector<320x1280xbf16>, vector<128x1280xf32> -> vector<128x1280xf32>
    %5 = arith.truncf %4 : vector<128x1280xf32> to vector<128x1280xbf16>
    %c0_4 = arith.constant 0 : index
    %c0_5 = arith.constant 0 : index
    %6 = vector.load %arg3[%c0_4, %c0_5] : memref<1x1280xbf16, #tpu.memory_space<vmem>>, vector<1x1280xbf16>
    %7 = vector.broadcast %6 : vector<1x1280xbf16> to vector<128x1280xbf16>
    %8 = arith.addf %5, %7 : vector<128x1280xbf16>
    %cst_6 = arith.constant 5.000000e-01 : bf16
    %9 = vector.broadcast %cst_6 : bf16 to vector<128x1280xbf16>
    %10 = arith.mulf %8, %9 : vector<128x1280xbf16>
    %11 = math.tanh %10 : vector<128x1280xbf16>
    %cst_7 = arith.constant 1.000000e+00 : bf16
    %12 = vector.broadcast %cst_7 : bf16 to vector<128x1280xbf16>
    %13 = arith.addf %11, %12 : vector<128x1280xbf16>
    %cst_8 = arith.constant 5.000000e-01 : bf16
    %14 = vector.broadcast %cst_8 : bf16 to vector<128x1280xbf16>
    %15 = arith.mulf %14, %13 : vector<128x1280xbf16>
    %16 = arith.mulf %8, %15 : vector<128x1280xbf16>
    %17 = vector.shape_cast %16 : vector<128x1280xbf16> to vector<2x64x1280xbf16>
    %18 = arith.extf %17 : vector<2x64x1280xbf16> to vector<2x64x1280xf32>
    %cst_9 = arith.constant dense<0.000000e+00> : vector<2x1280xf32>
    %19 = vector.multi_reduction <add>, %18, %cst_9 [1] : vector<2x64x1280xf32> to vector<2x1280xf32>
    %c0_10 = arith.constant 0 : index
    %c0_11 = arith.constant 0 : index
    %20 = vector.load %arg4[%c0_10, %c0_11] : memref<1x1280xf32, #tpu.memory_space<vmem>>, vector<1x1280xf32>
    %21 = vector.broadcast %20 : vector<1x1280xf32> to vector<2x1280xf32>
    %22 = arith.mulf %19, %21 : vector<2x1280xf32>
    %cst_12 = arith.constant dense<0.000000e+00> : vector<2xf32>
    %23 = vector.multi_reduction <add>, %22, %cst_12 [1] : vector<2x1280xf32> to vector<2xf32>
    %24 = vector.shape_cast %23 : vector<2xf32> to vector<2x1xf32>
    %cst_13 = arith.constant 1.562500e-02 : f32
    %25 = vector.broadcast %cst_13 : f32 to vector<2x1xf32>
    %26 = arith.mulf %24, %25 : vector<2x1xf32>
    %c0_14 = arith.constant 0 : index
    %c0_15 = arith.constant 0 : index
    %27 = vector.load %arg5[%c0_14, %c0_15] : memref<1x1xf32, #tpu.memory_space<vmem>>, vector<1x1xf32>
    %28 = vector.broadcast %27 : vector<1x1xf32> to vector<2x1xf32>
    %29 = arith.addf %26, %28 : vector<2x1xf32>
    %c0_16 = arith.constant 0 : index
    %c0_17 = arith.constant 0 : index
    %30 = vector.load %arg6[%c0_16, %c0_17] : memref<2x1xf32, #tpu.memory_space<vmem>>, vector<2x1xf32>
    tpu.vector_store %arg6[%c0_16, %c0_17], %29 {strides = array<i32>} : memref<2x1xf32, #tpu.memory_space<vmem>>, vector<2x1xf32>,
    return
  }
  func.func @transform_0(%arg0: i32) -> (i32, i32, i32) {
    %c0_i32 = arith.constant 0 : i32
    %c0_i32_0 = arith.constant 0 : i32
    %c0_i32_1 = arith.constant 0 : i32
    return %arg0, %c0_i32, %c0_i32_0 : i32, i32, i32
  }
  func.func @transform_1(%arg0: i32) -> (i32, i32) {
    %c0_i32 = arith.constant 0 : i32
    %c0_i32_0 = arith.constant 0 : i32
    %c0_i32_1 = arith.constant 0 : i32
    return %c0_i32, %c0_i32_0 : i32, i32
  }
  func.func @transform_2(%arg0: i32) -> (i32, i32) {
    %c0_i32 = arith.constant 0 : i32
    %c0_i32_0 = arith.constant 0 : i32
    %c0_i32_1 = arith.constant 0 : i32
    return %c0_i32, %c0_i32_0 : i32, i32
  }
  func.func @transform_3(%arg0: i32) -> (i32, i32) {
    %c0_i32 = arith.constant 0 : i32
    %c0_i32_0 = arith.constant 0 : i32
    %c0_i32_1 = arith.constant 0 : i32
    return %c0_i32, %c0_i32_0 : i32, i32
  }
  func.func @transform_4(%arg0: i32) -> (i32, i32) {
    %c0_i32 = arith.constant 0 : i32
    %c0_i32_0 = arith.constant 0 : i32
    %c0_i32_1 = arith.constant 0 : i32
    return %c0_i32, %c0_i32_0 : i32, i32
  }
  func.func @transform_5(%arg0: i32) -> (i32, i32) {
    %c0_i32 = arith.constant 0 : i32
    %c0_i32_0 = arith.constant 0 : i32
    return %arg0, %c0_i32 : i32, i32
  }
}

</mosaic_0001>

<bundles_post_ra>
// kernel: tpu_custom_call.1
= control target key start
LH: loop header
LB: loop body
LE: loop exit
PB: predicated region body
PF: predicated region fallthrough
CT: control target
= control target key end

     0   :  { %s5839_s0 = inlined_call_operand.hbm [shape: f32[2,64,320], index: 0, kind: input, shape index: {}]   ;;  %s5840_s1 = inlined_call_operand.hbm [shape: bf16[320,1280], index: 1, kind: input, shape index: {}]   ;;  %s5841_s2 = inlined_call_operand.hbm [shape: bf16[1,1280], index: 2, kind: input, shape index: {}]   ;;  %s5842_s3 = inlined_call_operand.hbm [shape: f32[1,1280], index: 3, kind: input, shape index: {}]   ;;  %s5843_s4 = inlined_call_operand.<no memory space> [shape: f32[1,1], index: 4, kind: input, shape index: {}]   ;;  %s5844_s5 = inlined_call_operand.hbm [shape: f32[2,1], index: 5, kind: output, shape index: {}]  }
   0x1   :  { %v10_v0 = vstv %s5843_s4 }
   0x2   :  { %11 = vst [vmem:[#allocation2] sm:$0x1] %v10_v0 }
   0x3   :  { %12 = vsyncpa [#allocation4], 0 }
   0x4   :  { %13 = vsyncpa [#allocation7], 0 }
   0x5   :  { %14 = vsyncpa [#allocation10], 0 }
   0x6   :  { %15 = vsyncpa [#allocation5], 0  ;;  %s4797_s20 = smov [#allocation6]   ;;  %s4679_s24 = scalar_lea.hbm %s5840_s1, 25600 }
   0x7   :  { %s33_s21 = sshll.u32 %s4797_s20, 4  ;;  %p4680_p0 = scmp.ne.s32.totalorder %s5840_s1, %s4679_s24  ;;  %s34_s21 = int_to_ptr.vmem [resolvable:$true] %s33_s21 }
   0x8   :  { %p4683_p1 = scmp.lt.u32.totalorder %s4679_s24, %s5840_s1 }
   0xa   :  { %p4685_p2 = pnand %p4683_p1, %p4680_p0 }
   0xc   :  { %4688 = shalt.err (!%p4685_p2)
}
   0xd   :  { %s4689_s4 = scalar_lea.vmem %s34_s21, 25600  ;;  %p4694_p4 = scmp.lt.s32.totalorder %s34_s21, %s34_s21 }
   0xe   :  { %p4690_p3 = scmp.ne.s32.totalorder %s34_s21, %s4689_s4  ;;  %p4695_p5 = scmp.lt.s32.totalorder %s4689_s4, %s4689_s4 }
  0x10   :  { %p4696_p6 = por %p4695_p5, %p4694_p4 }
  0x12   :  { %p4697_p7 = pnand %p4696_p6, %p4690_p3 }
  0x14   :  { %4700 = shalt.err (!%p4697_p7)
}
  0x15   :  { %s4798_s29 = smov 640   ;;  %s4799_s30 = smov 40  }
  0x16   :  { %39 = dma.hbm_to_vmem [thread:$0]  %s5840_s1, 25600, %s34_s21, [#allocation7], %s4798_s29, %s4798_s29, %s4799_s30  }
  0x17   :  { %s4800_s8 = smov [#allocation3]   ;;  %s4701_s12 = scalar_lea.hbm %s5839_s0, 6144 }
  0x18   :  { %s21_s9 = sshll.u32 %s4800_s8, 4  ;;  %p4702_p8 = scmp.ne.s32.totalorder %s5839_s0, %s4701_s12  ;;  %s22_s9 = int_to_ptr.vmem [resolvable:$true] %s21_s9 }
  0x19   :  { %p4705_p9 = scmp.lt.u32.totalorder %s4701_s12, %s5839_s0 }
  0x1b   :  { %p4707_p10 = pnand %p4705_p9, %p4702_p8 }
  0x1d   :  { %4710 = shalt.err (!%p4707_p10)
}
  0x1e   :  { %s4711_s17 = scalar_lea.vmem %s22_s9, 6144  ;;  %p4716_p12 = scmp.lt.s32.totalorder %s22_s9, %s22_s9 }
  0x1f   :  { %p4712_p11 = scmp.ne.s32.totalorder %s22_s9, %s4711_s17  ;;  %p4717_p13 = scmp.lt.s32.totalorder %s4711_s17, %s4711_s17 }
  0x21   :  { %p4718_p0 = por %p4717_p13, %p4716_p12 }
  0x23   :  { %p4719_p1 = pnand %p4718_p0, %p4712_p11 }
  0x25   :  { %4722 = shalt.err (!%p4719_p1)
}
  0x26   :  { %s4801_s1 = smov 384   ;;  %s4802_s18 = smov 24  }
  0x27   :  { %27 = dma.hbm_to_vmem [thread:$0]  %s5839_s0, 6144, %s22_s9, [#allocation4], %s4801_s1, %s4801_s1, %s4802_s18  }
  0x28   :  { %s4803_s21 = smov [#allocation8]   ;;  %s4804_s23 = smov [#allocation9]  }
  0x29   :  { %s46_s22 = sshll.u32 %s4803_s21, 4  ;;  %s56_s24 = sshll.u32 %s4804_s23, 4  ;;  %s47_s22 = int_to_ptr.vmem [resolvable:$true] %s46_s22  ;;  %s57_s24 = int_to_ptr.vmem [resolvable:$true] %s56_s24 }
  0x2a   :  { %s4723_s27 = scalar_lea.hbm %s5841_s2, 160 }
  0x2b   :  { %p4724_p2 = scmp.ne.s32.totalorder %s5841_s2, %s4723_s27  ;;  %p4727_p3 = scmp.lt.u32.totalorder %s4723_s27, %s5841_s2 }
  0x2d   :  { %p4729_p4 = pnand %p4727_p3, %p4724_p2 }
  0x2f   :  { %4732 = shalt.err (!%p4729_p4)
}
  0x30   :  { %s4733_s0 = scalar_lea.vmem %s47_s22, 160  ;;  %p4738_p6 = scmp.lt.s32.totalorder %s47_s22, %s47_s22 }
  0x31   :  { %p4734_p5 = scmp.ne.s32.totalorder %s47_s22, %s4733_s0  ;;  %p4739_p7 = scmp.lt.s32.totalorder %s4733_s0, %s4733_s0 }
  0x33   :  { %p4740_p8 = por %p4739_p7, %p4738_p6 }
  0x35   :  { %p4741_p9 = pnand %p4740_p8, %p4734_p5 }
  0x37   :  { %4744 = shalt.err (!%p4741_p9)
}
  0x38   :  { %49 = dma.hbm_to_vmem [thread:$0]  %s5841_s2, 160, %s47_s22, [#allocation7]  }
  0x39   :  { %s4745_s10 = scalar_lea.hbm %s5842_s3, 160 }
  0x3a   :  { %p4746_p10 = scmp.ne.s32.totalorder %s5842_s3, %s4745_s10  ;;  %p4749_p11 = scmp.lt.u32.totalorder %s4745_s10, %s5842_s3 }
  0x3c   :  { %p4751_p12 = pnand %p4749_p11, %p4746_p10 }
  0x3e   :  { %4754 = shalt.err (!%p4751_p12)
}
  0x3f   :  { %s4755_s15 = scalar_lea.vmem %s57_s24, 160  ;;  %p4760_p0 = scmp.lt.s32.totalorder %s57_s24, %s57_s24 }
  0x40   :  { %p4756_p13 = scmp.ne.s32.totalorder %s57_s24, %s4755_s15  ;;  %p4761_p1 = scmp.lt.s32.totalorder %s4755_s15, %s4755_s15 }
  0x42   :  { %p4762_p2 = por %p4761_p1, %p4760_p0 }
  0x44   :  { %p4763_p3 = pnand %p4762_p2, %p4756_p13 }
  0x46   :  { %4766 = shalt.err (!%p4763_p3)
}
  0x47   :  { %59 = dma.hbm_to_vmem [thread:$0]  %s5842_s3, 160, %s57_s24, [#allocation10]  }
  0x48   :  { %4789 = dma.done.wait [#allocation4], 6144  }
  0x49   :  { %4790 = vsyncadd [#allocation4], 4294961152 }
  0x4a   :  { %4791 = dma.done.wait [#allocation7], 25760  }
  0x4b   :  { %4792 = vsyncadd [#allocation7], 4294941536 }
  0x4c   :  { %4793 = dma.done.wait [#allocation10], 160  }
  0x4d   :  { %4794 = vsyncadd [#allocation10], 4294967136  ;;  %v4805_v1 = vmov 0   ;;  %v4217_v2 = vld [vmem:[#allocation6 + $0x4] ss:$40 sps:$4 sm:$0xff]   ;;  %v79_v18 = vld [vmem:[#allocation3 + $0x10] sm:$0xff] }
  0x4e   :  { %1519 = vmatprep.mubr.bf16.mxu0 %v4805_v1  ;;  %v4219_v3 = vld [vmem:[#allocation6 + $0x504] ss:$40 sps:$4 sm:$0xff]   ;;  %1374 = vmatprep.subr.bf16.mxu1 %v4217_v2  ;;  %v4221_v4 = vld [vmem:[#allocation6] ss:$40 sps:$4 sm:$0xff]   ;;  %v4223_v6 = vld [vmem:[#allocation6 + $0x54] ss:$40 sps:$4 sm:$0xff]  }
  0x4f   :  { %v4222_v5 = vld [vmem:[#allocation6 + $0x500] ss:$40 sps:$4 sm:$0xff]   ;;  %1487 = vmatprep.subr.bf16.mxu0 %v4219_v3  ;;  %1375 = vmatpush1.bf16.msra.mxu1 %v4221_v4  ;;  %v4225_v7 = vld [vmem:[#allocation6 + $0x554] ss:$40 sps:$4 sm:$0xff]   ;;  %v4227_v8 = vld [vmem:[#allocation6 + $0x50] ss:$40 sps:$4 sm:$0xff]  }
  0x50   :  { %1488 = vmatpush1.bf16.msra.mxu0 %v4222_v5  ;;  %1376 = vmatprep.subr.bf16.mxu1 %v4223_v6  ;;  %v4228_v9 = vld [vmem:[#allocation6 + $0x550] ss:$40 sps:$4 sm:$0xff]   ;;  %v4229_v10 = vld [vmem:[#allocation6 + $0xa4] ss:$40 sps:$4 sm:$0xff]   ;;  %v4233_v12 = vld [vmem:[#allocation6 + $0xa0] ss:$40 sps:$4 sm:$0xff]  }
  0x51   :  { %1489 = vmatprep.subr.bf16.mxu0 %v4225_v7  ;;  %v4231_v11 = vld [vmem:[#allocation6 + $0x5a4] ss:$40 sps:$4 sm:$0xff]   ;;  %v4234_v13 = vld [vmem:[#allocation6 + $0x5a0] ss:$40 sps:$4 sm:$0xff]   ;;  %v4235_v14 = vld [vmem:[#allocation6 + $0xf4] ss:$40 sps:$4 sm:$0xff]  }
  0x52   :  { %v4237_v15 = vld [vmem:[#allocation6 + $0x5f4] ss:$40 sps:$4 sm:$0xff]   ;;  %v4239_v16 = vld [vmem:[#allocation6 + $0xf0] ss:$40 sps:$4 sm:$0xff]   ;;  %v82_v19 = vld [vmem:[#allocation3 + $0x28] sm:$0xff]  ;;  %vm1349_vm0 = vcmask 523264  }
  0x53   :  { %1377 = vmatpush1.bf16.msra.mxu1 %v4227_v8  ;;  %v4240_v17 = vld [vmem:[#allocation6 + $0x5f0] ss:$40 sps:$4 sm:$0xff]   ;;  %v4241_v20 = vld [vmem:[#allocation6 + $0x144] ss:$40 sps:$4 sm:$0xff]   ;;  %v4245_v21 = vld [vmem:[#allocation6 + $0x14] ss:$40 sps:$4 sm:$0xff]   ;;  %v4890_v22 = vpack.c.bf16 %v82_v19, %v79_v18 }
  0x54   :  { %1490 = vmatpush1.bf16.msra.mxu0 %v4228_v9  ;;  %1378 = vmatprep.subr.bf16.mxu1 %v4229_v10  ;;  %v4243_v23 = vld [vmem:[#allocation6 + $0x10] ss:$40 sps:$4 sm:$0xff]   ;;  %v4246_v24 = vld [vmem:[#allocation6 + $0x140] ss:$40 sps:$4 sm:$0xff]   ;;  %v4247_v25 = vld [vmem:[#allocation6 + $0x194] ss:$40 sps:$4 sm:$0xff]  }
  0x55   :  { %1491 = vmatprep.subr.bf16.mxu0 %v4231_v11  ;;  %v4251_v26 = vld [vmem:[#allocation6 + $0x64] ss:$40 sps:$4 sm:$0xff]   ;;  %v4249_v27 = vld [vmem:[#allocation6 + $0x60] ss:$40 sps:$4 sm:$0xff]   ;;  %v4252_v28 = vld [vmem:[#allocation6 + $0x190] ss:$40 sps:$4 sm:$0xff]  }
  0x56   :  { %v4253_v29 = vld [vmem:[#allocation6 + $0x1e4] ss:$40 sps:$4 sm:$0xff]   ;;  %v88_v31 = vld [vmem:[#allocation3 + $0x58] sm:$0xff]  ;;  %v4258_v35 = vld [vmem:[#allocation6 + $0x1e0] ss:$40 sps:$4 sm:$0xff]   ;;  %vm3724_vm1 = vcmask 1041409  }
  0x57   :  { %1379 = vmatpush1.bf16.msra.mxu1 %v4233_v12  ;;  %v85_v30 = vld [vmem:[#allocation3 + $0x40] sm:$0xff]  ;;  %v4257_v32 = vld [vmem:[#allocation6 + $0xb4] ss:$40 sps:$4 sm:$0xff]   ;;  %v4255_v34 = vld [vmem:[#allocation6 + $0xb0] ss:$40 sps:$4 sm:$0xff]   ;;  %vm3754_vm2 = vcmask 1041408  }
  0x58   :  { %1492 = vmatpush1.bf16.msra.mxu0 %v4234_v13  ;;  %1380 = vmatprep.subr.bf16.mxu1 %v4235_v14  ;;  %v4895_v33 = vpack.c.bf16 %v88_v31, %v85_v30  ;;  %v4259_v36 = vld [vmem:[#allocation6 + $0x234] ss:$40 sps:$4 sm:$0xff]   ;;  %v4263_v37 = vld [vmem:[#allocation6 + $0x104] ss:$40 sps:$4 sm:$0xff]   ;;  %v4261_v38 = vld [vmem:[#allocation6 + $0x100] ss:$40 sps:$4 sm:$0xff]  }
  0x59   :  { %1493 = vmatprep.subr.bf16.mxu0 %v4237_v15  ;;  %v4264_v39 = vld [vmem:[#allocation6 + $0x230] ss:$40 sps:$4 sm:$0xff]   ;;  %v94_v41 = vld [vmem:[#allocation3 + $0x88] sm:$0xff]  ;;  %v4269_v43 = vld [vmem:[#allocation6 + $0x154] ss:$40 sps:$4 sm:$0xff]   ;;  %s4807_s3 = smov [#allocation11]  }
  0x5a   :  { %v91_v40 = vld [vmem:[#allocation3 + $0x70] sm:$0xff]  ;;  %v4265_v42 = vld [vmem:[#allocation6 + $0x284] ss:$40 sps:$4 sm:$0xff]   ;;  %v4270_v46 = vld [vmem:[#allocation6 + $0x280] ss:$40 sps:$4 sm:$0xff]   ;;  %s3793_s17 = sshll.u32 %s4807_s3, 4  ;;  %s3794_s17 = int_to_ptr.vmem [resolvable:$true] %s3793_s17 }
  0x5b   :  { %1381 = vmatpush1.bf16.msra.mxu1 %v4239_v16  ;;  %v4900_v44 = vpack.c.bf16 %v94_v41, %v91_v40  ;;  %v4267_v45 = vld [vmem:[#allocation6 + $0x150] ss:$40 sps:$4 sm:$0xff]   ;;  %v4271_v47 = vld [vmem:[#allocation6 + $0x2d4] ss:$40 sps:$4 sm:$0xff]   ;;  %v4275_v48 = vld [vmem:[#allocation6 + $0x1a4] ss:$40 sps:$4 sm:$0xff]   ;;  %p4772_p5 = scmp.lt.s32.totalorder %s3794_s17, %s3794_s17 }
  0x5c   :  { %1494 = vmatpush1.bf16.msra.mxu0 %v4240_v17  ;;  %1382 = vmatprep.subr.bf16.mxu1 %v4241_v20  ;;  %v4273_v49 = vld [vmem:[#allocation6 + $0x1a0] ss:$40 sps:$4 sm:$0xff]   ;;  %v4276_v50 = vld [vmem:[#allocation6 + $0x2d0] ss:$40 sps:$4 sm:$0xff]   ;;  %v4277_v53 = vld [vmem:[#allocation6 + $0x324] ss:$40 sps:$4 sm:$0xff]  }
  0x5d   :  { %1826 = vmatprep.subr.bf16.mxu0 %v4245_v21  ;;  %v97_v51 = vld [vmem:[#allocation3 + $0xa0] sm:$0xff]  ;;  %v100_v52 = vld [vmem:[#allocation3 + $0xb8] sm:$0xff]  ;;  %v103_v63 = vld [vmem:[#allocation3 + $0xd0] sm:$0xff]  ;;  %vm3785_vm3 = vcmask 1024   ;;  %s4767_s1 = scalar_lea.vmem %s3794_s17, 32 }
  0x5e   :  { %v4281_v54 = vld [vmem:[#allocation6 + $0x1f4] ss:$40 sps:$4 sm:$0xff]   ;;  %v4905_v55 = vpack.c.bf16 %v100_v52, %v97_v51  ;;  %v4279_v56 = vld [vmem:[#allocation6 + $0x1f0] ss:$40 sps:$4 sm:$0xff]   ;;  %v4282_v57 = vld [vmem:[#allocation6 + $0x320] ss:$40 sps:$4 sm:$0xff]   ;;  %p4768_p4 = scmp.ne.s32.totalorder %s3794_s17, %s4767_s1  ;;  %p4773_p6 = scmp.lt.s32.totalorder %s4767_s1, %s4767_s1 }
  0x5f   :  { %4004 = vmatmul.mubr.msk.bf16.vlgmr.msra.gmra.mrb[0].mxu0 %vm1349_vm0, %v4890_v22  ;;  %1383 = vmatpush1.bf16.msra.mxu1 %v4246_v24  ;;  %v4283_v58 = vld [vmem:[#allocation6 + $0x374] ss:$40 sps:$4 sm:$0xff]   ;;  %v4287_v59 = vld [vmem:[#allocation6 + $0x244] ss:$40 sps:$4 sm:$0xff]   ;;  %v4285_v60 = vld [vmem:[#allocation6 + $0x240] ss:$40 sps:$4 sm:$0xff]  }
  0x60   :  { %1827 = vmatpush1.bf16.msra.mxu0 %v4243_v23  ;;  %1384 = vmatprep.subr.bf16.mxu1 %v4247_v25  ;;  %v4288_v61 = vld [vmem:[#allocation6 + $0x370] ss:$40 sps:$4 sm:$0xff]   ;;  %v4289_v62 = vld [vmem:[#allocation6 + $0x3c4] ss:$40 sps:$4 sm:$0xff]   ;;  %v4293_v2 = vld [vmem:[#allocation6 + $0x294] ss:$40 sps:$4 sm:$0xff]   ;;  %p4774_p7 = por %p4773_p6, %p4772_p5 }
  0x61   :  { %1828 = vmatprep.subr.bf16.mxu0 %v4251_v26  ;;  %1529 = vmatprep.mubr.bf16.mxu0 %v4805_v1  ;;  %v106_v0 = vld [vmem:[#allocation3 + $0xe8] sm:$0xff]  ;;  %v81_v5 = vld [vmem:[#allocation3 + $0x20] sm:$0xff]  ;;  %v4291_v6 = vld [vmem:[#allocation6 + $0x290] ss:$40 sps:$4 sm:$0xff]  }
  0x62   :  { %v78_v3 = vld [vmem:[#allocation3 + $0x8] sm:$0xff]  ;;  %v4910_v4 = vpack.c.bf16 %v106_v0, %v103_v63  ;;  %v4295_v9 = vld [vmem:[#allocation6 + $0x414] ss:$40 sps:$4 sm:$0xff]   ;;  %v4300_v12 = vld [vmem:[#allocation6 + $0x410] ss:$40 sps:$4 sm:$0xff]   ;;  %p4775_p8 = pnand %p4774_p7, %p4768_p4 }
  0x63   :  { %1385 = vmatpush1.bf16.msra.mxu1 %v4252_v28  ;;  %v4294_v7 = vld [vmem:[#allocation6 + $0x3c0] ss:$40 sps:$4 sm:$0xff]   ;;  %v4912_v8 = vpack.c.bf16 %v81_v5, %v78_v3  ;;  %v4299_v10 = vld [vmem:[#allocation6 + $0x2e4] ss:$40 sps:$4 sm:$0xff]   ;;  %v112_v14 = vld [vmem:[#allocation3 + $0x118] sm:$0xff] }
  0x64   :  { %1829 = vmatpush1.bf16.msra.mxu0 %v4249_v27  ;;  %1386 = vmatprep.subr.bf16.mxu1 %v4253_v29  ;;  %v4297_v11 = vld [vmem:[#allocation6 + $0x2e0] ss:$40 sps:$4 sm:$0xff]   ;;  %v4301_v15 = vld [vmem:[#allocation6 + $0x464] ss:$40 sps:$4 sm:$0xff]   ;;  %v4305_v16 = vld [vmem:[#allocation6 + $0x334] ss:$40 sps:$4 sm:$0xff]  }
  0x65   :  { %1830 = vmatprep.subr.bf16.mxu0 %v4257_v32  ;;  %1406 = vmatprep.mubr.bf16.mxu1 %v4912_v8  ;;  %v109_v13 = vld [vmem:[#allocation3 + $0x100] sm:$0xff]  ;;  %v4303_v18 = vld [vmem:[#allocation6 + $0x330] ss:$40 sps:$4 sm:$0xff]   ;;  %v4307_v20 = vld [vmem:[#allocation6 + $0x4b4] ss:$40 sps:$4 sm:$0xff]  }
  0x66   :  { %v4918_v17 = vpack.c.bf16 %v112_v14, %v109_v13  ;;  %v4306_v19 = vld [vmem:[#allocation6 + $0x460] ss:$40 sps:$4 sm:$0xff]   ;;  %v4311_v21 = vld [vmem:[#allocation6 + $0x384] ss:$40 sps:$4 sm:$0xff]   ;;  %v4312_v24 = vld [vmem:[#allocation6 + $0x4b0] ss:$40 sps:$4 sm:$0xff]  }
  0x67   :  { %4005 = vmatmul.mubr.msk.bf16.gmra.mrb[4].mxu0 %vm1349_vm0, %v4895_v33  ;;  %1387 = vmatpush1.bf16.msra.mxu1 %v4258_v35  ;;  %v4309_v23 = vld [vmem:[#allocation6 + $0x380] ss:$40 sps:$4 sm:$0xff]   ;;  %v80_v26 = vld [vmem:[#allocation3 + $0x18] sm:$0xff]  ;;  %v115_v27 = vld [vmem:[#allocation3 + $0x130] sm:$0xff] }
  0x68   :  { %1831 = vmatpush1.bf16.msra.mxu0 %v4255_v34  ;;  %1388 = vmatprep.subr.bf16.mxu1 %v4259_v36  ;;  %v77_v25 = vld [vmem:[#allocation3] sm:$0xff]  ;;  %v118_v28 = vld [vmem:[#allocation3 + $0x148] sm:$0xff]  ;;  %v4318_v30 = vld [vmem:[#allocation6 + $0x3d4] ss:$40 sps:$4 sm:$0xff]  }
  0x69   :  { %1832 = vmatprep.subr.bf16.mxu0 %v4263_v37  ;;  %1539 = vmatprep.mubr.bf16.mxu0 %v4805_v1  ;;  %v4315_v29 = vld [vmem:[#allocation6 + $0xc] ss:$40 sps:$4 sm:$0xff]   ;;  %v4313_v31 = vld [vmem:[#allocation6 + $0x8] ss:$40 sps:$4 sm:$0xff]   ;;  %v4923_v32 = vpack.c.bf16 %v80_v26, %v77_v25  ;;  %v4925_v34 = vpack.c.bf16 %v118_v28, %v115_v27  ;;  %v84_v35 = vld [vmem:[#allocation3 + $0x38] sm:$0xff] }
  0x6a   :  { %v87_v36 = vld [vmem:[#allocation3 + $0x50] sm:$0xff]  ;;  %v4319_v40 = vld [vmem:[#allocation6 + $0x58] ss:$40 sps:$4 sm:$0xff]   ;;  %v102_v14 = vld [vmem:[#allocation3 + $0xc8] sm:$0xff] }
  0x6b   :  { %1389 = vmatpush1.bf16.msra.mxu1 %v4264_v39  ;;  %v4316_v37 = vld [vmem:[#allocation6 + $0x3d0] ss:$40 sps:$4 sm:$0xff]   ;;  %v4324_v39 = vld [vmem:[#allocation6 + $0x424] ss:$40 sps:$4 sm:$0xff]   ;;  %v4322_v41 = vld [vmem:[#allocation6 + $0x420] ss:$40 sps:$4 sm:$0xff]  }
  0x6c   :  { %1833 = vmatpush1.bf16.msra.mxu0 %v4261_v38  ;;  %1390 = vmatprep.subr.bf16.mxu1 %v4265_v42  ;;  %v4321_v38 = vld [vmem:[#allocation6 + $0x5c] ss:$40 sps:$4 sm:$0xff]   ;;  %v4927_v42 = vpack.c.bf16 %v87_v36, %v84_v35  ;;  %v4339_v0 = vld [vmem:[#allocation6 + $0x14c] ss:$40 sps:$4 sm:$0xff]  }
  0x6d   :  { %1834 = vmatprep.subr.bf16.mxu0 %v4269_v43  ;;  %v83_v43 = vld [vmem:[#allocation3 + $0x30] sm:$0xff]  ;;  %v92_v63 = vld [vmem:[#allocation3 + $0x78] sm:$0xff]  ;;  %v101_v25 = vld [vmem:[#allocation3 + $0xc0] sm:$0xff] }
  0x6e   :  { %v99_v3 = vld [vmem:[#allocation3 + $0xb0] sm:$0xff]  ;;  %v104_v26 = vld [vmem:[#allocation3 + $0xd8] sm:$0xff]  ;;  %v4381_v27 = vld [vmem:[#allocation6 + $0x564] ss:$40 sps:$4 sm:$0xff]  }
  0x6f   :  { %4006 = vmatmul.mubr.msk.bf16.gmra.mrb[8].mxu0 %vm1349_vm0, %v4900_v44  ;;  %1391 = vmatpush1.bf16.msra.mxu1 %v4270_v46  ;;  %v121_v46 = vld [vmem:[#allocation3 + $0x160] sm:$0xff]  ;;  %v4345_v13 = vld [vmem:[#allocation6 + $0x1ec] ss:$40 sps:$4 sm:$0xff]   ;;  %v4961_v36 = vpack.c.bf16 %v104_v26, %v101_v25 }
  0x70   :  { %1835 = vmatpush1.bf16.msra.mxu0 %v4267_v45  ;;  %1392 = vmatprep.subr.bf16.mxu1 %v4271_v47  ;;  %v86_v45 = vld [vmem:[#allocation3 + $0x48] sm:$0xff]  ;;  %v124_v47 = vld [vmem:[#allocation3 + $0x178] sm:$0xff]  ;;  %v111_v35 = vld [vmem:[#allocation3 + $0x110] sm:$0xff] }
  0x71   :  { %1836 = vmatprep.subr.bf16.mxu0 %v4275_v48  ;;  %1549 = vmatprep.mubr.bf16.mxu0 %v4805_v1  ;;  %v4327_v48 = vld [vmem:[#allocation6 + $0xac] ss:$40 sps:$4 sm:$0xff]   ;;  %v4934_v51 = vpack.c.bf16 %v86_v45, %v83_v43  ;;  %v4936_v52 = vpack.c.bf16 %v124_v47, %v121_v46  ;;  %v4382_v45 = vld [vmem:[#allocation6 + $0x5b0] ss:$40 sps:$4 sm:$0xff]   ;;  %v4390_v25 = vld [vmem:[#allocation6 + $0x55c] ss:$40 sps:$4 sm:$0xff]  }
  0x72   :  { %v4351_v28 = vld [vmem:[#allocation6 + $0x28c] ss:$40 sps:$4 sm:$0xff]   ;;  %v4388_v26 = vld [vmem:[#allocation6 + $0x558] ss:$40 sps:$4 sm:$0xff]  }
  0x73   :  { %1393 = vmatpush1.bf16.msra.mxu1 %v4276_v50  ;;  %v4325_v50 = vld [vmem:[#allocation6 + $0xa8] ss:$40 sps:$4 sm:$0xff]   ;;  %v4357_v46 = vld [vmem:[#allocation6 + $0x32c] ss:$40 sps:$4 sm:$0xff]  }
  0x74   :  { %1837 = vmatpush1.bf16.msra.mxu0 %v4273_v49  ;;  %1394 = vmatprep.subr.bf16.mxu1 %v4277_v53  ;;  %v4330_v49 = vld [vmem:[#allocation6 + $0x474] ss:$40 sps:$4 sm:$0xff]   ;;  %v90_v53 = vld [vmem:[#allocation3 + $0x68] sm:$0xff] }
  0x75   :  { %1838 = vmatprep.subr.bf16.mxu0 %v4281_v54  ;;  %v93_v54 = vld [vmem:[#allocation3 + $0x80] sm:$0xff]  ;;  %v110_v43 = vld [vmem:[#allocation3 + $0x108] sm:$0xff] }
  0x76   :  { %v4387_v47 = vld [vmem:[#allocation6 + $0x604] ss:$40 sps:$4 sm:$0xff]  }
  0x77   :  { %4007 = vmatmul.mubr.msk.bf16.gmra.mrb[12].mxu0 %vm1349_vm0, %v4905_v55  ;;  %1395 = vmatpush1.bf16.msra.mxu1 %v4282_v57  ;;  %v4333_v57 = vld [vmem:[#allocation6 + $0xfc] ss:$40 sps:$4 sm:$0xff]  }
  0x78   :  { %1839 = vmatpush1.bf16.msra.mxu0 %v4279_v56  ;;  %1396 = vmatprep.subr.bf16.mxu1 %v4283_v58  ;;  %v4328_v56 = vld [vmem:[#allocation6 + $0x470] ss:$40 sps:$4 sm:$0xff]   ;;  %v4336_v58 = vld [vmem:[#allocation6 + $0x4c4] ss:$40 sps:$4 sm:$0xff]  }
  0x79   :  { %1840 = vmatprep.subr.bf16.mxu0 %v4287_v59  ;;  %1559 = vmatprep.mubr.bf16.mxu0 %v4805_v1  ;;  %v4331_v59 = vld [vmem:[#allocation6 + $0xf8] ss:$40 sps:$4 sm:$0xff]  }
  0x7b   :  { %1397 = vmatpush1.bf16.msra.mxu1 %v4288_v61  ;;  %v4334_v61 = vld [vmem:[#allocation6 + $0x4c0] ss:$40 sps:$4 sm:$0xff]  }
  0x7c   :  { %1841 = vmatpush1.bf16.msra.mxu0 %v4285_v60  ;;  %1398 = vmatprep.subr.bf16.mxu1 %v4289_v62  ;;  %v4938_v60 = vpack.c.bf16 %v93_v54, %v90_v53  ;;  %v89_v62 = vld [vmem:[#allocation3 + $0x60] sm:$0xff]  ;;  %v4355_v54 = vld [vmem:[#allocation6 + $0x328] ss:$40 sps:$4 sm:$0xff]  }
  0x7d   :  { %1842 = vmatprep.subr.bf16.mxu0 %v4293_v2  ;;  %v96_v2 = vld [vmem:[#allocation3 + $0x98] sm:$0xff]  ;;  %v4945_v5 = vpack.c.bf16 %v92_v63, %v89_v62  ;;  %v4363_v63 = vld [vmem:[#allocation6 + $0x3cc] ss:$40 sps:$4 sm:$0xff]  }
  0x7e   :  { %v116_v62 = vld [vmem:[#allocation3 + $0x138] sm:$0xff] }
  0x7f   :  { %4008 = vmatmul.mubr.msk.bf16.gmra.mrb[16].mxu0 %vm1349_vm0, %v4910_v4  ;;  %1399 = vmatpush1.bf16.msra.mxu1 %v4294_v7  ;;  %v4947_v7 = vpack.c.bf16 %v99_v3, %v96_v2  ;;  %v123_v2 = vld [vmem:[#allocation3 + $0x170] sm:$0xff] }
  0x80   :  { %1843 = vmatpush1.bf16.msra.mxu0 %v4291_v6  ;;  %1400 = vmatprep.subr.bf16.mxu1 %v4295_v9  ;;  %v4337_v6 = vld [vmem:[#allocation6 + $0x148] ss:$40 sps:$4 sm:$0xff]   ;;  %v4342_v9 = vld [vmem:[#allocation6 + $0x19c] ss:$40 sps:$4 sm:$0xff]  }
  0x81   :  { %1844 = vmatprep.subr.bf16.mxu0 %v4299_v10  ;;  %1569 = vmatprep.mubr.bf16.mxu0 %v4805_v1  ;;  %v4340_v10 = vld [vmem:[#allocation6 + $0x198] ss:$40 sps:$4 sm:$0xff]  }
  0x83   :  { %1401 = vmatpush1.bf16.msra.mxu1 %v4300_v12  ;;  %v98_v12 = vld [vmem:[#allocation3 + $0xa8] sm:$0xff] }
  0x84   :  { %1845 = vmatpush1.bf16.msra.mxu0 %v4297_v11  ;;  %1402 = vmatprep.subr.bf16.mxu1 %v4301_v15  ;;  %v95_v11 = vld [vmem:[#allocation3 + $0x90] sm:$0xff]  ;;  %v105_v15 = vld [vmem:[#allocation3 + $0xe0] sm:$0xff] }
  0x85   :  { %1846 = vmatprep.subr.bf16.mxu0 %v4305_v16  ;;  %v4953_v16 = vpack.c.bf16 %v98_v12, %v95_v11  ;;  %v4364_v11 = vld [vmem:[#allocation6 + $0x418] ss:$40 sps:$4 sm:$0xff]   ;;  %v119_v12 = vld [vmem:[#allocation3 + $0x150] sm:$0xff] }
  0x87   :  { %4009 = vmatmul.mubr.msk.bf16.gmra.mrb[20].mxu0 %vm1349_vm0, %v4918_v17  ;;  %1403 = vmatpush1.bf16.msra.mxu1 %v4306_v19  ;;  %v4378_v19 = vld [vmem:[#allocation6 + $0x514] ss:$40 sps:$4 sm:$0xff]  }
  0x88   :  { %1847 = vmatpush1.bf16.msra.mxu0 %v4303_v18  ;;  %1404 = vmatprep.subr.bf16.mxu1 %v4307_v20  ;;  %v4376_v18 = vld [vmem:[#allocation6 + $0x510] ss:$40 sps:$4 sm:$0xff]  }
  0x89   :  { %1848 = vmatprep.subr.bf16.mxu0 %v4311_v21  ;;  %1579 = vmatprep.mubr.bf16.mxu0 %v4805_v1  ;;  %v4343_v20 = vld [vmem:[#allocation6 + $0x1e8] ss:$40 sps:$4 sm:$0xff]   ;;  %v4955_v21 = vpack.c.bf16 %v105_v15, %v102_v14  ;;  %v4369_v14 = vld [vmem:[#allocation6 + $0x46c] ss:$40 sps:$4 sm:$0xff]  }
  0x8b   :  { %1405 = vmatpush1.bf16.msra.mxu1 %v4312_v24  ;;  %v4346_v24 = vld [vmem:[#allocation6 + $0x238] ss:$40 sps:$4 sm:$0xff]  }
  0x8c   :  { %1849 = vmatpush1.bf16.msra.mxu0 %v4309_v23  ;;  %1600 = vmatprep.subr.bf16.mxu1 %v4315_v29  ;;  %v4348_v23 = vld [vmem:[#allocation6 + $0x23c] ss:$40 sps:$4 sm:$0xff]  }
  0x8d   :  { %1850 = vmatprep.subr.bf16.mxu0 %v4318_v30  ;;  %v108_v29 = vld [vmem:[#allocation3 + $0xf8] sm:$0xff]  ;;  %v4379_v30 = vld [vmem:[#allocation6 + $0x560] ss:$40 sps:$4 sm:$0xff]  }
  0x8e   :  { %1407 = vmatmul.mubr.bf16.vlgmr.msra.gmra.mrb[0].mxu1 %v4923_v32 }
  0x8f   :  { %4010 = vmatmul.mubr.msk.bf16.gmra.mrb[24].mxu0 %vm1349_vm0, %v4925_v34  ;;  %1601 = vmatpush1.bf16.msra.mxu1 %v4313_v31  ;;  %v4384_v31 = vld [vmem:[#allocation6 + $0x5b4] ss:$40 sps:$4 sm:$0xff]  }
  0x90   :  { %1851 = vmatpush1.bf16.msra.mxu0 %v4316_v37  ;;  %1602 = vmatprep.subr.bf16.mxu1 %v4321_v38  ;;  %v4349_v37 = vld [vmem:[#allocation6 + $0x288] ss:$40 sps:$4 sm:$0xff]   ;;  %v4963_v38 = vpack.c.bf16 %v111_v35, %v108_v29  ;;  %v4420_v29 = vld [vmem:[#allocation6 + $0x5fc] ss:$40 sps:$4 sm:$0xff]  }
  0x91   :  { %1852 = vmatprep.subr.bf16.mxu0 %v4324_v39  ;;  %1416 = vmatprep.mubr.bf16.mxu1 %v4927_v42  ;;  %v4354_v39 = vld [vmem:[#allocation6 + $0x2dc] ss:$40 sps:$4 sm:$0xff]   ;;  %v4391_v35 = vld [vmem:[#allocation6 + $0x20] ss:$40 sps:$4 sm:$0xff]  }
  0x92   :  { %1589 = vmatprep.mubr.bf16.mxu0 %v4805_v1 }
  0x93   :  { %1603 = vmatpush1.bf16.msra.mxu1 %v4319_v40  ;;  %v4352_v40 = vld [vmem:[#allocation6 + $0x2d8] ss:$40 sps:$4 sm:$0xff]  }
  0x94   :  { %1853 = vmatpush1.bf16.msra.mxu0 %v4322_v41  ;;  %1604 = vmatprep.subr.bf16.mxu1 %v4327_v48  ;;  %v107_v41 = vld [vmem:[#allocation3 + $0xf0] sm:$0xff]  ;;  %v114_v48 = vld [vmem:[#allocation3 + $0x128] sm:$0xff] }
  0x95   :  { %1854 = vmatprep.subr.bf16.mxu0 %v4330_v49  ;;  %v117_v49 = vld [vmem:[#allocation3 + $0x140] sm:$0xff]  ;;  %v4969_v53 = vpack.c.bf16 %v110_v43, %v107_v41  ;;  %v4402_v43 = vld [vmem:[#allocation6 + $0x114] ss:$40 sps:$4 sm:$0xff]  }
  0x96   :  { %1417 = vmatmul.mubr.bf16.gmra.mrb[4].mxu1 %v4934_v51  ;;  %v4397_v41 = vld [vmem:[#allocation6 + $0xc0] ss:$40 sps:$4 sm:$0xff]  }
  0x97   :  { %4011 = vmatmul.mubr.msk.bf16.gmra.mrb[28].mxu0 %vm1349_vm0, %v4936_v52  ;;  %1605 = vmatpush1.bf16.msra.mxu1 %v4325_v50  ;;  %v4385_v50 = vld [vmem:[#allocation6 + $0x600] ss:$40 sps:$4 sm:$0xff]  }
  0x98   :  { %1855 = vmatpush1.bf16.msra.mxu0 %v4328_v56  ;;  %1606 = vmatprep.subr.bf16.mxu1 %v4333_v57  ;;  %v4971_v56 = vpack.c.bf16 %v117_v49, %v114_v48  ;;  %v4360_v57 = vld [vmem:[#allocation6 + $0x37c] ss:$40 sps:$4 sm:$0xff]   ;;  %v4409_v49 = vld [vmem:[#allocation6 + $0x1b0] ss:$40 sps:$4 sm:$0xff]  }
  0x99   :  { %1856 = vmatprep.subr.bf16.mxu0 %v4336_v58  ;;  %1426 = vmatprep.mubr.bf16.mxu1 %v4938_v60  ;;  %v4358_v58 = vld [vmem:[#allocation6 + $0x378] ss:$40 sps:$4 sm:$0xff]   ;;  %v4411_v48 = vld [vmem:[#allocation6 + $0x1b4] ss:$40 sps:$4 sm:$0xff]  }
  0x9a   :  { %1858 = vmatprep.mubr.bf16.mxu0 %v4912_v8 }
  0x9b   :  { %1607 = vmatpush1.bf16.msra.mxu1 %v4331_v59  ;;  %v113_v59 = vld [vmem:[#allocation3 + $0x120] sm:$0xff] }
  0x9c   :  { %1857 = vmatpush1.bf16.msra.mxu0 %v4334_v61  ;;  %1608 = vmatprep.subr.bf16.mxu1 %v4339_v0  ;;  %v4393_v61 = vld [vmem:[#allocation6 + $0x24] ss:$40 sps:$4 sm:$0xff]   ;;  %v120_v0 = vld [vmem:[#allocation3 + $0x158] sm:$0xff]  ;;  %v4977_v3 = vpack.c.bf16 %v116_v62, %v113_v59 }
  0x9d   :  { %1939 = vmatprep.subr.bf16.mxu0 %v4378_v19  ;;  %v4372_v19 = vld [vmem:[#allocation6 + $0x4bc] ss:$40 sps:$4 sm:$0xff]  }
  0x9e   :  { %1427 = vmatmul.mubr.bf16.gmra.mrb[8].mxu1 %v4945_v5  ;;  %v4423_v59 = vld [vmem:[#allocation6 + $0x2a4] ss:$40 sps:$4 sm:$0xff]   ;;  %v4426_v62 = vld [vmem:[#allocation6 + $0x2f4] ss:$40 sps:$4 sm:$0xff]  }
  0x9f   :  { %1859 = vmatmul.mubr.bf16.vlgmr.msra.gmra.mrb[32].mxu0 %v4923_v32  ;;  %1609 = vmatpush1.bf16.msra.mxu1 %v4337_v6  ;;  %v4361_v6 = vld [vmem:[#allocation6 + $0x3c8] ss:$40 sps:$4 sm:$0xff]  }
  0xa0   :  { %1436 = vmatprep.mubr.bf16.mxu1 %v4947_v7  ;;  %1610 = vmatprep.subr.bf16.mxu1 %v4342_v9  ;;  %v4979_v9 = vpack.c.bf16 %v123_v2, %v120_v0  ;;  %v4429_v0 = vld [vmem:[#allocation6 + $0x344] ss:$40 sps:$4 sm:$0xff]   ;;  %v4427_v2 = vld [vmem:[#allocation6 + $0x340] ss:$40 sps:$4 sm:$0xff]  }
  0xa1   :  { %1868 = vmatprep.mubr.bf16.mxu0 %v4927_v42  ;;  %1940 = vmatpush1.bf16.msra.mxu0 %v4376_v18  ;;  %v4367_v18 = vld [vmem:[#allocation6 + $0x468] ss:$40 sps:$4 sm:$0xff]  }
  0xa2   :  { %1941 = vmatprep.subr.bf16.mxu0 %v4381_v27  ;;  %v4405_v27 = vld [vmem:[#allocation6 + $0x5ac] ss:$40 sps:$4 sm:$0xff]  }
  0xa3   :  { %1611 = vmatpush1.bf16.msra.mxu1 %v4340_v10  ;;  %v4366_v10 = vld [vmem:[#allocation6 + $0x41c] ss:$40 sps:$4 sm:$0xff]  }
  0xa4   :  { %1612 = vmatprep.subr.bf16.mxu1 %v4345_v13  ;;  %v122_v13 = vld [vmem:[#allocation3 + $0x168] sm:$0xff] }
  0xa5   :  { %1942 = vmatpush1.bf16.msra.mxu0 %v4379_v30  ;;  %v4985_v15 = vpack.c.bf16 %v122_v13, %v119_v12  ;;  %v4418_v30 = vld [vmem:[#allocation6 + $0x5f8] ss:$40 sps:$4 sm:$0xff]  }
  0xa6   :  { %1437 = vmatmul.mubr.bf16.gmra.mrb[12].mxu1 %v4953_v16  ;;  %1943 = vmatprep.subr.bf16.mxu0 %v4384_v31  ;;  %v4435_v31 = vld [vmem:[#allocation6 + $0x1c] ss:$40 sps:$4 sm:$0xff]   ;;  %v4433_v12 = vld [vmem:[#allocation6 + $0x18] ss:$40 sps:$4 sm:$0xff]  }
  0xa7   :  { %1869 = vmatmul.mubr.bf16.gmra.mrb[36].mxu0 %v4934_v51  ;;  %1613 = vmatpush1.bf16.msra.mxu1 %v4343_v20  ;;  %v4370_v20 = vld [vmem:[#allocation6 + $0x4b8] ss:$40 sps:$4 sm:$0xff]  }
  0xa8   :  { %1446 = vmatprep.mubr.bf16.mxu1 %v4955_v21  ;;  %1614 = vmatprep.subr.bf16.mxu1 %v4348_v23  ;;  %v4375_v23 = vld [vmem:[#allocation6 + $0x50c] ss:$40 sps:$4 sm:$0xff]   ;;  %v4436_v13 = vld [vmem:[#allocation6 + $0x3e0] ss:$40 sps:$4 sm:$0xff]  }
  0xa9   :  { %1878 = vmatprep.mubr.bf16.mxu0 %v4938_v60  ;;  %1944 = vmatpush1.bf16.msra.mxu0 %v4382_v45  ;;  %v4400_v45 = vld [vmem:[#allocation6 + $0x110] ss:$40 sps:$4 sm:$0xff]  }
  0xaa   :  { %1945 = vmatprep.subr.bf16.mxu0 %v4387_v47  ;;  %v4406_v47 = vld [vmem:[#allocation6 + $0x160] ss:$40 sps:$4 sm:$0xff]  }
  0xab   :  { %1615 = vmatpush1.bf16.msra.mxu1 %v4346_v24  ;;  %v4373_v24 = vld [vmem:[#allocation6 + $0x508] ss:$40 sps:$4 sm:$0xff]  }
  0xac   :  { %1616 = vmatprep.subr.bf16.mxu1 %v4351_v28  ;;  %v4403_v28 = vld [vmem:[#allocation6 + $0x5a8] ss:$40 sps:$4 sm:$0xff]  }
  0xad   :  { %1946 = vmatpush1.bf16.msra.mxu0 %v4385_v50  ;;  %v4414_v50 = vld [vmem:[#allocation6 + $0x204] ss:$40 sps:$4 sm:$0xff]  }
  0xae   :  { %1447 = vmatmul.mubr.bf16.gmra.mrb[16].mxu1 %v4961_v36  ;;  %2278 = vmatprep.subr.bf16.mxu0 %v4393_v61  ;;  %v4421_v61 = vld [vmem:[#allocation6 + $0x2a0] ss:$40 sps:$4 sm:$0xff]  }
  0xaf   :  { %1879 = vmatmul.mubr.bf16.gmra.mrb[40].mxu0 %v4945_v5  ;;  %1617 = vmatpush1.bf16.msra.mxu1 %v4349_v37  ;;  %v4396_v37 = vld [vmem:[#allocation6 + $0x74] ss:$40 sps:$4 sm:$0xff]  }
  0xb0   :  { %1456 = vmatprep.mubr.bf16.mxu1 %v4963_v38  ;;  %1618 = vmatprep.subr.bf16.mxu1 %v4354_v39  ;;  %v4394_v39 = vld [vmem:[#allocation6 + $0x70] ss:$40 sps:$4 sm:$0xff]  }
  0xb1   :  { %1888 = vmatprep.mubr.bf16.mxu0 %v4947_v7 }
  0xb3   :  { %1619 = vmatpush1.bf16.msra.mxu1 %v4352_v40  ;;  %v4399_v40 = vld [vmem:[#allocation6 + $0xc4] ss:$40 sps:$4 sm:$0xff]  }
  0xb4   :  { %1620 = vmatprep.subr.bf16.mxu1 %v4357_v46  ;;  %v4408_v46 = vld [vmem:[#allocation6 + $0x164] ss:$40 sps:$4 sm:$0xff]  }
  0xb6   :  { %1457 = vmatmul.mubr.bf16.gmra.mrb[20].mxu1 %v4969_v53 }
  0xb7   :  { %1889 = vmatmul.mubr.bf16.gmra.mrb[44].mxu0 %v4953_v16  ;;  %1621 = vmatpush1.bf16.msra.mxu1 %v4355_v54  ;;  %v4412_v54 = vld [vmem:[#allocation6 + $0x200] ss:$40 sps:$4 sm:$0xff]  }
  0xb8   :  { %1466 = vmatprep.mubr.bf16.mxu1 %v4971_v56  ;;  %1622 = vmatprep.subr.bf16.mxu1 %v4360_v57  ;;  %v4417_v57 = vld [vmem:[#allocation6 + $0x254] ss:$40 sps:$4 sm:$0xff]  }
  0xb9   :  { %1898 = vmatprep.mubr.bf16.mxu0 %v4955_v21 }
  0xbb   :  { %1623 = vmatpush1.bf16.msra.mxu1 %v4358_v58  ;;  %v4415_v58 = vld [vmem:[#allocation6 + $0x250] ss:$40 sps:$4 sm:$0xff]  }
  0xbc   :  { %1624 = vmatprep.subr.bf16.mxu1 %v4363_v63  ;;  %v4424_v63 = vld [vmem:[#allocation6 + $0x2f0] ss:$40 sps:$4 sm:$0xff]  }
  0xbe   :  { %1467 = vmatmul.mubr.bf16.gmra.mrb[24].mxu1 %v4977_v3 }
  0xbf   :  { %1899 = vmatmul.mubr.bf16.gmra.mrb[48].mxu0 %v4961_v36  ;;  %1625 = vmatpush1.bf16.msra.mxu1 %v4361_v6  ;;  %v4432_v6 = vld [vmem:[#allocation6 + $0x394] ss:$40 sps:$4 sm:$0xff]  }
  0xc0   :  { %1476 = vmatprep.mubr.bf16.mxu1 %v4979_v9  ;;  %1626 = vmatprep.subr.bf16.mxu1 %v4366_v10  ;;  %v4430_v10 = vld [vmem:[#allocation6 + $0x390] ss:$40 sps:$4 sm:$0xff]  }
  0xc1   :  { %1908 = vmatprep.mubr.bf16.mxu0 %v4963_v38 }
  0xc3   :  { %1627 = vmatpush1.bf16.msra.mxu1 %v4364_v11  ;;  %v4438_v11 = vld [vmem:[#allocation6 + $0x3e4] ss:$40 sps:$4 sm:$0xff]  }
  0xc4   :  { %1628 = vmatprep.subr.bf16.mxu1 %v4369_v14  ;;  %v4441_v14 = vld [vmem:[#allocation6 + $0x6c] ss:$40 sps:$4 sm:$0xff]  }
  0xc6   :  { %1477 = vmatmul.mubr.bf16.gmra.mrb[28].mxu1 %v4985_v15 }
  0xc7   :  { %1909 = vmatmul.mubr.bf16.gmra.mrb[52].mxu0 %v4969_v53  ;;  %1629 = vmatpush1.bf16.msra.mxu1 %v4367_v18  ;;  %v4444_v18 = vld [vmem:[#allocation6 + $0x434] ss:$40 sps:$4 sm:$0xff]  }
  0xc8   :  { %1632 = vmatprep.mubr.bf16.mxu1 %v4912_v8  ;;  %1630 = vmatprep.subr.bf16.mxu1 %v4372_v19  ;;  %v4439_v19 = vld [vmem:[#allocation6 + $0x68] ss:$40 sps:$4 sm:$0xff]  }
  0xc9   :  { %1918 = vmatprep.mubr.bf16.mxu0 %v4971_v56 }
  0xcb   :  { %1631 = vmatpush1.bf16.msra.mxu1 %v4370_v20  ;;  %v4442_v20 = vld [vmem:[#allocation6 + $0x430] ss:$40 sps:$4 sm:$0xff]  }
  0xcc   :  { %1713 = vmatprep.subr.bf16.mxu1 %v4375_v23  ;;  %v4447_v23 = vld [vmem:[#allocation6 + $0xbc] ss:$40 sps:$4 sm:$0xff]  }
  0xce   :  { %1633 = vmatmul.mubr.bf16.vlgmr.msra.gmra.mrb[32].mxu1 %v4923_v32 }
  0xcf   :  { %1919 = vmatmul.mubr.bf16.gmra.mrb[56].mxu0 %v4977_v3  ;;  %1714 = vmatpush1.bf16.msra.mxu1 %v4373_v24  ;;  %v4450_v24 = vld [vmem:[#allocation6 + $0x484] ss:$40 sps:$4 sm:$0xff]  }
  0xd0   :  { %1642 = vmatprep.mubr.bf16.mxu1 %v4927_v42  ;;  %1928 = vmatprep.mubr.bf16.mxu0 %v4979_v9 }
  0xd1   :  { %1715 = vmatprep.subr.bf16.mxu1 %v4390_v25  ;;  %v4445_v25 = vld [vmem:[#allocation6 + $0xb8] ss:$40 sps:$4 sm:$0xff]  }
  0xd3   :  { %1716 = vmatpush1.bf16.msra.mxu1 %v4388_v26  ;;  %v4448_v26 = vld [vmem:[#allocation6 + $0x480] ss:$40 sps:$4 sm:$0xff]  }
  0xd4   :  { %1717 = vmatprep.subr.bf16.mxu1 %v4405_v27  ;;  %v4453_v27 = vld [vmem:[#allocation6 + $0x10c] ss:$40 sps:$4 sm:$0xff]  }
  0xd6   :  { %1643 = vmatmul.mubr.bf16.gmra.mrb[36].mxu1 %v4934_v51 }
  0xd7   :  { %1929 = vmatmul.mubr.bf16.gmra.mrb[60].mxu0 %v4985_v15  ;;  %1652 = vmatprep.mubr.bf16.mxu1 %v4938_v60 }
  0xd8   :  { %1971 = vmatprep.mubr.bf16.mxu0 %v4805_v1  ;;  %1718 = vmatpush1.bf16.msra.mxu1 %v4403_v28  ;;  %v4456_v28 = vld [vmem:[#allocation6 + $0x4d4] ss:$40 sps:$4 sm:$0xff]  }
  0xd9   :  { %1719 = vmatprep.subr.bf16.mxu1 %v4420_v29  ;;  %v4451_v29 = vld [vmem:[#allocation6 + $0x108] ss:$40 sps:$4 sm:$0xff]  }
  0xdc   :  { %1720 = vmatpush1.bf16.msra.mxu1 %v4418_v30  ;;  %v4454_v30 = vld [vmem:[#allocation6 + $0x4d0] ss:$40 sps:$4 sm:$0xff]  }
  0xdd   :  { %2052 = vmatprep.subr.bf16.mxu1 %v4435_v31  ;;  %v4459_v31 = vld [vmem:[#allocation6 + $0x15c] ss:$40 sps:$4 sm:$0xff]  }
  0xde   :  { %1653 = vmatmul.mubr.bf16.gmra.mrb[40].mxu1 %v4945_v5 }
  0xdf   :  { %4020 = vmatmul.mubr.msk.bf16.vlgmr.msra.gmra.mrb[32].mxu0 %vm1349_vm0, %v4890_v22  ;;  %1662 = vmatprep.mubr.bf16.mxu1 %v4947_v7 }
  0xe0   :  { %2279 = vmatpush1.bf16.msra.mxu0 %v4391_v35  ;;  %1981 = vmatprep.mubr.bf16.mxu0 %v4805_v1  ;;  %v4498_v35 = vld [vmem:[#allocation6 + $0x524] ss:$40 sps:$4 sm:$0xff]  }
  0xe1   :  { %2280 = vmatprep.subr.bf16.mxu0 %v4396_v37  ;;  %v4457_v37 = vld [vmem:[#allocation6 + $0x158] ss:$40 sps:$4 sm:$0xff]  }
  0xe4   :  { %2281 = vmatpush1.bf16.msra.mxu0 %v4394_v39  ;;  %v4462_v39 = vld [vmem:[#allocation6 + $0x1ac] ss:$40 sps:$4 sm:$0xff]  }
  0xe5   :  { %2282 = vmatprep.subr.bf16.mxu0 %v4399_v40  ;;  %v4496_v40 = vld [vmem:[#allocation6 + $0x520] ss:$40 sps:$4 sm:$0xff]  }
  0xe6   :  { %1663 = vmatmul.mubr.bf16.gmra.mrb[44].mxu1 %v4953_v16 }
  0xe7   :  { %4021 = vmatmul.mubr.msk.bf16.gmra.mrb[36].mxu0 %vm1349_vm0, %v4895_v33  ;;  %1672 = vmatprep.mubr.bf16.mxu1 %v4955_v21 }
  0xe8   :  { %2283 = vmatpush1.bf16.msra.mxu0 %v4397_v41  ;;  %1991 = vmatprep.mubr.bf16.mxu0 %v4805_v1  ;;  %v4501_v41 = vld [vmem:[#allocation6 + $0x574] ss:$40 sps:$4 sm:$0xff]  }
  0xe9   :  { %2284 = vmatprep.subr.bf16.mxu0 %v4402_v43  ;;  %v4460_v43 = vld [vmem:[#allocation6 + $0x1a8] ss:$40 sps:$4 sm:$0xff]  }
  0xec   :  { %2285 = vmatpush1.bf16.msra.mxu0 %v4400_v45  ;;  %v4465_v45 = vld [vmem:[#allocation6 + $0x1fc] ss:$40 sps:$4 sm:$0xff]  }
  0xed   :  { %2286 = vmatprep.subr.bf16.mxu0 %v4408_v46  ;;  %v4499_v46 = vld [vmem:[#allocation6 + $0x570] ss:$40 sps:$4 sm:$0xff]  }
  0xee   :  { %1673 = vmatmul.mubr.bf16.gmra.mrb[48].mxu1 %v4961_v36 }
  0xef   :  { %4022 = vmatmul.mubr.msk.bf16.gmra.mrb[40].mxu0 %vm1349_vm0, %v4900_v44  ;;  %1682 = vmatprep.mubr.bf16.mxu1 %v4963_v38 }
  0xf0   :  { %2287 = vmatpush1.bf16.msra.mxu0 %v4406_v47  ;;  %2001 = vmatprep.mubr.bf16.mxu0 %v4805_v1  ;;  %v4463_v47 = vld [vmem:[#allocation6 + $0x1f8] ss:$40 sps:$4 sm:$0xff]  }
  0xf1   :  { %2288 = vmatprep.subr.bf16.mxu0 %v4411_v48  ;;  %v4468_v48 = vld [vmem:[#allocation6 + $0x24c] ss:$40 sps:$4 sm:$0xff]  }
  0xf4   :  { %2289 = vmatpush1.bf16.msra.mxu0 %v4409_v49  ;;  %v4504_v49 = vld [vmem:[#allocation6 + $0x5c4] ss:$40 sps:$4 sm:$0xff]  }
  0xf5   :  { %2290 = vmatprep.subr.bf16.mxu0 %v4414_v50  ;;  %v4502_v50 = vld [vmem:[#allocation6 + $0x5c0] ss:$40 sps:$4 sm:$0xff]  }
  0xf6   :  { %1683 = vmatmul.mubr.bf16.gmra.mrb[52].mxu1 %v4969_v53 }
  0xf7   :  { %4023 = vmatmul.mubr.msk.bf16.gmra.mrb[44].mxu0 %vm1349_vm0, %v4905_v55  ;;  %1692 = vmatprep.mubr.bf16.mxu1 %v4971_v56 }
  0xf8   :  { %2291 = vmatpush1.bf16.msra.mxu0 %v4412_v54  ;;  %2011 = vmatprep.mubr.bf16.mxu0 %v4805_v1  ;;  %v4466_v54 = vld [vmem:[#allocation6 + $0x248] ss:$40 sps:$4 sm:$0xff]  }
  0xf9   :  { %2292 = vmatprep.subr.bf16.mxu0 %v4417_v57  ;;  %v4507_v57 = vld [vmem:[#allocation6 + $0x614] ss:$40 sps:$4 sm:$0xff]  }
  0xfc   :  { %2293 = vmatpush1.bf16.msra.mxu0 %v4415_v58  ;;  %v4471_v58 = vld [vmem:[#allocation6 + $0x29c] ss:$40 sps:$4 sm:$0xff]  }
  0xfd   :  { %2294 = vmatprep.subr.bf16.mxu0 %v4423_v59  ;;  %v4469_v59 = vld [vmem:[#allocation6 + $0x298] ss:$40 sps:$4 sm:$0xff]  }
  0xfe   :  { %1693 = vmatmul.mubr.bf16.gmra.mrb[56].mxu1 %v4977_v3 }
  0xff   :  { %4024 = vmatmul.mubr.msk.bf16.gmra.mrb[48].mxu0 %vm1349_vm0, %v4910_v4  ;;  %1702 = vmatprep.mubr.bf16.mxu1 %v4979_v9 }
 0x100   :  { %2295 = vmatpush1.bf16.msra.mxu0 %v4421_v61  ;;  %2021 = vmatprep.mubr.bf16.mxu0 %v4805_v1  ;;  %v4474_v61 = vld [vmem:[#allocation6 + $0x2ec] ss:$40 sps:$4 sm:$0xff]  }
 0x101   :  { %2296 = vmatprep.subr.bf16.mxu0 %v4426_v62  ;;  %v4505_v62 = vld [vmem:[#allocation6 + $0x610] ss:$40 sps:$4 sm:$0xff]  }
 0x104   :  { %2297 = vmatpush1.bf16.msra.mxu0 %v4424_v63  ;;  %v4472_v63 = vld [vmem:[#allocation6 + $0x2e8] ss:$40 sps:$4 sm:$0xff]  }
 0x105   :  { %2298 = vmatprep.subr.bf16.mxu0 %v4429_v0  ;;  %v4477_v0 = vld [vmem:[#allocation6 + $0x33c] ss:$40 sps:$4 sm:$0xff]  }
 0x106   :  { %1703 = vmatmul.mubr.bf16.gmra.mrb[60].mxu1 %v4985_v15 }
 0x107   :  { %4025 = vmatmul.mubr.msk.bf16.gmra.mrb[52].mxu0 %vm1349_vm0, %v4918_v17  ;;  %1745 = vmatprep.mubr.bf16.mxu1 %v4805_v1 }
 0x108   :  { %2299 = vmatpush1.bf16.msra.mxu0 %v4427_v2  ;;  %2031 = vmatprep.mubr.bf16.mxu0 %v4805_v1 }
 0x109   :  { %2300 = vmatprep.subr.bf16.mxu0 %v4432_v6 }
 0x10c   :  { %2301 = vmatpush1.bf16.msra.mxu0 %v4430_v10  ;;  %v4475_v10 = vld [vmem:[#allocation6 + $0x338] ss:$40 sps:$4 sm:$0xff]  }
 0x10d   :  { %2302 = vmatprep.subr.bf16.mxu0 %v4438_v11 }
 0x10e   :  { %4012 = vmatmul.mubr.msk.bf16.vlgmr.msra.gmra.mrb[32].mxu1 %vm1349_vm0, %v4890_v22 }
 0x10f   :  { %4026 = vmatmul.mubr.msk.bf16.gmra.mrb[56].mxu0 %vm1349_vm0, %v4925_v34  ;;  %2053 = vmatpush1.bf16.msra.mxu1 %v4433_v12  ;;  %v4480_v12 = vld [vmem:[#allocation6 + $0x38c] ss:$40 sps:$4 sm:$0xff]  }
 0x110   :  { %2303 = vmatpush1.bf16.msra.mxu0 %v4436_v13  ;;  %2054 = vmatprep.subr.bf16.mxu1 %v4441_v14  ;;  %v4478_v14 = vld [vmem:[#allocation6 + $0x388] ss:$40 sps:$4 sm:$0xff]  }
 0x111   :  { %2304 = vmatprep.subr.bf16.mxu0 %v4444_v18  ;;  %1755 = vmatprep.mubr.bf16.mxu1 %v4805_v1  ;;  %v4483_v18 = vld [vmem:[#allocation6 + $0x3dc] ss:$40 sps:$4 sm:$0xff]  }
 0x112   :  { %2041 = vmatprep.mubr.bf16.mxu0 %v4805_v1 }
 0x113   :  { %2055 = vmatpush1.bf16.msra.mxu1 %v4439_v19 }
 0x114   :  { %2305 = vmatpush1.bf16.msra.mxu0 %v4442_v20  ;;  %2056 = vmatprep.subr.bf16.mxu1 %v4447_v23  ;;  %v4481_v23 = vld [vmem:[#allocation6 + $0x3d8] ss:$40 sps:$4 sm:$0xff]  }
 0x115   :  { %2306 = vmatprep.subr.bf16.mxu0 %v4450_v24 }
 0x116   :  { %4013 = vmatmul.mubr.msk.bf16.gmra.mrb[36].mxu1 %vm1349_vm0, %v4895_v33 }
 0x117   :  { %4027 = vmatmul.mubr.msk.bf16.gmra.mrb[60].mxu0 %vm1349_vm0, %v4936_v52  ;;  %2057 = vmatpush1.bf16.msra.mxu1 %v4445_v25  ;;  %v4486_v25 = vld [vmem:[#allocation6 + $0x42c] ss:$40 sps:$4 sm:$0xff]  }
 0x118   :  { %2307 = vmatpush1.bf16.msra.mxu0 %v4448_v26  ;;  %2058 = vmatprep.subr.bf16.mxu1 %v4453_v27  ;;  %v4484_v27 = vld [vmem:[#allocation6 + $0x428] ss:$40 sps:$4 sm:$0xff]  }
 0x119   :  { %2308 = vmatprep.subr.bf16.mxu0 %v4456_v28  ;;  %1765 = vmatprep.mubr.bf16.mxu1 %v4805_v1  ;;  %v4489_v28 = vld [vmem:[#allocation6 + $0x47c] ss:$40 sps:$4 sm:$0xff]  }
 0x11a   :  { %2310 = vmatprep.mubr.bf16.mxu0 %v4912_v8 }
 0x11b   :  { %2059 = vmatpush1.bf16.msra.mxu1 %v4451_v29 }
 0x11c   :  { %2309 = vmatpush1.bf16.msra.mxu0 %v4454_v30  ;;  %2060 = vmatprep.subr.bf16.mxu1 %v4459_v31  ;;  %v4487_v31 = vld [vmem:[#allocation6 + $0x478] ss:$40 sps:$4 sm:$0xff]  }
 0x11d   :  { %2391 = vmatprep.subr.bf16.mxu0 %v4498_v35 }
 0x11e   :  { %4014 = vmatmul.mubr.msk.bf16.gmra.mrb[40].mxu1 %vm1349_vm0, %v4900_v44 }
 0x11f   :  { %2311 = vmatmul.mubr.bf16.vlgmr.msra.gmra.mrb[64].mxu0 %v4923_v32  ;;  %2061 = vmatpush1.bf16.msra.mxu1 %v4457_v37  ;;  %v4492_v37 = vld [vmem:[#allocation6 + $0x4cc] ss:$40 sps:$4 sm:$0xff]  }
 0x120   :  { %1775 = vmatprep.mubr.bf16.mxu1 %v4805_v1  ;;  %2062 = vmatprep.subr.bf16.mxu1 %v4462_v39 }
 0x121   :  { %2320 = vmatprep.mubr.bf16.mxu0 %v4927_v42  ;;  %2392 = vmatpush1.bf16.msra.mxu0 %v4496_v40  ;;  %v4490_v40 = vld [vmem:[#allocation6 + $0x4c8] ss:$40 sps:$4 sm:$0xff]  }
 0x122   :  { %2393 = vmatprep.subr.bf16.mxu0 %v4501_v41  ;;  %v4495_v41 = vld [vmem:[#allocation6 + $0x51c] ss:$40 sps:$4 sm:$0xff]  }
 0x123   :  { %2063 = vmatpush1.bf16.msra.mxu1 %v4460_v43  ;;  %v4806_v43 = vmov 1966171168  }
 0x124   :  { %2064 = vmatprep.subr.bf16.mxu1 %v4465_v45  ;;  %v2590_v45 = vunpack.c.l.s4 %v4806_v43 }
 0x125   :  { %2394 = vmatpush1.bf16.msra.mxu0 %v4499_v46  ;;  %v2592_v46 = vlaneseq }
 0x126   :  { %4015 = vmatmul.mubr.msk.bf16.gmra.mrb[44].mxu1 %vm1349_vm0, %v4905_v55  ;;  %2395 = vmatprep.subr.bf16.mxu0 %v4504_v49  ;;  %v4493_v49 = vld [vmem:[#allocation6 + $0x518] ss:$40 sps:$4 sm:$0xff]  }
 0x127   :  { %2321 = vmatmul.mubr.bf16.gmra.mrb[68].mxu0 %v4934_v51  ;;  %2065 = vmatpush1.bf16.msra.mxu1 %v4463_v47 }
 0x128   :  { %1785 = vmatprep.mubr.bf16.mxu1 %v4805_v1  ;;  %2066 = vmatprep.subr.bf16.mxu1 %v4468_v48 }
 0x129   :  { %2330 = vmatprep.mubr.bf16.mxu0 %v4938_v60  ;;  %2396 = vmatpush1.bf16.msra.mxu0 %v4502_v50 }
 0x12a   :  { %2397 = vmatprep.subr.bf16.mxu0 %v4507_v57 }
 0x12b   :  { %2067 = vmatpush1.bf16.msra.mxu1 %v4466_v54  ;;  %v4510_v54 = vld [vmem:[#allocation6 + $0x56c] ss:$40 sps:$4 sm:$0xff]  }
 0x12c   :  { %2068 = vmatprep.subr.bf16.mxu1 %v4471_v58  ;;  %v5103_v58 = vshrl.u32 %v2592_v46, 7 }
 0x12d   :  { %2398 = vmatpush1.bf16.msra.mxu0 %v4505_v62 }
 0x12e   :  { %4016 = vmatmul.mubr.msk.bf16.gmra.mrb[48].mxu1 %vm1349_vm0, %v4910_v4 }
 0x12f   :  { %2331 = vmatmul.mubr.bf16.gmra.mrb[72].mxu0 %v4945_v5  ;;  %2069 = vmatpush1.bf16.msra.mxu1 %v4469_v59  ;;  %v4508_v59 = vld [vmem:[#allocation6 + $0x568] ss:$40 sps:$4 sm:$0xff]  }
 0x130   :  { %1795 = vmatprep.mubr.bf16.mxu1 %v4805_v1  ;;  %2070 = vmatprep.subr.bf16.mxu1 %v4474_v61  ;;  %v4513_v61 = vld [vmem:[#allocation6 + $0x5bc] ss:$40 sps:$4 sm:$0xff]  }
 0x131   :  { %2340 = vmatprep.mubr.bf16.mxu0 %v4947_v7 }
 0x132   :  { %v5056_v2 = vpop.f32.mrb[0].mxu0 }
 0x133   :  { %v5058_v6 = vpop.f32.mrb[1].mxu0  ;;  %2071 = vmatpush1.bf16.msra.mxu1 %v4472_v63 }
 0x134   :  { %v5060_v11 = vpop.f32.mrb[2].mxu0  ;;  %2072 = vmatprep.subr.bf16.mxu1 %v4477_v0  ;;  %v5114_v0 = vld [vmem:[#allocation8] sm:$0xff] }
 0x135   :  { %v5062_v13 = vpop.f32.mrb[3].mxu0 }
 0x136   :  { %4017 = vmatmul.mubr.msk.bf16.gmra.mrb[52].mxu1 %vm1349_vm0, %v4918_v17 }
 0x137   :  { %2341 = vmatmul.mubr.bf16.gmra.mrb[76].mxu0 %v4953_v16  ;;  %2073 = vmatpush1.bf16.msra.mxu1 %v4475_v10 }
 0x138   :  { %1805 = vmatprep.mubr.bf16.mxu1 %v4805_v1  ;;  %2074 = vmatprep.subr.bf16.mxu1 %v4480_v12  ;;  %v4511_v12 = vld [vmem:[#allocation6 + $0x5b8] ss:$40 sps:$4 sm:$0xff]  }
 0x139   :  { %2350 = vmatprep.mubr.bf16.mxu0 %v4955_v21 }
 0x13a   :  { %v5069_v19 = vpop.f32.mrb[4].mxu0 }
 0x13b   :  { %v5071_v20 = vpop.f32.mrb[5].mxu0  ;;  %2075 = vmatpush1.bf16.msra.mxu1 %v4478_v14 }
 0x13c   :  { %v5073_v24 = vpop.f32.mrb[6].mxu0  ;;  %2076 = vmatprep.subr.bf16.mxu1 %v4483_v18  ;;  %v4516_v18 = vld [vmem:[#allocation6 + $0x60c] ss:$40 sps:$4 sm:$0xff]  }
 0x13d   :  { %v5075_v26 = vpop.f32.mrb[7].mxu0 }
 0x13e   :  { %4018 = vmatmul.mubr.msk.bf16.gmra.mrb[56].mxu1 %vm1349_vm0, %v4925_v34 }
 0x13f   :  { %2351 = vmatmul.mubr.bf16.gmra.mrb[80].mxu0 %v4961_v36  ;;  %2077 = vmatpush1.bf16.msra.mxu1 %v4481_v23  ;;  %v4514_v23 = vld [vmem:[#allocation6 + $0x608] ss:$40 sps:$4 sm:$0xff]  }
 0x140   :  { %1815 = vmatprep.mubr.bf16.mxu1 %v4805_v1  ;;  %2078 = vmatprep.subr.bf16.mxu1 %v4486_v25 }
 0x141   :  { %2360 = vmatprep.mubr.bf16.mxu0 %v4963_v38 }
 0x142   :  { %v5082_v29 = vpop.f32.mrb[8].mxu0 }
 0x143   :  { %v5084_v30 = vpop.f32.mrb[9].mxu0  ;;  %2079 = vmatpush1.bf16.msra.mxu1 %v4484_v27 }
 0x144   :  { %v5086_v35 = vpop.f32.mrb[10].mxu0  ;;  %2080 = vmatprep.subr.bf16.mxu1 %v4489_v28 }
 0x145   :  { %v5088_v39 = vpop.f32.mrb[11].mxu0 }
 0x146   :  { %4019 = vmatmul.mubr.msk.bf16.gmra.mrb[60].mxu1 %vm1349_vm0, %v4936_v52 }
 0x147   :  { %2361 = vmatmul.mubr.bf16.gmra.mrb[84].mxu0 %v4969_v53  ;;  %2081 = vmatpush1.bf16.msra.mxu1 %v4487_v31 }
 0x148   :  { %2084 = vmatprep.mubr.bf16.mxu1 %v4912_v8  ;;  %2082 = vmatprep.subr.bf16.mxu1 %v4492_v37  ;;  %v2591_v8 = vunpack.c.0.s8 %v2590_v45 }
 0x149   :  { %2370 = vmatprep.mubr.bf16.mxu0 %v4971_v56 }
 0x14a   :  { %v5095_v47 = vpop.f32.mrb[12].mxu0  ;;  %v5110_v62 = vsub.s32 %v2591_v8, %v5103_v58 }
 0x14b   :  { %v5097_v48 = vpop.f32.mrb[13].mxu0  ;;  %2083 = vmatpush1.bf16.msra.mxu1 %v4490_v40 }
 0x14c   :  { %v5099_v50 = vpop.f32.mrb[14].mxu0  ;;  %2165 = vmatprep.subr.bf16.mxu1 %v4495_v41  ;;  %v2595_v14 = vrot.slane %v5114_v0, %v5110_v62  ;;  %v5150_v41 = vsub.s32 0, %v5103_v58 }
 0x14d   :  { %v5101_v57 = vpop.f32.mrb[15].mxu0 }
 0x14e   :  { %2085 = vmatmul.mubr.bf16.vlgmr.msra.gmra.mrb[64].mxu1 %v4923_v32  ;;  %v2603_v25 = vcombine.high %v2595_v14, %v2595_v14  ;;  %v5135_v37 = vrot.slane %v2595_v14, %v5110_v62 }
 0x14f   :  { %2371 = vmatmul.mubr.bf16.gmra.mrb[88].mxu0 %v4977_v3  ;;  %2166 = vmatpush1.bf16.msra.mxu1 %v4493_v49 }
 0x150   :  { %2094 = vmatprep.mubr.bf16.mxu1 %v4927_v42  ;;  %2380 = vmatprep.mubr.bf16.mxu0 %v4979_v9  ;;  %v2660_v40 = vpack.i.b16 %v5135_v37, %v5135_v37 }
 0x151   :  { %2167 = vmatprep.subr.bf16.mxu1 %v4510_v54 }
 0x152   :  { %v5112_v63 = vpop.f32.mrb[16].mxu0 }
 0x153   :  { %v5116_v10 = vpop.f32.mrb[17].mxu0  ;;  %2168 = vmatpush1.bf16.msra.mxu1 %v4508_v59 }
 0x154   :  { %v5118_v32 = vpop.f32.mrb[18].mxu0  ;;  %2169 = vmatprep.subr.bf16.mxu1 %v4513_v61 }
 0x155   :  { %v5120_v42 = vpop.f32.mrb[19].mxu0 }
 0x156   :  { %2095 = vmatmul.mubr.bf16.gmra.mrb[68].mxu1 %v4934_v51 }
 0x157   :  { %2381 = vmatmul.mubr.bf16.gmra.mrb[92].mxu0 %v4985_v15  ;;  %2104 = vmatprep.mubr.bf16.mxu1 %v4938_v60  ;;  %v5140_v60 = vrot.slane %v2603_v25, %v5110_v62 }
 0x158   :  { %2423 = vmatprep.mubr.bf16.mxu0 %v4805_v1  ;;  %2170 = vmatpush1.bf16.msra.mxu1 %v4511_v12  ;;  %v5164_v12 = vrot.slane %v2660_v40, %v5150_v41 }
 0x159   :  { %2171 = vmatprep.subr.bf16.mxu1 %v4516_v18  ;;  %v2667_v45 = vpack.i.b16 %v5140_v60, %v5140_v60 }
 0x15a   :  { %v5128_v27 = vpop.f32.mrb[20].mxu0 }
 0x15b   :  { %v5130_v28 = vpop.f32.mrb[21].mxu0 }
 0x15c   :  { %v5132_v31 = vpop.f32.mrb[22].mxu0  ;;  %2172 = vmatpush1.bf16.msra.mxu1 %v4514_v23 }
 0x15d   :  { %v5137_v51 = vpop.f32.mrb[23].mxu0 }
 0x15e   :  { %2105 = vmatmul.mubr.bf16.gmra.mrb[72].mxu1 %v4945_v5 }
 0x15f   :  { %4036 = vmatmul.mubr.msk.bf16.vlgmr.msra.gmra.mrb[64].mxu0 %vm1349_vm0, %v4890_v22  ;;  %2114 = vmatprep.mubr.bf16.mxu1 %v4947_v7 }
 0x160   :  { %2433 = vmatprep.mubr.bf16.mxu0 %v4805_v1 }
 0x161   :  { %v1408_v43 = vpop.f32.mrb[0].mxu1 }
 0x162   :  { %v5154_v46 = vpop.f32.mrb[24].mxu0  ;;  %v1522_v5 = vadd.f32 %v5056_v2, %v1408_v43  ;;  %v1410_v49 = vpop.f32.mrb[1].mxu1  ;;  %v5170_v2 = vrot.slane %v2667_v45, %v5150_v41 }
 0x163   :  { %v5157_v54 = vpop.f32.mrb[25].mxu0  ;;  %v1524_v7 = vadd.f32 %v5058_v6, %v1410_v49  ;;  %v1412_v8 = vpop.f32.mrb[2].mxu1 }
 0x164   :  { %v5160_v59 = vpop.f32.mrb[26].mxu0  ;;  %v1526_v61 = vadd.f32 %v5060_v11, %v1412_v8  ;;  %v1414_v14 = vpop.f32.mrb[3].mxu1 }
 0x165   :  { %v5166_v18 = vpop.f32.mrb[27].mxu0  ;;  %v1528_v23 = vadd.f32 %v5062_v13, %v1414_v14 }
 0x166   :  { %v2504_v25 = vpack.c.bf16 %v1526_v61, %v1522_v5  ;;  %2115 = vmatmul.mubr.bf16.gmra.mrb[76].mxu1 %v4953_v16 }
 0x167   :  { %4037 = vmatmul.mubr.msk.bf16.gmra.mrb[68].mxu0 %vm1349_vm0, %v4895_v33  ;;  %v2505_v6 = vpack.c.bf16 %v1528_v23, %v1524_v7  ;;  %2124 = vmatprep.mubr.bf16.mxu1 %v4955_v21 }
 0x168   :  { %2443 = vmatprep.mubr.bf16.mxu0 %v4805_v1  ;;  %v2729_v11 = vadd.bf16 %v5164_v12, %v2504_v25 }
 0x169   :  { %v5179_v40 = vadd.bf16 %v5170_v2, %v2505_v6  ;;  %v1418_v13 = vpop.f32.mrb[4].mxu1 }
 0x16a   :  { %v5181_v43 = vpop.f32.mrb[28].mxu0  ;;  %v2809_v45 = vmul.bf16 1056980736, %v2729_v11  ;;  %v1532_v5 = vadd.f32 %v5069_v19, %v1418_v13  ;;  %v1420_v16 = vpop.f32.mrb[5].mxu1 }
 0x16b   :  { %v5184_v49 = vpop.f32.mrb[29].mxu0  ;;  %v2810_v7 = vmul.bf16 1056980736, %v5179_v40  ;;  %v1534_v21 = vadd.f32 %v5071_v20, %v1420_v16  ;;  %v1422_v8 = vpop.f32.mrb[6].mxu1 }
 0x16c   :  { %v5188_v61 = vpop.f32.mrb[30].mxu0  ;;  %4518 = vtanh.bf16 %v2809_v45  ;;  %v1536_v14 = vadd.f32 %v5073_v24, %v1422_v8  ;;  %v1424_v23 = vpop.f32.mrb[7].mxu1 }
 0x16d   :  { %v5191_v25 = vpop.f32.mrb[31].mxu0  ;;  %4520 = vtanh.bf16 %v2810_v7  ;;  %v1538_v6 = vadd.f32 %v5075_v26, %v1424_v23 }
 0x16e   :  { %v2514_v19 = vpack.c.bf16 %v1536_v14, %v1532_v5  ;;  %2125 = vmatmul.mubr.bf16.gmra.mrb[80].mxu1 %v4961_v36 }
 0x16f   :  { %4038 = vmatmul.mubr.msk.bf16.gmra.mrb[72].mxu0 %vm1349_vm0, %v4900_v44  ;;  %v2515_v13 = vpack.c.bf16 %v1538_v6, %v1534_v21  ;;  %2134 = vmatprep.mubr.bf16.mxu1 %v4963_v38 }
 0x170   :  { %2453 = vmatprep.mubr.bf16.mxu0 %v4805_v1  ;;  %v5200_v20 = vadd.bf16 %v5164_v12, %v2514_v19 }
 0x171   :  { %v5203_v24 = vadd.bf16 %v5170_v2, %v2515_v13  ;;  %v1428_v45 = vpop.f32.mrb[8].mxu1 }
 0x172   :  { %v2819_v26 = vmul.bf16 1056980736, %v5200_v20  ;;  %v1542_v5 = vadd.f32 %v5082_v29, %v1428_v45  ;;  %v1430_v36 = vpop.f32.mrb[9].mxu1 }
 0x173   :  { %v2820_v16 = vmul.bf16 1056980736, %v5203_v24  ;;  %v1544_v7 = vadd.f32 %v5084_v30, %v1430_v36  ;;  %v1432_v21 = vpop.f32.mrb[10].mxu1 }
 0x174   :  { %4522 = vtanh.bf16 %v2819_v26  ;;  %v1546_v38 = vadd.f32 %v5086_v35, %v1432_v21  ;;  %v1434_v8 = vpop.f32.mrb[11].mxu1 }
 0x175   :  { %4524 = vtanh.bf16 %v2820_v16  ;;  %v1548_v14 = vadd.f32 %v5088_v39, %v1434_v8 }
 0x176   :  { %v2524_v23 = vpack.c.bf16 %v1546_v38, %v1542_v5  ;;  %2135 = vmatmul.mubr.bf16.gmra.mrb[84].mxu1 %v4969_v53 }
 0x177   :  { %4039 = vmatmul.mubr.msk.bf16.gmra.mrb[76].mxu0 %vm1349_vm0, %v4905_v55  ;;  %v4519_v29 = vpop.eup %4518  ;;  %v2525_v6 = vpack.c.bf16 %v1548_v14, %v1544_v7  ;;  %2144 = vmatprep.mubr.bf16.mxu1 %v4971_v56 }
 0x178   :  { %2463 = vmatprep.mubr.bf16.mxu0 %v4805_v1  ;;  %v4521_v30 = vpop.eup %4520  ;;  %v2969_v19 = vadd.bf16 1065369472, %v4519_v29  ;;  %v5217_v35 = vadd.bf16 %v5164_v12, %v2524_v23 }
 0x179   :  { %v2970_v13 = vadd.bf16 1065369472, %v4521_v30  ;;  %v5220_v39 = vadd.bf16 %v5170_v2, %v2525_v6  ;;  %v1438_v45 = vpop.f32.mrb[12].mxu1 }
 0x17a   :  { %v3049_v53 = vmul.bf16 1056980736, %v2969_v19  ;;  %v2829_v26 = vmul.bf16 1056980736, %v5217_v35  ;;  %v1552_v5 = vadd.f32 %v5095_v47, %v1438_v45  ;;  %v1440_v36 = vpop.f32.mrb[13].mxu1 }
 0x17b   :  { %v3050_v16 = vmul.bf16 1056980736, %v2970_v13  ;;  %v2830_v56 = vmul.bf16 1056980736, %v5220_v39  ;;  %v1554_v7 = vadd.f32 %v5097_v48, %v1440_v36  ;;  %v1442_v21 = vpop.f32.mrb[14].mxu1 }
 0x17c   :  { %4526 = vtanh.bf16 %v2829_v26  ;;  %v1556_v38 = vadd.f32 %v5099_v50, %v1442_v21  ;;  %v1444_v8 = vpop.f32.mrb[15].mxu1  ;;  %v3129_v14 = vmul.bf16 %v3049_v53, %v2729_v11 }
 0x17d   :  { %4528 = vtanh.bf16 %v2830_v56  ;;  %v1558_v23 = vadd.f32 %v5101_v57, %v1444_v8  ;;  %v3130_v29 = vmul.bf16 %v3050_v16, %v5179_v40 }
 0x17e   :  { %v2534_v6 = vpack.c.bf16 %v1556_v38, %v1552_v5  ;;  %2145 = vmatmul.mubr.bf16.gmra.mrb[88].mxu1 %v4977_v3  ;;  %v3209_v57 = vunpack.c.l.bf16 %v3129_v14  ;;  %v3219_v19 = vunpack.c.h.bf16 %v3129_v14 }
 0x17f   :  { %4040 = vmatmul.mubr.msk.bf16.gmra.mrb[80].mxu0 %vm1349_vm0, %v4910_v4  ;;  %v4523_v47 = vpop.eup %4522  ;;  %v2535_v30 = vpack.c.bf16 %v1558_v23, %v1554_v7  ;;  %2154 = vmatprep.mubr.bf16.mxu1 %v4979_v9  ;;  %v3210_v45 = vunpack.c.l.bf16 %v3130_v29  ;;  %v3220_v36 = vunpack.c.h.bf16 %v3130_v29 }
 0x180   :  { %2473 = vmatprep.mubr.bf16.mxu0 %v4805_v1  ;;  %v4525_v48 = vpop.eup %4524  ;;  %v2979_v50 = vadd.bf16 1065369472, %v4523_v47  ;;  %v5235_v11 = vadd.bf16 %v5164_v12, %v2534_v6 }
 0x181   :  { %v2980_v40 = vadd.bf16 1065369472, %v4525_v48  ;;  %v5238_v13 = vadd.bf16 %v5170_v2, %v2535_v30  ;;  %v1448_v3 = vpop.f32.mrb[16].mxu1  ;;  %v3382_v30 = vadd.f32 %v3220_v36, %v3210_v45 }
 0x182   :  { %v3059_v53 = vmul.bf16 1056980736, %v2979_v50  ;;  %v2839_v26 = vmul.bf16 1056980736, %v5235_v11  ;;  %v1562_v9 = vadd.f32 %v5112_v63, %v1448_v3  ;;  %v1450_v5 = vpop.f32.mrb[17].mxu1  ;;  %v3369_v63 = vadd.f32 %v3219_v19, %v3209_v57 }
 0x183   :  { %v3060_v16 = vmul.bf16 1056980736, %v2980_v40  ;;  %v2840_v56 = vmul.bf16 1056980736, %v5238_v13  ;;  %v1564_v7 = vadd.f32 %v5116_v10, %v1450_v5  ;;  %v1452_v21 = vpop.f32.mrb[18].mxu1 }
 0x184   :  { %v3139_v38 = vmul.bf16 %v3059_v53, %v5200_v20  ;;  %4530 = vtanh.bf16 %v2839_v26  ;;  %v1566_v8 = vadd.f32 %v5118_v32, %v1452_v21  ;;  %v1454_v14 = vpop.f32.mrb[19].mxu1 }
 0x185   :  { %v3140_v23 = vmul.bf16 %v3060_v16, %v5203_v24  ;;  %4532 = vtanh.bf16 %v2840_v56  ;;  %v1568_v6 = vadd.f32 %v5120_v42, %v1454_v14 }
 0x186   :  { %v3229_v47 = vunpack.c.l.bf16 %v3139_v38  ;;  %v2544_v29 = vpack.c.bf16 %v1566_v8, %v1562_v9  ;;  %2155 = vmatmul.mubr.bf16.gmra.mrb[92].mxu1 %v4985_v15  ;;  %v3239_v24 = vunpack.c.h.bf16 %v3139_v38 }
 0x187   :  { %4041 = vmatmul.mubr.msk.bf16.gmra.mrb[84].mxu0 %vm1349_vm0, %v4918_v17  ;;  %v4527_v10 = vpop.eup %4526  ;;  %v3230_v20 = vunpack.c.l.bf16 %v3140_v23  ;;  %v2545_v48 = vpack.c.bf16 %v1568_v6, %v1564_v7  ;;  %2197 = vmatprep.mubr.bf16.mxu1 %v4805_v1  ;;  %v3240_v19 = vunpack.c.h.bf16 %v3140_v23 }
 0x188   :  { %2483 = vmatprep.mubr.bf16.mxu0 %v4805_v1  ;;  %v4529_v32 = vpop.eup %4528  ;;  %v3370_v50 = vadd.f32 %v3369_v63, %v3229_v47  ;;  %v2989_v42 = vadd.bf16 1065369472, %v4527_v10  ;;  %v5254_v57 = vadd.bf16 %v5164_v12, %v2544_v29 }
 0x189   :  { %v3383_v15 = vadd.f32 %v3382_v30, %v3230_v20  ;;  %v2990_v40 = vadd.bf16 1065369472, %v4529_v32  ;;  %v5257_v3 = vadd.bf16 %v5170_v2, %v2545_v48  ;;  %v1458_v45 = vpop.f32.mrb[20].mxu1 }
 0x18a   :  { %v3371_v53 = vadd.f32 %v3370_v50, %v3239_v24  ;;  %v3069_v26 = vmul.bf16 1056980736, %v2989_v42  ;;  %v2849_v9 = vmul.bf16 1056980736, %v5254_v57  ;;  %v1572_v5 = vadd.f32 %v5128_v27, %v1458_v45  ;;  %v1460_v36 = vpop.f32.mrb[21].mxu1 }
 0x18b   :  { %v3384_v16 = vadd.f32 %v3383_v15, %v3240_v19  ;;  %v3070_v56 = vmul.bf16 1056980736, %v2990_v40  ;;  %v2850_v7 = vmul.bf16 1056980736, %v5257_v3  ;;  %v1574_v21 = vadd.f32 %v5130_v28, %v1460_v36  ;;  %v1462_v38 = vpop.f32.mrb[22].mxu1 }
 0x18c   :  { %v3149_v8 = vmul.bf16 %v3069_v26, %v5217_v35  ;;  %4534 = vtanh.bf16 %v2849_v9  ;;  %v1576_v14 = vadd.f32 %v5132_v31, %v1462_v38  ;;  %v1464_v23 = vpop.f32.mrb[23].mxu1 }
 0x18d   :  { %v3150_v6 = vmul.bf16 %v3070_v56, %v5220_v39  ;;  %4536 = vtanh.bf16 %v2850_v7  ;;  %v1578_v63 = vadd.f32 %v5137_v51, %v1464_v23 }
 0x18e   :  { %v3249_v27 = vunpack.c.l.bf16 %v3149_v8  ;;  %v2554_v47 = vpack.c.bf16 %v1576_v14, %v1572_v5  ;;  %4028 = vmatmul.mubr.msk.bf16.vlgmr.msra.gmra.mrb[64].mxu1 %vm1349_vm0, %v4890_v22  ;;  %v3259_v39 = vunpack.c.h.bf16 %v3149_v8 }
 0x18f   :  { %4042 = vmatmul.mubr.msk.bf16.gmra.mrb[88].mxu0 %vm1349_vm0, %v4925_v34  ;;  %v4531_v28 = vpop.eup %4530  ;;  %v3250_v29 = vunpack.c.l.bf16 %v3150_v6  ;;  %v2555_v35 = vpack.c.bf16 %v1578_v63, %v1574_v21  ;;  %2207 = vmatprep.mubr.bf16.mxu1 %v4805_v1  ;;  %v3260_v20 = vunpack.c.h.bf16 %v3150_v6 }
 0x190   :  { %2493 = vmatprep.mubr.bf16.mxu0 %v4805_v1  ;;  %v4533_v31 = vpop.eup %4532  ;;  %v3372_v10 = vadd.f32 %v3371_v53, %v3249_v27  ;;  %v2999_v30 = vadd.bf16 1065369472, %v4531_v28  ;;  %v5274_v51 = vadd.bf16 %v5164_v12, %v2554_v47 }
 0x191   :  { %v3385_v48 = vadd.f32 %v3384_v16, %v3250_v29  ;;  %v3000_v22 = vadd.bf16 1065369472, %v4533_v31  ;;  %v5277_v32 = vadd.bf16 %v5170_v2, %v2555_v35  ;;  %v1468_v24 = vpop.f32.mrb[24].mxu1 }
 0x192   :  { %v3373_v50 = vadd.f32 %v3372_v10, %v3259_v39  ;;  %v3079_v42 = vmul.bf16 1056980736, %v2999_v30  ;;  %v2859_v19 = vmul.bf16 1056980736, %v5274_v51  ;;  %v1582_v15 = vadd.f32 %v5154_v46, %v1468_v24  ;;  %v1470_v40 = vpop.f32.mrb[25].mxu1 }
 0x193   :  { %v3386_v45 = vadd.f32 %v3385_v48, %v3260_v20  ;;  %v3080_v53 = vmul.bf16 1056980736, %v3000_v22  ;;  %v2860_v26 = vmul.bf16 1056980736, %v5277_v32  ;;  %v1584_v9 = vadd.f32 %v5157_v54, %v1470_v40  ;;  %v1472_v5 = vpop.f32.mrb[26].mxu1 }
 0x194   :  { %v3159_v36 = vmul.bf16 %v3079_v42, %v5235_v11  ;;  %4538 = vtanh.bf16 %v2859_v19  ;;  %v1586_v16 = vadd.f32 %v5160_v59, %v1472_v5  ;;  %v1474_v56 = vpop.f32.mrb[27].mxu1  ;;  %v2588_v19 = vcombine.high %v5114_v0, %v5114_v0 }
 0x195   :  { %v3160_v7 = vmul.bf16 %v3080_v53, %v5238_v13  ;;  %4540 = vtanh.bf16 %v2860_v26  ;;  %v1588_v21 = vadd.f32 %v5166_v18, %v1474_v56 }
 0x196   :  { %v3269_v46 = vunpack.c.l.bf16 %v3159_v36  ;;  %v2564_v38 = vpack.c.bf16 %v1586_v16, %v1582_v15  ;;  %4029 = vmatmul.mubr.msk.bf16.gmra.mrb[68].mxu1 %vm1349_vm0, %v4895_v33  ;;  %v3279_v14 = vunpack.c.h.bf16 %v3159_v36 }
 0x197   :  { %4043 = vmatmul.mubr.msk.bf16.gmra.mrb[92].mxu0 %vm1349_vm0, %v4936_v52  ;;  %v4535_v54 = vpop.eup %4534  ;;  %v3270_v8 = vunpack.c.l.bf16 %v3160_v7  ;;  %v2565_v11 = vpack.c.bf16 %v1588_v21, %v1584_v9  ;;  %2217 = vmatprep.mubr.bf16.mxu1 %v4805_v1  ;;  %v3280_v18 = vunpack.c.h.bf16 %v3160_v7 }
 0x198   :  { %v4537_v59 = vpop.eup %4536  ;;  %v3374_v23 = vadd.f32 %v3373_v50, %v3269_v46  ;;  %v3009_v13 = vadd.bf16 1065369472, %v4535_v54  ;;  %v5293_v6 = vadd.bf16 %v5164_v12, %v2564_v38 }
 0x199   :  { %v3387_v63 = vadd.f32 %v3386_v45, %v3270_v8  ;;  %v3010_v27 = vadd.bf16 1065369472, %v4537_v59  ;;  %v5296_v33 = vadd.bf16 %v5170_v2, %v2565_v11  ;;  %v1478_v47 = vpop.f32.mrb[28].mxu1 }
 0x19a   :  { %v5298_v28 = vadd.f32 %v3374_v23, %v3279_v14  ;;  %v3089_v29 = vmul.bf16 1056980736, %v3009_v13  ;;  %v2869_v35 = vmul.bf16 1056980736, %v5293_v6  ;;  %v1592_v31 = vadd.f32 %v5181_v43, %v1478_v47  ;;  %v1480_v39 = vpop.f32.mrb[29].mxu1 }
 0x19b   :  { %v5302_v10 = vadd.f32 %v3387_v63, %v3280_v18  ;;  %v3090_v30 = vmul.bf16 1056980736, %v3010_v27  ;;  %v2870_v20 = vmul.bf16 1056980736, %v5296_v33  ;;  %v1594_v48 = vadd.f32 %v5184_v49, %v1480_v39  ;;  %v1482_v22 = vpop.f32.mrb[30].mxu1 }
 0x19c   :  { %4542 = vtanh.bf16 %v2869_v35  ;;  %v1596_v24 = vadd.f32 %v5188_v61, %v1482_v22  ;;  %v1484_v50 = vpop.f32.mrb[31].mxu1  ;;  %v3169_v43 = vmul.bf16 %v3089_v29, %v5254_v57  ;;  %v2602_v57 = vrot.slane %v2588_v19, %v5110_v62 }
 0x19d   :  { %4544 = vtanh.bf16 %v2870_v20  ;;  %v1598_v42 = vadd.f32 %v5191_v25, %v1484_v50  ;;  %v3170_v49 = vmul.bf16 %v3090_v30, %v5257_v3 }
 0x19e   :  { %v2574_v15 = vpack.c.bf16 %v1596_v24, %v1592_v31  ;;  %4030 = vmatmul.mubr.msk.bf16.gmra.mrb[72].mxu1 %vm1349_vm0, %v4900_v44  ;;  %v3289_v9 = vunpack.c.l.bf16 %v3169_v43  ;;  %v3299_v5 = vunpack.c.h.bf16 %v3169_v43  ;;  %v2604_v11 = vcombine.high %v2602_v57, %v2602_v57 }
 0x19f   :  { %v4539_v40 = vpop.eup %4538  ;;  %v2575_v45 = vpack.c.bf16 %v1598_v42, %v1594_v48  ;;  %2227 = vmatprep.mubr.bf16.mxu1 %v4805_v1  ;;  %v3290_v3 = vunpack.c.l.bf16 %v3170_v49  ;;  %v3300_v16 = vunpack.c.h.bf16 %v3170_v49  ;;  %v5330_v47 = vrot.slane %v2602_v57, %v5110_v62 }
 0x1a0   :  { %v4541_v61 = vpop.eup %4540  ;;  %v3019_v53 = vadd.bf16 1065369472, %v4539_v40  ;;  %v5316_v26 = vadd.bf16 %v5164_v12, %v2574_v15  ;;  %v5333_v35 = vrot.slane %v2604_v11, %v5110_v62 }
 0x1a1   :  { %v3020_v25 = vadd.bf16 1065369472, %v4541_v61  ;;  %v5319_v0 = vadd.bf16 %v5170_v2, %v2575_v45  ;;  %v3499_v2 = vadd.f32 %v3299_v5, %v3289_v9  ;;  %v3512_v54 = vadd.f32 %v3300_v16, %v3290_v3 }
 0x1a2   :  { %v3099_v44 = vmul.bf16 1056980736, %v3019_v53  ;;  %v2879_v36 = vmul.bf16 1056980736, %v5316_v26  ;;  %v2688_v20 = vpack.i.b16 %v5330_v47, %v5330_v47  ;;  %v2695_v24 = vpack.i.b16 %v5333_v35, %v5333_v35 }
 0x1a3   :  { %v3100_v56 = vmul.bf16 1056980736, %v3020_v25  ;;  %v2880_v7 = vmul.bf16 1056980736, %v5319_v0  ;;  %v3389_v25 = vrot.slane %v5302_v10, 4 }
 0x1a4   :  { %v3179_v21 = vmul.bf16 %v3099_v44, %v5274_v51  ;;  %4546 = vtanh.bf16 %v2879_v36  ;;  %v5346_v53 = vrot.slane %v2688_v20, %v5150_v41  ;;  %v5350_v44 = vrot.slane %v2695_v24, %v5150_v41 }
 0x1a5   :  { %v3180_v12 = vmul.bf16 %v3100_v56, %v5277_v32  ;;  %4548 = vtanh.bf16 %v2880_v7 }
 0x1a6   :  { %v3309_v46 = vunpack.c.l.bf16 %v3179_v21  ;;  %4031 = vmatmul.mubr.msk.bf16.gmra.mrb[76].mxu1 %vm1349_vm0, %v4905_v55  ;;  %v3319_v14 = vunpack.c.h.bf16 %v3179_v21 }
 0x1a7   :  { %v4543_v38 = vpop.eup %4542  ;;  %v3310_v8 = vunpack.c.l.bf16 %v3180_v12  ;;  %2237 = vmatprep.mubr.bf16.mxu1 %v4805_v1  ;;  %v3320_v51 = vunpack.c.h.bf16 %v3180_v12 }
 0x1a8   :  { %v4545_v59 = vpop.eup %4544  ;;  %v3500_v23 = vadd.f32 %v3499_v2, %v3309_v46  ;;  %v3029_v13 = vadd.bf16 1065369472, %v4543_v38  ;;  %v3390_v46 = vadd.f32 %v3389_v25, %v5302_v10 }
 0x1a9   :  { %v3513_v18 = vadd.f32 %v3512_v54, %v3310_v8  ;;  %v3030_v63 = vadd.bf16 1065369472, %v4545_v59 }
 0x1aa   :  { %v3501_v32 = vadd.f32 %v3500_v23, %v3319_v14  ;;  %v3109_v27 = vmul.bf16 1056980736, %v3029_v13  ;;  %v3391_v10 = vrot.slane %v3390_v46, 2 }
 0x1ab   :  { %v3514_v29 = vadd.f32 %v3513_v18, %v3320_v51  ;;  %v3110_v55 = vmul.bf16 1056980736, %v3030_v63 }
 0x1ac   :  { %v3189_v31 = vmul.bf16 %v3109_v27, %v5293_v6  ;;  %v3392_v20 = vadd.f32 %v3391_v10, %v3390_v46 }
 0x1ad   :  { %v3190_v39 = vmul.bf16 %v3110_v55, %v5296_v33 }
 0x1ae   :  { %v3329_v30 = vunpack.c.l.bf16 %v3189_v31  ;;  %4032 = vmatmul.mubr.msk.bf16.gmra.mrb[80].mxu1 %vm1349_vm0, %v4910_v4  ;;  %v3339_v42 = vunpack.c.h.bf16 %v3189_v31  ;;  %v3376_v4 = vrot.slane %v5298_v28, 4 }
 0x1af   :  { %v4547_v48 = vpop.eup %4546  ;;  %v3330_v22 = vunpack.c.l.bf16 %v3190_v39  ;;  %2247 = vmatprep.mubr.bf16.mxu1 %v4805_v1  ;;  %v3340_v43 = vunpack.c.h.bf16 %v3190_v39 }
 0x1b0   :  { %v4549_v50 = vpop.eup %4548  ;;  %v3502_v19 = vadd.f32 %v3501_v32, %v3329_v30  ;;  %v3039_v6 = vadd.bf16 1065369472, %v4547_v48  ;;  %v3377_v21 = vadd.f32 %v3376_v4, %v5298_v28  ;;  %v3393_v4 = vrot.slane %v3392_v20, 1 }
 0x1b1   :  { %v3515_v33 = vadd.f32 %v3514_v29, %v3330_v22  ;;  %v3040_v15 = vadd.bf16 1065369472, %v4549_v50 }
 0x1b2   :  { %v1973_v40 = vpop.f32.mrb[32].mxu0  ;;  %v3503_v49 = vadd.f32 %v3502_v19, %v3339_v42  ;;  %v3119_v45 = vmul.bf16 1056980736, %v3039_v6  ;;  %v3378_v23 = vrot.slane %v3377_v21, 2 }
 0x1b3   :  { %v1975_v61 = vpop.f32.mrb[33].mxu0  ;;  %v3516_v57 = vadd.f32 %v3515_v33, %v3340_v43  ;;  %v3120_v9 = vmul.bf16 1056980736, %v3040_v15  ;;  %v3639_v43 = vsub.s32 1, %v5103_v58  ;;  %v5379_v15 = vld [vmem:[#allocation9] sm:$0xff] }
 0x1b4   :  { %v1977_v5 = vpop.f32.mrb[34].mxu0  ;;  %v3199_v36 = vmul.bf16 %v3119_v45, %v5316_v26  ;;  %v3379_v31 = vadd.f32 %v3378_v23, %v3377_v21 }
 0x1b5   :  { %v2508_v3 = vpack.c.bf16 %v1977_v5, %v1973_v40  ;;  %v1979_v16 = vpop.f32.mrb[35].mxu0  ;;  %v3200_v56 = vmul.bf16 %v3120_v9, %v5319_v0  ;;  %v3636_v9 = vrot.slane %v5379_v15, %v5150_v41 }
 0x1b6   :  { %v2509_v7 = vpack.c.bf16 %v1979_v16, %v1975_v61  ;;  %v3349_v12 = vunpack.c.l.bf16 %v3199_v36  ;;  %4033 = vmatmul.mubr.msk.bf16.gmra.mrb[84].mxu1 %vm1349_vm0, %v4918_v17  ;;  %v3359_v26 = vunpack.c.h.bf16 %v3199_v36  ;;  %v3380_v33 = vrot.slane %v3379_v31, 1 }
 0x1b7   :  { %v5356_v2 = vadd.bf16 %v5346_v53, %v2508_v3  ;;  %v3350_v38 = vunpack.c.l.bf16 %v3200_v56  ;;  %2257 = vmatprep.mubr.bf16.mxu1 %v4805_v1  ;;  %v3360_v28 = vunpack.c.h.bf16 %v3200_v56  ;;  %v3640_v3 = vrot.slane %v5379_v15, %v3639_v43 }
 0x1b8   :  { %v5362_v54 = vadd.bf16 %v5350_v44, %v2509_v7  ;;  %v3504_v0 = vadd.f32 %v3503_v49, %v3349_v12  ;;  %v3381_v56 = vadd.f32 %v3380_v33, %v3379_v31 }
 0x1b9   :  { %v2813_v8 = vmul.bf16 1056980736, %v5356_v2  ;;  %v3517_v11 = vadd.f32 %v3516_v57, %v3350_v38 }
 0x1ba   :  { %v2814_v59 = vmul.bf16 1056980736, %v5362_v54  ;;  %v1983_v14 = vpop.f32.mrb[36].mxu0  ;;  %v3505_v13 = vadd.f32 %v3504_v0, %v3359_v26  ;;  %v3394_v26 = vadd.f32 %v3393_v4, %v3392_v20 }
 0x1bb   :  { %4550 = vtanh.bf16 %v2813_v8  ;;  %v1985_v17 = vpop.f32.mrb[37].mxu0  ;;  %v3518_v51 = vadd.f32 %v3517_v11, %v3360_v28 }
 0x1bc   :  { %4552 = vtanh.bf16 %v2814_v59  ;;  %v1987_v18 = vpop.f32.mrb[38].mxu0  ;;  %v3506_v63 = vrot.slane %v3505_v13, 4 }
 0x1bd   :  { %v2518_v32 = vpack.c.bf16 %v1987_v18, %v1983_v14  ;;  %v1989_v27 = vpop.f32.mrb[39].mxu0  ;;  %v3519_v29 = vrot.slane %v3518_v51, 4 }
 0x1be   :  { %v2519_v55 = vpack.c.bf16 %v1989_v27, %v1985_v17  ;;  %v3507_v39 = vadd.f32 %v3506_v63, %v3505_v13  ;;  %4034 = vmatmul.mubr.msk.bf16.gmra.mrb[88].mxu1 %vm1349_vm0, %v4925_v34  ;;  %v3683_v17 = vmul.f32 %v3636_v9, %v3381_v56  ;;  %v3684_v63 = vmul.f32 %v3640_v3, %v3394_v26 }
 0x1bf   :  { %v5368_v30 = vadd.bf16 %v5346_v53, %v2518_v32  ;;  %v3520_v48 = vadd.f32 %v3519_v29, %v3518_v51  ;;  %2267 = vmatprep.mubr.bf16.mxu1 %v4805_v1 }
 0x1c0   :  { %v5373_v22 = vadd.bf16 %v5350_v44, %v2519_v55  ;;  %v3508_v24 = vrot.slane %v3507_v39, 2 }
 0x1c1   :  { %v2823_v50 = vmul.bf16 1056980736, %v5368_v30  ;;  %v3521_v42 = vrot.slane %v3520_v48, 2 }
 0x1c2   :  { %v2824_v19 = vmul.bf16 1056980736, %v5373_v22  ;;  %v1993_v6 = vpop.f32.mrb[40].mxu0  ;;  %v3509_v34 = vadd.f32 %v3508_v24, %v3507_v39 }
 0x1c3   :  { %4554 = vtanh.bf16 %v2823_v50  ;;  %v1995_v40 = vpop.f32.mrb[41].mxu0  ;;  %v3522_v49 = vadd.f32 %v3521_v42, %v3520_v48 }
 0x1c4   :  { %4556 = vtanh.bf16 %v2824_v19  ;;  %v1997_v45 = vpop.f32.mrb[42].mxu0  ;;  %v3510_v1 = vrot.slane %v3509_v34, 1 }
 0x1c5   :  { %v2528_v61 = vpack.c.bf16 %v1997_v45, %v1993_v6  ;;  %v1999_v25 = vpop.f32.mrb[43].mxu0  ;;  %v3523_v5 = vrot.slane %v3522_v49, 1 }
 0x1c6   :  { %v4551_v57 = vpop.eup %4550  ;;  %v2529_v36 = vpack.c.bf16 %v1999_v25, %v1995_v40  ;;  %v3511_v7 = vadd.f32 %v3510_v1, %v3509_v34  ;;  %4035 = vmatmul.mubr.msk.bf16.gmra.mrb[92].mxu1 %vm1349_vm0, %v4936_v52 }
 0x1c7   :  { %v4553_v16 = vpop.eup %4552  ;;  %v2973_v21 = vadd.bf16 1065369472, %v4551_v57  ;;  %v5387_v12 = vadd.bf16 %v5346_v53, %v2528_v61  ;;  %v3524_v0 = vadd.f32 %v3523_v5, %v3522_v49 }
 0x1c8   :  { %v2974_v46 = vadd.bf16 1065369472, %v4553_v16  ;;  %v5392_v38 = vadd.bf16 %v5350_v44, %v2529_v36  ;;  %v3693_v8 = vmul.f32 %v3636_v9, %v3511_v7 }
 0x1c9   :  { %v3053_v28 = vmul.bf16 1056980736, %v2973_v21  ;;  %v2833_v11 = vmul.bf16 1056980736, %v5387_v12  ;;  %v3694_v13 = vmul.f32 %v3640_v3, %v3524_v0 }
 0x1ca   :  { %v3054_v59 = vmul.bf16 1056980736, %v2974_v46  ;;  %v2834_v14 = vmul.bf16 1056980736, %v5392_v38  ;;  %v2003_v23 = vpop.f32.mrb[44].mxu0  ;;  %v3723_v10 = vrot.slane %v3693_v8, 7 }
 0x1cb   :  { %4558 = vtanh.bf16 %v2833_v11  ;;  %v2005_v52 = vpop.f32.mrb[45].mxu0  ;;  %v3133_v51 = vmul.bf16 %v3053_v28, %v5356_v2  ;;  %v3726_v32 = vrot.slane %v3694_v13, 7 }
 0x1cc   :  { %4560 = vtanh.bf16 %v2834_v14  ;;  %v2007_v18 = vpop.f32.mrb[46].mxu0  ;;  %v3725_v55 = vsel %vm3724_vm1, %v3723_v10, %v3683_v17  ;;  %v3134_v39 = vmul.bf16 %v3054_v59, %v5362_v54 }
 0x1cd   :  { %v2538_v27 = vpack.c.bf16 %v2007_v18, %v2003_v23  ;;  %v2009_v29 = vpop.f32.mrb[47].mxu0  ;;  %v3727_v48 = vsel %vm3724_vm1, %v3726_v32, %v3684_v63  ;;  %v3755_v2 = vsel %vm3754_vm2, %v3725_v55, 0.0  ;;  %v3213_v19 = vunpack.c.l.bf16 %v3133_v51 }
 0x1ce   :  { %v4555_v31 = vpop.eup %4554  ;;  %v2539_v20 = vpack.c.bf16 %v2009_v29, %v2005_v52  ;;  %v3756_v34 = vsel %vm3754_vm2, %v3727_v48, 0.0  ;;  %v3223_v40 = vunpack.c.h.bf16 %v3133_v51  ;;  %v3214_v45 = vunpack.c.l.bf16 %v3134_v39 }
 0x1cf   :  { %v4557_v24 = vpop.eup %4556  ;;  %v2983_v50 = vadd.bf16 1065369472, %v4555_v31  ;;  %v5401_v42 = vadd.bf16 %v5346_v53, %v2538_v27  ;;  %v5409_v49 = vadd.f32 %v3756_v34, %v3755_v2  ;;  %v3224_v1 = vunpack.c.h.bf16 %v3134_v39 }
 0x1d0   :  { %v2984_v6 = vadd.bf16 1065369472, %v4557_v24  ;;  %v5405_v33 = vadd.bf16 %v5350_v44, %v2539_v20  ;;  %v3421_v16 = vadd.f32 %v3223_v40, %v3213_v19  ;;  %v2633_v18 = vcombine.high %v5135_v37, %v5135_v37 }
 0x1d1   :  { %v3063_v4 = vmul.bf16 1056980736, %v2983_v50  ;;  %v2843_v54 = vmul.bf16 1056980736, %v5401_v42  ;;  %v3434_v26 = vadd.f32 %v3224_v1, %v3214_v45  ;;  %v2635_v55 = vcombine.high %v5140_v60, %v5140_v60 }
 0x1d2   :  { %v3064_v61 = vmul.bf16 1056980736, %v2984_v6  ;;  %v2844_v25 = vmul.bf16 1056980736, %v5405_v33  ;;  %v2013_v57 = vpop.f32.mrb[48].mxu0  ;;  %v2674_v34 = vpack.i.b16 %v2633_v18, %v2633_v18 }
 0x1d3   :  { %v3143_v9 = vmul.bf16 %v3063_v4, %v5368_v30  ;;  %4562 = vtanh.bf16 %v2843_v54  ;;  %v2015_v5 = vpop.f32.mrb[49].mxu0  ;;  %v2681_v40 = vpack.i.b16 %v2635_v55, %v2635_v55 }
 0x1d4   :  { %v3144_v36 = vmul.bf16 %v3064_v61, %v5373_v22  ;;  %4564 = vtanh.bf16 %v2844_v25  ;;  %v2017_v3 = vpop.f32.mrb[50].mxu0 }
 0x1d5   :  { %v3233_v56 = vunpack.c.l.bf16 %v3143_v9  ;;  %v2548_v7 = vpack.c.bf16 %v2017_v3, %v2013_v57  ;;  %v2019_v21 = vpop.f32.mrb[51].mxu0  ;;  %v3243_v11 = vunpack.c.h.bf16 %v3143_v9 }
 0x1d6   :  { %v4559_v46 = vpop.eup %4558  ;;  %v3234_v0 = vunpack.c.l.bf16 %v3144_v36  ;;  %v2549_v8 = vpack.c.bf16 %v2019_v21, %v2015_v5  ;;  %v3244_v23 = vunpack.c.h.bf16 %v3144_v36 }
 0x1d7   :  { %v4561_v28 = vpop.eup %4560  ;;  %v3422_v59 = vadd.f32 %v3421_v16, %v3233_v56  ;;  %v2993_v14 = vadd.bf16 1065369472, %v4559_v46  ;;  %v5415_v30 = vadd.bf16 %v5346_v53, %v2548_v7 }
 0x1d8   :  { %v3435_v13 = vadd.f32 %v3434_v26, %v3234_v0  ;;  %v2994_v22 = vadd.bf16 1065369472, %v4561_v28  ;;  %v5418_v17 = vadd.bf16 %v5350_v44, %v2549_v8  ;;  %v5438_v0 = vrot.slane %v2674_v34, %v5150_v41 }
 0x1d9   :  { %v3423_v10 = vadd.f32 %v3422_v59, %v3243_v11  ;;  %v3073_v52 = vmul.bf16 1056980736, %v2993_v14  ;;  %v2853_v51 = vmul.bf16 1056980736, %v5415_v30  ;;  %v5442_v59 = vrot.slane %v2681_v40, %v5150_v41 }
 0x1da   :  { %v3436_v63 = vadd.f32 %v3435_v13, %v3244_v23  ;;  %v3074_v32 = vmul.bf16 1056980736, %v2994_v22  ;;  %v2854_v27 = vmul.bf16 1056980736, %v5418_v17  ;;  %v2023_v29 = vpop.f32.mrb[52].mxu0 }
 0x1db   :  { %v3153_v31 = vmul.bf16 %v3073_v52, %v5387_v12  ;;  %4566 = vtanh.bf16 %v2853_v51  ;;  %v2025_v39 = vpop.f32.mrb[53].mxu0 }
 0x1dc   :  { %v3154_v20 = vmul.bf16 %v3074_v32, %v5392_v38  ;;  %4568 = vtanh.bf16 %v2854_v27  ;;  %v2027_v48 = vpop.f32.mrb[54].mxu0 }
 0x1dd   :  { %v3253_v24 = vunpack.c.l.bf16 %v3153_v31  ;;  %v2558_v50 = vpack.c.bf16 %v2027_v48, %v2023_v29  ;;  %v2029_v2 = vpop.f32.mrb[55].mxu0  ;;  %v3263_v54 = vunpack.c.h.bf16 %v3153_v31 }
 0x1de   :  { %v4563_v37 = vpop.eup %4562  ;;  %v3254_v19 = vunpack.c.l.bf16 %v3154_v20  ;;  %v2559_v6 = vpack.c.bf16 %v2029_v2, %v2025_v39  ;;  %v3264_v1 = vunpack.c.h.bf16 %v3154_v20 }
 0x1df   :  { %v4565_v4 = vpop.eup %4564  ;;  %v3424_v45 = vadd.f32 %v3423_v10, %v3253_v24  ;;  %v3003_v60 = vadd.bf16 1065369472, %v4563_v37  ;;  %v5429_v12 = vadd.bf16 %v5346_v53, %v2558_v50 }
 0x1e0   :  { %v3437_v61 = vadd.f32 %v3436_v63, %v3254_v19  ;;  %v3004_v38 = vadd.bf16 1065369472, %v4565_v4  ;;  %v5432_v25 = vadd.bf16 %v5350_v44, %v2559_v6 }
 0x1e1   :  { %v3425_v57 = vadd.f32 %v3424_v45, %v3263_v54  ;;  %v3083_v9 = vmul.bf16 1056980736, %v3003_v60  ;;  %v2863_v5 = vmul.bf16 1056980736, %v5429_v12  ;;  %v1747_v56 = vpop.f32.mrb[32].mxu1 }
 0x1e2   :  { %v3438_v36 = vadd.f32 %v3437_v61, %v3264_v1  ;;  %v3084_v3 = vmul.bf16 1056980736, %v3004_v38  ;;  %v2864_v16 = vmul.bf16 1056980736, %v5432_v25  ;;  %v2033_v7 = vpop.f32.mrb[56].mxu0  ;;  %v1749_v46 = vpop.f32.mrb[33].mxu1 }
 0x1e3   :  { %v3163_v21 = vmul.bf16 %v3083_v9, %v5401_v42  ;;  %4570 = vtanh.bf16 %v2863_v5  ;;  %v2035_v26 = vpop.f32.mrb[57].mxu0  ;;  %v1751_v28 = vpop.f32.mrb[34].mxu1 }
 0x1e4   :  { %v3164_v8 = vmul.bf16 %v3084_v3, %v5405_v33  ;;  %4572 = vtanh.bf16 %v2864_v16  ;;  %v2037_v11 = vpop.f32.mrb[58].mxu0  ;;  %v2506_v13 = vpack.c.bf16 %v1751_v28, %v1747_v56  ;;  %v1753_v10 = vpop.f32.mrb[35].mxu1  ;;  %v3651_v56 = vsub.s32 4, %v5103_v58 }
 0x1e5   :  { %v3273_v14 = vunpack.c.l.bf16 %v3163_v21  ;;  %v3283_v23 = vunpack.c.h.bf16 %v3163_v21  ;;  %v2568_v22 = vpack.c.bf16 %v2037_v11, %v2033_v7  ;;  %v2039_v42 = vpop.f32.mrb[59].mxu0  ;;  %v2507_v63 = vpack.c.bf16 %v1753_v10, %v1749_v46 }
 0x1e6   :  { %v4567_v52 = vpop.eup %4566  ;;  %v3274_v51 = vunpack.c.l.bf16 %v3164_v8  ;;  %v3284_v18 = vunpack.c.h.bf16 %v3164_v8  ;;  %v2569_v32 = vpack.c.bf16 %v2039_v42, %v2035_v26  ;;  %v5445_v55 = vadd.bf16 %v5438_v0, %v2506_v13 }
 0x1e7   :  { %v4569_v27 = vpop.eup %4568  ;;  %v3426_v29 = vadd.f32 %v3425_v57, %v3273_v14  ;;  %v3013_v33 = vadd.bf16 1065369472, %v4567_v52  ;;  %v5448_v31 = vadd.bf16 %v5346_v53, %v2568_v22  ;;  %v5451_v48 = vadd.bf16 %v5442_v59, %v2507_v63 }
 0x1e8   :  { %v3439_v39 = vadd.f32 %v3438_v36, %v3274_v51  ;;  %v3014_v20 = vadd.bf16 1065369472, %v4569_v27  ;;  %v5454_v24 = vadd.bf16 %v5350_v44, %v2569_v32  ;;  %v2811_v37 = vmul.bf16 1056980736, %v5445_v55 }
 0x1e9   :  { %v3427_v50 = vadd.f32 %v3426_v29, %v3283_v23  ;;  %v3093_v2 = vmul.bf16 1056980736, %v3013_v33  ;;  %v2873_v19 = vmul.bf16 1056980736, %v5448_v31  ;;  %v2812_v40 = vmul.bf16 1056980736, %v5451_v48 }
 0x1ea   :  { %v3440_v6 = vadd.f32 %v3439_v39, %v3284_v18  ;;  %v3094_v34 = vmul.bf16 1056980736, %v3014_v20  ;;  %v2874_v4 = vmul.bf16 1056980736, %v5454_v24  ;;  %4574 = vtanh.bf16 %v2811_v37  ;;  %v1757_v60 = vpop.f32.mrb[36].mxu1  ;;  %v2043_v1 = vpop.f32.mrb[60].mxu0 }
 0x1eb   :  { %v3428_v54 = vrot.slane %v3427_v50, 4  ;;  %v3173_v45 = vmul.bf16 %v3093_v2, %v5415_v30  ;;  %4576 = vtanh.bf16 %v2873_v19  ;;  %v1759_v57 = vpop.f32.mrb[37].mxu1  ;;  %v2045_v9 = vpop.f32.mrb[61].mxu0  ;;  %v3655_v32 = vsub.s32 5, %v5103_v58 }
 0x1ec   :  { %v3441_v61 = vrot.slane %v3440_v6, 4  ;;  %v3174_v38 = vmul.bf16 %v3094_v34, %v5418_v17  ;;  %4578 = vtanh.bf16 %v2812_v40  ;;  %v1761_v5 = vpop.f32.mrb[38].mxu1  ;;  %v2047_v36 = vpop.f32.mrb[62].mxu0 }
 0x1ed   :  { %v5462_v16 = vadd.f32 %v3428_v54, %v3427_v50  ;;  %4580 = vtanh.bf16 %v2874_v4  ;;  %v1763_v7 = vpop.f32.mrb[39].mxu1  ;;  %v2049_v30 = vpop.f32.mrb[63].mxu0  ;;  %v3293_v46 = vunpack.c.l.bf16 %v3173_v45  ;;  %v3303_v26 = vunpack.c.h.bf16 %v3173_v45 }
 0x1ee   :  { %v4571_v3 = vpop.eup %4570  ;;  %v2516_v28 = vpack.c.bf16 %v1761_v5, %v1757_v60  ;;  %v5465_v17 = vadd.f32 %v3441_v61, %v3440_v6  ;;  %v3294_v11 = vunpack.c.l.bf16 %v3174_v38  ;;  %v2578_v23 = vpack.c.bf16 %v2047_v36, %v2043_v1 }
 0x1ef   :  { %v4573_v21 = vpop.eup %4572  ;;  %v3023_v8 = vadd.bf16 1065369472, %v4571_v3  ;;  %v3304_v13 = vunpack.c.h.bf16 %v3174_v38  ;;  %v2517_v42 = vpack.c.bf16 %v1763_v7, %v1759_v57  ;;  %v2579_v18 = vpack.c.bf16 %v2049_v30, %v2045_v9 }
 0x1f0   :  { %v3024_v14 = vadd.bf16 1065369472, %v4573_v21  ;;  %v5468_v10 = vadd.bf16 %v5438_v0, %v2516_v28  ;;  %v5471_v51 = vadd.bf16 %v5346_v53, %v2578_v23  ;;  %v3430_v27 = vrot.slane %v5462_v16, 2 }
 0x1f1   :  { %v3103_v22 = vmul.bf16 1056980736, %v3023_v8  ;;  %v1767_v63 = vpop.f32.mrb[40].mxu1  ;;  %v5478_v39 = vadd.bf16 %v5442_v59, %v2517_v42  ;;  %v3551_v50 = vadd.f32 %v3303_v26, %v3293_v46  ;;  %v5483_v37 = vadd.bf16 %v5350_v44, %v2579_v18 }
 0x1f2   :  { %v3104_v52 = vmul.bf16 1056980736, %v3024_v14  ;;  %v2821_v33 = vmul.bf16 1056980736, %v5468_v10  ;;  %v1769_v20 = vpop.f32.mrb[41].mxu1  ;;  %v3443_v6 = vrot.slane %v5465_v17, 2  ;;  %v3564_v34 = vadd.f32 %v3304_v13, %v3294_v11 }
 0x1f3   :  { %v3183_v29 = vmul.bf16 %v3103_v22, %v5429_v12  ;;  %v2883_v53 = vmul.bf16 1056980736, %v5471_v51  ;;  %v1771_v19 = vpop.f32.mrb[42].mxu1  ;;  %v2822_v38 = vmul.bf16 1056980736, %v5478_v39  ;;  %v3431_v14 = vadd.f32 %v3430_v27, %v5462_v16 }
 0x1f4   :  { %v3184_v2 = vmul.bf16 %v3104_v52, %v5432_v25  ;;  %4582 = vtanh.bf16 %v2821_v33  ;;  %v1773_v12 = vpop.f32.mrb[43].mxu1  ;;  %v2884_v44 = vmul.bf16 1056980736, %v5483_v37  ;;  %v2526_v36 = vpack.c.bf16 %v1771_v19, %v1767_v63 }
 0x1f5   :  { %v3313_v40 = vunpack.c.l.bf16 %v3183_v29  ;;  %v4575_v4 = vpop.eup %4574  ;;  %v3323_v54 = vunpack.c.h.bf16 %v3183_v29  ;;  %4584 = vtanh.bf16 %v2883_v53  ;;  %v2527_v3 = vpack.c.bf16 %v1773_v12, %v1769_v20 }
 0x1f6   :  { %v3314_v45 = vunpack.c.l.bf16 %v3184_v2  ;;  %v3324_v60 = vunpack.c.h.bf16 %v3184_v2  ;;  %v4577_v1 = vpop.eup %4576  ;;  %v2971_v25 = vadd.bf16 1065369472, %v4575_v4  ;;  %4586 = vtanh.bf16 %v2822_v38 }
 0x1f7   :  { %v3552_v61 = vadd.f32 %v3551_v50, %v3313_v40  ;;  %v4579_v57 = vpop.eup %4578  ;;  %v3033_v5 = vadd.bf16 1065369472, %v4577_v1  ;;  %4588 = vtanh.bf16 %v2884_v44  ;;  %v5490_v13 = vadd.bf16 %v5438_v0, %v2526_v36 }
 0x1f8   :  { %v3565_v9 = vadd.f32 %v3564_v34, %v3314_v45  ;;  %v4581_v7 = vpop.eup %4580  ;;  %v3051_v21 = vmul.bf16 1056980736, %v2971_v25  ;;  %v2972_v46 = vadd.bf16 1065369472, %v4579_v57  ;;  %v5493_v22 = vadd.bf16 %v5442_v59, %v2527_v3 }
 0x1f9   :  { %v3553_v30 = vadd.f32 %v3552_v61, %v3323_v54  ;;  %v3113_v8 = vmul.bf16 1056980736, %v3033_v5  ;;  %v3034_v28 = vadd.bf16 1065369472, %v4581_v7  ;;  %v1777_v11 = vpop.f32.mrb[44].mxu1  ;;  %v5500_v33 = vrot.slane %v5379_v15, %v3651_v56 }
 0x1fa   :  { %v3566_v26 = vadd.f32 %v3565_v9, %v3324_v60  ;;  %v3052_v23 = vmul.bf16 1056980736, %v2972_v46  ;;  %v1779_v42 = vpop.f32.mrb[45].mxu1  ;;  %v3131_v29 = vmul.bf16 %v3051_v21, %v5445_v55  ;;  %v2831_v16 = vmul.bf16 1056980736, %v5490_v13 }
 0x1fb   :  { %v3193_v52 = vmul.bf16 %v3113_v8, %v5448_v31  ;;  %v3114_v18 = vmul.bf16 1056980736, %v3034_v28  ;;  %v1781_v63 = vpop.f32.mrb[46].mxu1  ;;  %v2832_v2 = vmul.bf16 1056980736, %v5493_v22  ;;  %v5506_v53 = vrot.slane %v5379_v15, %v3655_v32 }
 0x1fc   :  { %v1783_v27 = vpop.f32.mrb[47].mxu1  ;;  %v3432_v31 = vrot.slane %v3431_v14, 1  ;;  %v5509_v19 = vadd.f32 %v3443_v6, %v5465_v17  ;;  %v3132_v55 = vmul.bf16 %v3052_v23, %v5451_v48  ;;  %4590 = vtanh.bf16 %v2831_v16 }
 0x1fd   :  { %v3333_v20 = vunpack.c.l.bf16 %v3193_v52  ;;  %v3194_v50 = vmul.bf16 %v3114_v18, %v5454_v24  ;;  %v3343_v34 = vunpack.c.h.bf16 %v3193_v52  ;;  %4592 = vtanh.bf16 %v2832_v2 }
 0x1fe   :  { %v3211_v54 = vunpack.c.l.bf16 %v3131_v29  ;;  %v2536_v45 = vpack.c.bf16 %v1781_v63, %v1777_v11  ;;  %v2537_v60 = vpack.c.bf16 %v1783_v27, %v1779_v42  ;;  %v3221_v17 = vunpack.c.h.bf16 %v3131_v29 }
 0x1ff   :  { %v4583_v56 = vpop.eup %4582  ;;  %v3554_v40 = vadd.f32 %v3553_v30, %v3333_v20  ;;  %v3334_v12 = vunpack.c.l.bf16 %v3194_v50  ;;  %v3344_v15 = vunpack.c.h.bf16 %v3194_v50  ;;  %v5518_v9 = vadd.f32 %v3432_v31, %v3431_v14 }
 0x200   :  { %v4585_v4 = vpop.eup %4584  ;;  %v2981_v24 = vadd.bf16 1065369472, %v4583_v56  ;;  %v5513_v48 = vadd.bf16 %v5438_v0, %v2536_v45  ;;  %v5516_v38 = vadd.bf16 %v5442_v59, %v2537_v60  ;;  %v3212_v5 = vunpack.c.l.bf16 %v3132_v55 }
 0x201   :  { %v3555_v1 = vadd.f32 %v3554_v40, %v3343_v34  ;;  %v3567_v32 = vadd.f32 %v3566_v26, %v3334_v12  ;;  %v3043_v61 = vadd.bf16 1065369472, %v4585_v4  ;;  %v1787_v25 = vpop.f32.mrb[48].mxu1  ;;  %v4587_v57 = vpop.eup %4586  ;;  %v3222_v28 = vunpack.c.h.bf16 %v3132_v55 }
 0x202   :  { %v3061_v6 = vmul.bf16 1056980736, %v2981_v24  ;;  %v1789_v44 = vpop.f32.mrb[49].mxu1  ;;  %v4589_v30 = vpop.eup %4588  ;;  %v2982_v46 = vadd.bf16 1065369472, %v4587_v57  ;;  %v3395_v14 = vadd.f32 %v3221_v17, %v3211_v54 }
 0x203   :  { %v3568_v36 = vadd.f32 %v3567_v32, %v3344_v15  ;;  %v3123_v3 = vmul.bf16 1056980736, %v3043_v61  ;;  %v1791_v7 = vpop.f32.mrb[50].mxu1  ;;  %v2841_v26 = vmul.bf16 1056980736, %v5513_v48 }
 0x204   :  { %v3141_v21 = vmul.bf16 %v3061_v6, %v5468_v10  ;;  %v2842_v8 = vmul.bf16 1056980736, %v5516_v38  ;;  %v3044_v23 = vadd.bf16 1065369472, %v4589_v30  ;;  %v2546_v42 = vpack.c.bf16 %v1791_v7, %v1787_v25  ;;  %v1793_v52 = vpop.f32.mrb[51].mxu1 }
 0x205   :  { %v3203_v11 = vmul.bf16 %v3123_v3, %v5471_v51  ;;  %v3062_v63 = vmul.bf16 1056980736, %v2982_v46  ;;  %4594 = vtanh.bf16 %v2841_v26  ;;  %v2547_v2 = vpack.c.bf16 %v1793_v52, %v1789_v44 }
 0x206   :  { %v3231_v18 = vunpack.c.l.bf16 %v3141_v21  ;;  %v3241_v29 = vunpack.c.h.bf16 %v3141_v21  ;;  %v3124_v27 = vmul.bf16 1056980736, %v3044_v23  ;;  %4596 = vtanh.bf16 %v2842_v8 }
 0x207   :  { %v3353_v16 = vunpack.c.l.bf16 %v3203_v11  ;;  %v3142_v20 = vmul.bf16 %v3062_v63, %v5478_v39  ;;  %v5526_v50 = vadd.bf16 %v5438_v0, %v2546_v42  ;;  %v4591_v31 = vpop.eup %4590  ;;  %v3408_v51 = vadd.f32 %v3222_v28, %v3212_v5 }
 0x208   :  { %v3396_v10 = vadd.f32 %v3395_v14, %v3231_v18  ;;  %v3363_v55 = vunpack.c.h.bf16 %v3203_v11  ;;  %v3204_v34 = vmul.bf16 %v3124_v27, %v5483_v37  ;;  %v4593_v12 = vpop.eup %4592  ;;  %v2991_v45 = vadd.bf16 1065369472, %v4591_v31 }
 0x209   :  { %v3556_v56 = vadd.f32 %v3555_v1, %v3353_v16  ;;  %v1797_v40 = vpop.f32.mrb[52].mxu1  ;;  %v3232_v54 = vunpack.c.l.bf16 %v3142_v20  ;;  %v3242_v24 = vunpack.c.h.bf16 %v3142_v20  ;;  %v2992_v61 = vadd.bf16 1065369472, %v4593_v12 }
 0x20a   :  { %v3397_v4 = vadd.f32 %v3396_v10, %v3241_v29  ;;  %v1799_v60 = vpop.f32.mrb[53].mxu1  ;;  %v3354_v32 = vunpack.c.l.bf16 %v3204_v34  ;;  %v3364_v39 = vunpack.c.h.bf16 %v3204_v34  ;;  %v3071_v6 = vmul.bf16 1056980736, %v2991_v45 }
 0x20b   :  { %v3557_v15 = vadd.f32 %v3556_v56, %v3363_v55  ;;  %v1801_v25 = vpop.f32.mrb[54].mxu1  ;;  %v3409_v17 = vadd.f32 %v3408_v51, %v3232_v54  ;;  %v2851_v44 = vmul.bf16 1056980736, %v5526_v50  ;;  %v5531_v1 = vadd.bf16 %v5442_v59, %v2547_v2 }
 0x20c   :  { %v1803_v37 = vpop.f32.mrb[55].mxu1  ;;  %v3569_v5 = vadd.f32 %v3568_v36, %v3354_v32  ;;  %v3072_v3 = vmul.bf16 1056980736, %v2992_v61  ;;  %v2556_v7 = vpack.c.bf16 %v1801_v25, %v1797_v40  ;;  %v3151_v21 = vmul.bf16 %v3071_v6, %v5490_v13 }
 0x20d   :  { %v3558_v57 = vrot.slane %v3557_v15, 4  ;;  %v3410_v30 = vadd.f32 %v3409_v17, %v3242_v24  ;;  %4598 = vtanh.bf16 %v2851_v44  ;;  %v2852_v46 = vmul.bf16 1056980736, %v5531_v1 }
 0x20e   :  { %v3570_v8 = vadd.f32 %v3569_v5, %v3364_v39  ;;  %v3152_v28 = vmul.bf16 %v3072_v3, %v5493_v22  ;;  %v5537_v11 = vadd.bf16 %v5438_v0, %v2556_v7  ;;  %v3251_v23 = vunpack.c.l.bf16 %v3151_v21 }
 0x20f   :  { %v3559_v26 = vadd.f32 %v3558_v57, %v3557_v15  ;;  %v3261_v42 = vunpack.c.h.bf16 %v3151_v21  ;;  %4600 = vtanh.bf16 %v2852_v46  ;;  %v2557_v52 = vpack.c.bf16 %v1803_v37, %v1799_v60 }
 0x210   :  { %v4595_v36 = vpop.eup %4594  ;;  %v3571_v18 = vrot.slane %v3570_v8, 4  ;;  %v3252_v63 = vunpack.c.l.bf16 %v3152_v28  ;;  %v3262_v29 = vunpack.c.h.bf16 %v3152_v28  ;;  %v3398_v27 = vadd.f32 %v3397_v4, %v3251_v23 }
 0x211   :  { %v3560_v14 = vrot.slane %v3559_v26, 2  ;;  %v1807_v13 = vpop.f32.mrb[56].mxu1  ;;  %v4597_v16 = vpop.eup %4596  ;;  %v3001_v10 = vadd.bf16 1065369472, %v4595_v36  ;;  %v2861_v20 = vmul.bf16 1056980736, %v5537_v11  ;;  %v5541_v22 = vadd.bf16 %v5442_v59, %v2557_v52 }
 0x212   :  { %v1809_v2 = vpop.f32.mrb[57].mxu1  ;;  %v3572_v51 = vadd.f32 %v3571_v18, %v3570_v8  ;;  %v3411_v55 = vadd.f32 %v3410_v30, %v3252_v63  ;;  %v3002_v56 = vadd.bf16 1065369472, %v4597_v16  ;;  %v3399_v40 = vadd.f32 %v3398_v27, %v3261_v42 }
 0x213   :  { %v3561_v31 = vadd.f32 %v3560_v14, %v3559_v26  ;;  %v1811_v34 = vpop.f32.mrb[58].mxu1  ;;  %v3081_v12 = vmul.bf16 1056980736, %v3001_v10  ;;  %4602 = vtanh.bf16 %v2861_v20  ;;  %v2862_v54 = vmul.bf16 1056980736, %v5541_v22 }
 0x214   :  { %v1813_v24 = vpop.f32.mrb[59].mxu1  ;;  %v3573_v4 = vrot.slane %v3572_v51, 2  ;;  %v3412_v60 = vadd.f32 %v3411_v55, %v3262_v29  ;;  %v3082_v15 = vmul.bf16 1056980736, %v3002_v56  ;;  %v2566_v39 = vpack.c.bf16 %v1811_v34, %v1807_v13 }
 0x215   :  { %v3562_v45 = vrot.slane %v3561_v31, 1  ;;  %v3161_v32 = vmul.bf16 %v3081_v12, %v5513_v48  ;;  %4604 = vtanh.bf16 %v2862_v54  ;;  %v2567_v61 = vpack.c.bf16 %v1813_v24, %v1809_v2 }
 0x216   :  { %v3445_v25 = vrot.slane %v5509_v19, 1  ;;  %v3574_v6 = vadd.f32 %v3573_v4, %v3572_v51  ;;  %v3162_v44 = vmul.bf16 %v3082_v15, %v5516_v38  ;;  %v5548_v57 = vadd.bf16 %v5438_v0, %v2566_v39 }
 0x217   :  { %v3563_v17 = vadd.f32 %v3562_v45, %v3561_v31  ;;  %v3271_v37 = vunpack.c.l.bf16 %v3161_v32  ;;  %v5551_v5 = vadd.bf16 %v5442_v59, %v2567_v61  ;;  %v3687_v3 = vmul.f32 %v5500_v33, %v5518_v9  ;;  %v4044_v61 = vld.sshfl [vmem:[#allocation8 + $0x8] sm:$0x11 pattern:$0x75316420] }
 0x218   :  { %v4599_v48 = vpop.eup %4598  ;;  %v3575_v30 = vrot.slane %v3574_v6, 1  ;;  %v3281_v21 = vunpack.c.h.bf16 %v3161_v32  ;;  %v3272_v46 = vunpack.c.l.bf16 %v3162_v44  ;;  %v2871_v38 = vmul.bf16 1056980736, %v5548_v57 }
 0x219   :  { %v3697_v7 = vmul.f32 %v5500_v33, %v3563_v17  ;;  %v1817_v26 = vpop.f32.mrb[60].mxu1  ;;  %v3400_v8 = vadd.f32 %v3399_v40, %v3271_v37  ;;  %v3011_v28 = vadd.bf16 1065369472, %v4599_v48  ;;  %v2872_v23 = vmul.bf16 1056980736, %v5551_v5 }
 0x21a   :  { %v4601_v42 = vpop.eup %4600  ;;  %v3576_v52 = vadd.f32 %v3575_v30, %v3574_v6  ;;  %v3282_v36 = vunpack.c.h.bf16 %v3162_v44  ;;  %v3413_v14 = vadd.f32 %v3412_v60, %v3272_v46  ;;  %v1819_v18 = vpop.f32.mrb[61].mxu1  ;;  %4606 = vtanh.bf16 %v2871_v38 }
 0x21b   :  { %v3732_v63 = vrot.slane %v3697_v7, 7  ;;  %v5558_v9 = vadd.f32 %v3400_v8, %v3281_v21  ;;  %v3091_v29 = vmul.bf16 1056980736, %v3011_v28  ;;  %v3012_v33 = vadd.bf16 1065369472, %v4601_v42  ;;  %v1821_v13 = vpop.f32.mrb[62].mxu1 }
 0x21c   :  { %v5560_v16 = vadd.f32 %v3413_v14, %v3282_v36  ;;  %4608 = vtanh.bf16 %v2872_v23  ;;  %v2576_v27 = vpack.c.bf16 %v1821_v13, %v1817_v26  ;;  %v1823_v10 = vpop.f32.mrb[63].mxu1  ;;  %v3698_v20 = vmul.f32 %v5506_v53, %v3576_v52 }
 0x21d   :  { %v3446_v2 = vadd.f32 %v3445_v25, %v5509_v19  ;;  %v3171_v31 = vmul.bf16 %v3091_v29, %v5526_v50  ;;  %v3092_v51 = vmul.bf16 1056980736, %v3012_v33  ;;  %v2577_v55 = vpack.c.bf16 %v1823_v10, %v1819_v18 }
 0x21e   :  { %v4603_v56 = vpop.eup %4602  ;;  %v2801_v34 = vadd.bf16 %v5438_v0, %v2576_v27  ;;  %v5567_v40 = vsel %vm3724_vm1, %v3732_v63, %v3687_v3  ;;  %v3734_v12 = vrot.slane %v3698_v20, 7  ;;  %v2644_v48 = vcombine.high %v4044_v61, %v4044_v61 }
 0x21f   :  { %v3172_v24 = vmul.bf16 %v3092_v51, %v5531_v1  ;;  %v3021_v45 = vadd.bf16 1065369472, %v4603_v56  ;;  %v5571_v60 = vadd.bf16 %v5442_v59, %v2577_v55  ;;  %v3291_v19 = vunpack.c.l.bf16 %v3171_v31 }
 0x220   :  { %v4605_v54 = vpop.eup %4604  ;;  %v2881_v4 = vmul.bf16 1056980736, %v2801_v34  ;;  %v3688_v50 = vmul.f32 %v5506_v53, %v3446_v2  ;;  %v3301_v15 = vunpack.c.h.bf16 %v3171_v31  ;;  %v2651_v21 = vrot.slane %v4044_v61, %v5110_v62 }
 0x221   :  { %v3101_v32 = vmul.bf16 1056980736, %v3021_v45  ;;  %v3022_v39 = vadd.bf16 1065369472, %v4605_v54  ;;  %v2882_v0 = vmul.bf16 1056980736, %v5571_v60  ;;  %v3292_v17 = vunpack.c.l.bf16 %v3172_v24 }
 0x222   :  { %4610 = vtanh.bf16 %v2881_v4  ;;  %v5576_v25 = vsel %vm3724_vm1, %v3734_v12, %v3688_v50  ;;  %v3302_v1 = vunpack.c.h.bf16 %v3172_v24  ;;  %v3525_v37 = vadd.f32 %v3301_v15, %v3291_v19 }
 0x223   :  { %v3181_v6 = vmul.bf16 %v3101_v32, %v5537_v11  ;;  %v3102_v44 = vmul.bf16 1056980736, %v3022_v39  ;;  %4612 = vtanh.bf16 %v2882_v0  ;;  %v2658_v36 = vrot.slane %v2644_v48, %v5110_v62 }
 0x224   :  { %v3538_v46 = vadd.f32 %v3302_v1, %v3292_v17  ;;  %v2716_v63 = vpack.i.b16 %v2651_v21, %v2651_v21  ;;  %v3402_v55 = vrot.slane %v5558_v9, 4  ;;  %v3415_v15 = vrot.slane %v5560_v16, 4 }
 0x225   :  { %v4607_v59 = vpop.eup %4606  ;;  %v3311_v3 = vunpack.c.l.bf16 %v3181_v6  ;;  %v3182_v53 = vmul.bf16 %v3102_v44, %v5541_v22  ;;  %v3321_v26 = vunpack.c.h.bf16 %v3181_v6  ;;  %v2723_v10 = vpack.i.b16 %v2658_v36, %v2658_v36 }
 0x226   :  { %v3031_v30 = vadd.bf16 1065369472, %v4607_v59  ;;  %v5586_v62 = vrot.slane %v2716_v63, %v5150_v41  ;;  %v3403_v17 = vadd.f32 %v3402_v55, %v5558_v9 }
 0x227   :  { %v4609_v7 = vpop.eup %4608  ;;  %v3526_v8 = vadd.f32 %v3525_v37, %v3311_v3  ;;  %v3312_v28 = vunpack.c.l.bf16 %v3182_v53  ;;  %v3322_v11 = vunpack.c.h.bf16 %v3182_v53  ;;  %v5589_v50 = vrot.slane %v2723_v10, %v5150_v41 }
 0x228   :  { %v3111_v38 = vmul.bf16 1056980736, %v3031_v30  ;;  %v3032_v23 = vadd.bf16 1065369472, %v4609_v7  ;;  %v3416_v53 = vadd.f32 %v3415_v15, %v5560_v16  ;;  %v3404_v30 = vrot.slane %v3403_v17, 2 }
 0x229   :  { %v3527_v42 = vadd.f32 %v3526_v8, %v3321_v26  ;;  %v3539_v52 = vadd.f32 %v3538_v46, %v3312_v28 }
 0x22a   :  { %v3191_v14 = vmul.bf16 %v3111_v38, %v5548_v57  ;;  %v3112_v18 = vmul.bf16 1056980736, %v3032_v23  ;;  %v3417_v23 = vrot.slane %v3416_v53, 2  ;;  %v3405_v16 = vadd.f32 %v3404_v30, %v3403_v17 }
 0x22b   :  { %v3540_v22 = vadd.f32 %v3539_v52, %v3322_v11 }
 0x22c   :  { %v3331_v33 = vunpack.c.l.bf16 %v3191_v14  ;;  %v3192_v13 = vmul.bf16 %v3112_v18, %v5551_v5  ;;  %v3341_v20 = vunpack.c.h.bf16 %v3191_v14  ;;  %v3406_v10 = vrot.slane %v3405_v16, 1 }
 0x22d   :  { %v4611_v29 = vpop.eup %4610 }
 0x22e   :  { %v3041_v27 = vadd.bf16 1065369472, %v4611_v29  ;;  %v3528_v2 = vadd.f32 %v3527_v42, %v3331_v33  ;;  %v3332_v31 = vunpack.c.l.bf16 %v3192_v13  ;;  %v4613_v51 = vpop.eup %4612  ;;  %v3342_v54 = vunpack.c.h.bf16 %v3192_v13 }
 0x22f   :  { %v3042_v45 = vadd.bf16 1065369472, %v4613_v51  ;;  %v3418_v33 = vadd.f32 %v3417_v23, %v3416_v53  ;;  %v3407_v15 = vadd.f32 %v3406_v10, %v3405_v16 }
 0x230   :  { %v3121_v56 = vmul.bf16 1056980736, %v3041_v27  ;;  %v3529_v57 = vadd.f32 %v3528_v2, %v3341_v20  ;;  %v3541_v24 = vadd.f32 %v3540_v22, %v3332_v31  ;;  %v3643_v20 = vsub.s32 2, %v5103_v58 }
 0x231   :  { %v3122_v39 = vmul.bf16 1056980736, %v3042_v45 }
 0x232   :  { %v2425_v12 = vpop.f32.mrb[64].mxu0  ;;  %v3201_v19 = vmul.bf16 %v3121_v56, %v2801_v34  ;;  %v3542_v32 = vadd.f32 %v3541_v24, %v3342_v54  ;;  %v3419_v24 = vrot.slane %v3418_v33, 1 }
 0x233   :  { %v2427_v4 = vpop.f32.mrb[65].mxu0  ;;  %v3202_v44 = vmul.bf16 %v3122_v39, %v5571_v60 }
 0x234   :  { %v2429_v5 = vpop.f32.mrb[66].mxu0  ;;  %v3351_v1 = vunpack.c.l.bf16 %v3201_v19  ;;  %v3361_v34 = vunpack.c.h.bf16 %v3201_v19 }
 0x235   :  { %v2512_v0 = vpack.c.bf16 %v2429_v5, %v2425_v12  ;;  %v2431_v61 = vpop.f32.mrb[67].mxu0  ;;  %v3352_v48 = vunpack.c.l.bf16 %v3202_v44  ;;  %v3362_v26 = vunpack.c.h.bf16 %v3202_v44  ;;  %v3647_v12 = vsub.s32 3, %v5103_v58 }
 0x236   :  { %v2513_v6 = vpack.c.bf16 %v2431_v61, %v2427_v4  ;;  %v3530_v37 = vadd.f32 %v3529_v57, %v3351_v1 }
 0x237   :  { %v5595_v59 = vadd.bf16 %v5586_v62, %v2512_v0  ;;  %v3543_v60 = vadd.f32 %v3542_v32, %v3352_v48  ;;  %v5613_v32 = vld [vmem:[#allocation9] sm:$0xff] }
 0x238   :  { %v5598_v3 = vadd.bf16 %v5589_v50, %v2513_v6  ;;  %v3531_v21 = vadd.f32 %v3530_v37, %v3361_v34  ;;  %v3644_v39 = vrot.slane %v5613_v32, %v3643_v20  ;;  %v3648_v34 = vrot.slane %v5613_v32, %v3647_v12 }
 0x239   :  { %v2817_v7 = vmul.bf16 1056980736, %v5595_v59  ;;  %v3544_v42 = vadd.f32 %v3543_v60, %v3362_v26 }
 0x23a   :  { %v2818_v9 = vmul.bf16 1056980736, %v5598_v3  ;;  %v2435_v46 = vpop.f32.mrb[68].mxu0  ;;  %v3532_v28 = vrot.slane %v3531_v21, 4 }
 0x23b   :  { %4614 = vtanh.bf16 %v2817_v7  ;;  %v2437_v8 = vpop.f32.mrb[69].mxu0  ;;  %v3545_v18 = vrot.slane %v3544_v42, 4  ;;  %v3420_v7 = vadd.f32 %v3419_v24, %v3418_v33 }
 0x23c   :  { %4616 = vtanh.bf16 %v2818_v9  ;;  %v2439_v38 = vpop.f32.mrb[70].mxu0  ;;  %v3533_v36 = vadd.f32 %v3532_v28, %v3531_v21 }
 0x23d   :  { %v2522_v11 = vpack.c.bf16 %v2439_v38, %v2435_v46  ;;  %v2441_v52 = vpop.f32.mrb[71].mxu0  ;;  %v3546_v13 = vadd.f32 %v3545_v18, %v3544_v42  ;;  %v3685_v46 = vmul.f32 %v3644_v39, %v3407_v15  ;;  %v3686_v16 = vmul.f32 %v3648_v34, %v3420_v7 }
 0x23e   :  { %v2523_v14 = vpack.c.bf16 %v2441_v52, %v2437_v8  ;;  %v3534_v63 = vrot.slane %v3533_v36, 2  ;;  %v3764_v7 = vsel %vm3754_vm2, %v5576_v25, 0.0 }
 0x23f   :  { %v5604_v22 = vadd.bf16 %v5586_v62, %v2522_v11  ;;  %v3547_v55 = vrot.slane %v3546_v13, 2 }
 0x240   :  { %v5607_v29 = vadd.bf16 %v5589_v50, %v2523_v14  ;;  %v3535_v2 = vadd.f32 %v3534_v63, %v3533_v36 }
 0x241   :  { %v2827_v27 = vmul.bf16 1056980736, %v5604_v22  ;;  %v3548_v45 = vadd.f32 %v3547_v55, %v3546_v13 }
 0x242   :  { %v2828_v31 = vmul.bf16 1056980736, %v5607_v29  ;;  %v2445_v51 = vpop.f32.mrb[72].mxu0  ;;  %v3536_v57 = vrot.slane %v3535_v2, 1 }
 0x243   :  { %4618 = vtanh.bf16 %v2827_v27  ;;  %v2447_v56 = vpop.f32.mrb[73].mxu0  ;;  %v3549_v1 = vrot.slane %v3548_v45, 1 }
 0x244   :  { %4620 = vtanh.bf16 %v2828_v31  ;;  %v2449_v54 = vpop.f32.mrb[74].mxu0  ;;  %v3537_v0 = vadd.f32 %v3536_v57, %v3535_v2 }
 0x245   :  { %v2532_v4 = vpack.c.bf16 %v2449_v54, %v2445_v51  ;;  %v2451_v19 = vpop.f32.mrb[75].mxu0  ;;  %v3550_v30 = vadd.f32 %v3549_v1, %v3548_v45 }
 0x246   :  { %v4615_v5 = vpop.eup %4614  ;;  %v2533_v61 = vpack.c.bf16 %v2451_v19, %v2447_v56  ;;  %v3695_v37 = vmul.f32 %v3644_v39, %v3537_v0 }
 0x247   :  { %v4617_v17 = vpop.eup %4616  ;;  %v2977_v6 = vadd.bf16 1065369472, %v4615_v5  ;;  %v5617_v44 = vadd.bf16 %v5586_v62, %v2532_v4  ;;  %v3696_v38 = vmul.f32 %v3648_v34, %v3550_v30 }
 0x248   :  { %v2978_v53 = vadd.bf16 1065369472, %v4617_v17  ;;  %v5621_v48 = vadd.bf16 %v5589_v50, %v2533_v61  ;;  %v3728_v26 = vrot.slane %v3695_v37, 7  ;;  %v3762_v61 = vsel %vm3754_vm2, %v5567_v40, 0.0 }
 0x249   :  { %v3057_v21 = vmul.bf16 1056980736, %v2977_v6  ;;  %v2837_v9 = vmul.bf16 1056980736, %v5617_v44  ;;  %v3730_v36 = vrot.slane %v3696_v38, 7 }
 0x24a   :  { %v3058_v60 = vmul.bf16 1056980736, %v2978_v53  ;;  %v2838_v8 = vmul.bf16 1056980736, %v5621_v48  ;;  %v2455_v28 = vpop.f32.mrb[76].mxu0  ;;  %v3729_v52 = vsel %vm3724_vm1, %v3728_v26, %v3685_v46 }
 0x24b   :  { %v3137_v23 = vmul.bf16 %v3057_v21, %v5595_v59  ;;  %4622 = vtanh.bf16 %v2837_v9  ;;  %v2457_v42 = vpop.f32.mrb[77].mxu0  ;;  %v3758_v27 = vsel %vm3754_vm2, %v3729_v52, 0.0  ;;  %v3731_v31 = vsel %vm3724_vm1, %v3730_v36, %v3686_v16 }
 0x24c   :  { %4624 = vtanh.bf16 %v2838_v8  ;;  %v2459_v11 = vpop.f32.mrb[78].mxu0  ;;  %v3138_v14 = vmul.bf16 %v3058_v60, %v5598_v3  ;;  %v3759_v3 = vadd.f32 %v3758_v27, %v5409_v49  ;;  %v3760_v24 = vsel %vm3754_vm2, %v3731_v31, 0.0 }
 0x24d   :  { %v2542_v18 = vpack.c.bf16 %v2459_v11, %v2455_v28  ;;  %v2461_v63 = vpop.f32.mrb[79].mxu0  ;;  %v3217_v20 = vunpack.c.l.bf16 %v3137_v23  ;;  %v3227_v51 = vunpack.c.h.bf16 %v3137_v23  ;;  %v2634_v16 = vcombine.high %v5330_v47, %v5330_v47 }
 0x24e   :  { %v4619_v33 = vpop.eup %4618  ;;  %v2543_v13 = vpack.c.bf16 %v2461_v63, %v2457_v42  ;;  %v3218_v12 = vunpack.c.l.bf16 %v3138_v14  ;;  %v3228_v45 = vunpack.c.h.bf16 %v3138_v14  ;;  %v3761_v15 = vadd.f32 %v3760_v24, %v3759_v3 }
 0x24f   :  { %v4621_v10 = vpop.eup %4620  ;;  %v2987_v2 = vadd.bf16 1065369472, %v4619_v33  ;;  %v5630_v59 = vadd.bf16 %v5586_v62, %v2542_v18  ;;  %v3473_v6 = vadd.f32 %v3227_v51, %v3217_v20  ;;  %v2636_v33 = vcombine.high %v5333_v35, %v5333_v35 }
 0x250   :  { %v2988_v55 = vadd.bf16 1065369472, %v4621_v10  ;;  %v5634_v56 = vadd.bf16 %v5589_v50, %v2543_v13  ;;  %v3763_v1 = vadd.f32 %v3762_v61, %v3761_v15  ;;  %v3486_v21 = vadd.f32 %v3228_v45, %v3218_v12 }
 0x251   :  { %v3067_v57 = vmul.bf16 1056980736, %v2987_v2  ;;  %v2847_v54 = vmul.bf16 1056980736, %v5630_v59  ;;  %v2702_v12 = vpack.i.b16 %v2634_v16, %v2634_v16 }
 0x252   :  { %v3068_v4 = vmul.bf16 1056980736, %v2988_v55  ;;  %v2848_v19 = vmul.bf16 1056980736, %v5634_v56  ;;  %v2465_v5 = vpop.f32.mrb[80].mxu0  ;;  %v5646_v46 = vadd.f32 %v3764_v7, %v3763_v1 }
 0x253   :  { %v3147_v39 = vmul.bf16 %v3067_v57, %v5604_v22  ;;  %4626 = vtanh.bf16 %v2847_v54  ;;  %v2467_v0 = vpop.f32.mrb[81].mxu0  ;;  %v2709_v57 = vpack.i.b16 %v2636_v33, %v2636_v33  ;;  %v5672_v7 = vrot.slane %v2702_v12, %v5150_v41 }
 0x254   :  { %v3148_v49 = vmul.bf16 %v3068_v4, %v5607_v29  ;;  %4628 = vtanh.bf16 %v2848_v19  ;;  %v2469_v17 = vpop.f32.mrb[82].mxu0 }
 0x255   :  { %v3237_v34 = vunpack.c.l.bf16 %v3147_v39  ;;  %v2552_v37 = vpack.c.bf16 %v2469_v17, %v2465_v5  ;;  %v2471_v53 = vpop.f32.mrb[83].mxu0  ;;  %v3247_v40 = vunpack.c.h.bf16 %v3147_v39 }
 0x256   :  { %v4623_v30 = vpop.eup %4622  ;;  %v3238_v22 = vunpack.c.l.bf16 %v3148_v49  ;;  %v2553_v9 = vpack.c.bf16 %v2471_v53, %v2467_v0  ;;  %v3248_v28 = vunpack.c.h.bf16 %v3148_v49 }
 0x257   :  { %v4625_v26 = vpop.eup %4624  ;;  %v3474_v60 = vadd.f32 %v3473_v6, %v3237_v34  ;;  %v2997_v29 = vadd.bf16 1065369472, %v4623_v30  ;;  %v5649_v8 = vadd.bf16 %v5586_v62, %v2552_v37 }
 0x258   :  { %v3487_v38 = vadd.f32 %v3486_v21, %v3238_v22  ;;  %v2998_v23 = vadd.bf16 1065369472, %v4625_v26  ;;  %v5652_v42 = vadd.bf16 %v5589_v50, %v2553_v9  ;;  %v5676_v9 = vrot.slane %v2709_v57, %v5150_v41 }
 0x259   :  { %v3475_v25 = vadd.f32 %v3474_v60, %v3247_v40  ;;  %v3077_v11 = vmul.bf16 1056980736, %v2997_v29  ;;  %v2857_v52 = vmul.bf16 1056980736, %v5649_v8 }
 0x25a   :  { %v3488_v36 = vadd.f32 %v3487_v38, %v3248_v28  ;;  %v3078_v14 = vmul.bf16 1056980736, %v2998_v23  ;;  %v2858_v18 = vmul.bf16 1056980736, %v5652_v42  ;;  %v2475_v63 = vpop.f32.mrb[84].mxu0 }
 0x25b   :  { %v3157_v13 = vmul.bf16 %v3077_v11, %v5617_v44  ;;  %4630 = vtanh.bf16 %v2857_v52  ;;  %v2477_v27 = vpop.f32.mrb[85].mxu0 }
 0x25c   :  { %v3158_v10 = vmul.bf16 %v3078_v14, %v5621_v48  ;;  %4632 = vtanh.bf16 %v2858_v18  ;;  %v2479_v20 = vpop.f32.mrb[86].mxu0 }
 0x25d   :  { %v3257_v2 = vunpack.c.l.bf16 %v3157_v13  ;;  %v2562_v31 = vpack.c.bf16 %v2479_v20, %v2475_v63  ;;  %v2481_v51 = vpop.f32.mrb[87].mxu0  ;;  %v3267_v24 = vunpack.c.h.bf16 %v3157_v13 }
 0x25e   :  { %v4627_v47 = vpop.eup %4626  ;;  %v3258_v55 = vunpack.c.l.bf16 %v3158_v10  ;;  %v2563_v3 = vpack.c.bf16 %v2481_v51, %v2477_v27  ;;  %v3268_v4 = vunpack.c.h.bf16 %v3158_v10 }
 0x25f   :  { %v4629_v54 = vpop.eup %4628  ;;  %v3476_v45 = vadd.f32 %v3475_v25, %v3257_v2  ;;  %v3007_v35 = vadd.bf16 1065369472, %v4627_v47  ;;  %v5663_v44 = vadd.bf16 %v5586_v62, %v2562_v31 }
 0x260   :  { %v3489_v19 = vadd.f32 %v3488_v36, %v3258_v55  ;;  %v3008_v48 = vadd.bf16 1065369472, %v4629_v54  ;;  %v5666_v5 = vadd.bf16 %v5589_v50, %v2563_v3 }
 0x261   :  { %v3477_v15 = vadd.f32 %v3476_v45, %v3267_v24  ;;  %v3087_v39 = vmul.bf16 1056980736, %v3007_v35  ;;  %v2867_v0 = vmul.bf16 1056980736, %v5663_v44  ;;  %v2199_v1 = vpop.f32.mrb[64].mxu1 }
 0x262   :  { %v3490_v61 = vadd.f32 %v3489_v19, %v3268_v4  ;;  %v3088_v49 = vmul.bf16 1056980736, %v3008_v48  ;;  %v2868_v17 = vmul.bf16 1056980736, %v5666_v5  ;;  %v2485_v6 = vpop.f32.mrb[88].mxu0  ;;  %v2201_v37 = vpop.f32.mrb[65].mxu1 }
 0x263   :  { %v3167_v34 = vmul.bf16 %v3087_v39, %v5630_v59  ;;  %4634 = vtanh.bf16 %v2867_v0  ;;  %v2487_v53 = vpop.f32.mrb[89].mxu0  ;;  %v2203_v21 = vpop.f32.mrb[66].mxu1 }
 0x264   :  { %v3168_v30 = vmul.bf16 %v3088_v49, %v5634_v56  ;;  %4636 = vtanh.bf16 %v2868_v17  ;;  %v2489_v22 = vpop.f32.mrb[90].mxu0  ;;  %v2510_v60 = vpack.c.bf16 %v2203_v21, %v2199_v1  ;;  %v2205_v28 = vpop.f32.mrb[67].mxu1 }
 0x265   :  { %v3277_v26 = vunpack.c.l.bf16 %v3167_v34  ;;  %v3287_v40 = vunpack.c.h.bf16 %v3167_v34  ;;  %v2572_v29 = vpack.c.bf16 %v2489_v22, %v2485_v6  ;;  %v2491_v59 = vpop.f32.mrb[91].mxu0  ;;  %v2511_v11 = vpack.c.bf16 %v2205_v28, %v2201_v37 }
 0x266   :  { %v4631_v38 = vpop.eup %4630  ;;  %v3278_v23 = vunpack.c.l.bf16 %v3168_v30  ;;  %v3288_v25 = vunpack.c.h.bf16 %v3168_v30  ;;  %v2573_v52 = vpack.c.bf16 %v2491_v59, %v2487_v53  ;;  %v5679_v14 = vadd.bf16 %v5672_v7, %v2510_v60 }
 0x267   :  { %v4633_v16 = vpop.eup %4632  ;;  %v3478_v36 = vadd.f32 %v3477_v15, %v3277_v26  ;;  %v3017_v56 = vadd.bf16 1065369472, %v4631_v38  ;;  %v5682_v18 = vadd.bf16 %v5586_v62, %v2572_v29  ;;  %v5685_v13 = vadd.bf16 %v5676_v9, %v2511_v11 }
 0x268   :  { %v3491_v63 = vadd.f32 %v3490_v61, %v3278_v23  ;;  %v3018_v33 = vadd.bf16 1065369472, %v4633_v16  ;;  %v5688_v27 = vadd.bf16 %v5589_v50, %v2573_v52  ;;  %v2815_v2 = vmul.bf16 1056980736, %v5679_v14 }
 0x269   :  { %v3479_v10 = vadd.f32 %v3478_v36, %v3287_v40  ;;  %v3097_v20 = vmul.bf16 1056980736, %v3017_v56  ;;  %v2877_v31 = vmul.bf16 1056980736, %v5682_v18  ;;  %v2816_v55 = vmul.bf16 1056980736, %v5685_v13 }
 0x26a   :  { %v3492_v51 = vadd.f32 %v3491_v63, %v3288_v25  ;;  %v3098_v47 = vmul.bf16 1056980736, %v3018_v33  ;;  %v2878_v3 = vmul.bf16 1056980736, %v5688_v27  ;;  %4638 = vtanh.bf16 %v2815_v2  ;;  %v2209_v54 = vpop.f32.mrb[68].mxu1  ;;  %v2495_v24 = vpop.f32.mrb[92].mxu0 }
 0x26b   :  { %v3480_v12 = vrot.slane %v3479_v10, 4  ;;  %v3177_v57 = vmul.bf16 %v3097_v20, %v5649_v8  ;;  %4640 = vtanh.bf16 %v2877_v31  ;;  %v2211_v4 = vpop.f32.mrb[69].mxu1  ;;  %v2497_v19 = vpop.f32.mrb[93].mxu0 }
 0x26c   :  { %v3493_v45 = vrot.slane %v3492_v51, 4  ;;  %v3178_v35 = vmul.bf16 %v3098_v47, %v5652_v42  ;;  %4642 = vtanh.bf16 %v2816_v55  ;;  %v2213_v0 = vpop.f32.mrb[70].mxu1  ;;  %v2499_v61 = vpop.f32.mrb[94].mxu0 }
 0x26d   :  { %v3481_v48 = vadd.f32 %v3480_v12, %v3479_v10  ;;  %v3297_v15 = vunpack.c.l.bf16 %v3177_v57  ;;  %v3307_v39 = vunpack.c.h.bf16 %v3177_v57  ;;  %4644 = vtanh.bf16 %v2878_v3  ;;  %v2215_v8 = vpop.f32.mrb[71].mxu1  ;;  %v2501_v6 = vpop.f32.mrb[95].mxu0 }
 0x26e   :  { %v4635_v49 = vpop.eup %4634  ;;  %v3298_v17 = vunpack.c.l.bf16 %v3178_v35  ;;  %v3308_v1 = vunpack.c.h.bf16 %v3178_v35  ;;  %v5696_v53 = vadd.f32 %v3493_v45, %v3492_v51  ;;  %v2520_v30 = vpack.c.bf16 %v2213_v0, %v2209_v54 }
 0x26f   :  { %v4637_v34 = vpop.eup %4636  ;;  %v3482_v37 = vrot.slane %v3481_v48, 2  ;;  %v3027_v42 = vadd.bf16 1065369472, %v4635_v49  ;;  %v3603_v21 = vadd.f32 %v3307_v39, %v3297_v15  ;;  %v2582_v26 = vpack.c.bf16 %v2499_v61, %v2495_v24 }
 0x270   :  { %v3028_v22 = vadd.bf16 1065369472, %v4637_v34  ;;  %v2521_v40 = vpack.c.bf16 %v2215_v8, %v2211_v4  ;;  %v5699_v29 = vadd.bf16 %v5672_v7, %v2520_v30  ;;  %v2583_v28 = vpack.c.bf16 %v2501_v6, %v2497_v19 }
 0x271   :  { %v3107_v60 = vmul.bf16 1056980736, %v3027_v42  ;;  %v5701_v59 = vadd.f32 %v3482_v37, %v3481_v48  ;;  %v3616_v38 = vadd.f32 %v3308_v1, %v3298_v17  ;;  %v5704_v25 = vadd.bf16 %v5586_v62, %v2582_v26  ;;  %v2219_v52 = vpop.f32.mrb[72].mxu1  ;;  %v5726_v17 = vld [vmem:[#allocation9 + $0x8] sm:$0x3] }
 0x272   :  { %v3108_v23 = vmul.bf16 1056980736, %v3028_v22  ;;  %v5707_v11 = vadd.bf16 %v5676_v9, %v2521_v40  ;;  %v2825_v36 = vmul.bf16 1056980736, %v5699_v29  ;;  %v5712_v56 = vadd.bf16 %v5589_v50, %v2583_v28  ;;  %v2221_v63 = vpop.f32.mrb[73].mxu1 }
 0x273   :  { %v3187_v16 = vmul.bf16 %v3107_v60, %v5663_v44  ;;  %v3495_v33 = vrot.slane %v5696_v53, 2  ;;  %v2887_v20 = vmul.bf16 1056980736, %v5704_v25  ;;  %v2223_v2 = vpop.f32.mrb[74].mxu1  ;;  %v3484_v31 = vrot.slane %v5701_v59, 1 }
 0x274   :  { %v3188_v10 = vmul.bf16 %v3108_v23, %v5666_v5  ;;  %v2826_v62 = vmul.bf16 1056980736, %v5707_v11  ;;  %4646 = vtanh.bf16 %v2825_v36  ;;  %v2888_v44 = vmul.bf16 1056980736, %v5712_v56  ;;  %v2225_v55 = vpop.f32.mrb[75].mxu1 }
 0x275   :  { %v3317_v51 = vunpack.c.l.bf16 %v3187_v16  ;;  %v3327_v47 = vunpack.c.h.bf16 %v3187_v16  ;;  %v4639_v50 = vpop.eup %4638  ;;  %4648 = vtanh.bf16 %v2887_v20  ;;  %v2530_v57 = vpack.c.bf16 %v2223_v2, %v2219_v52 }
 0x276   :  { %v3318_v3 = vunpack.c.l.bf16 %v3188_v10  ;;  %v3328_v12 = vunpack.c.h.bf16 %v3188_v10  ;;  %v4641_v54 = vpop.eup %4640  ;;  %v2975_v24 = vadd.bf16 1065369472, %v4639_v50  ;;  %4650 = vtanh.bf16 %v2826_v62 }
 0x277   :  { %v3604_v5 = vadd.f32 %v3603_v21, %v3317_v51  ;;  %v2531_v45 = vpack.c.bf16 %v2225_v55, %v2221_v63  ;;  %v4643_v35 = vpop.eup %4642  ;;  %v3037_v19 = vadd.bf16 1065369472, %v4641_v54  ;;  %4652 = vtanh.bf16 %v2888_v44 }
 0x278   :  { %v3617_v4 = vadd.f32 %v3616_v38, %v3318_v3  ;;  %v5721_v48 = vadd.bf16 %v5672_v7, %v2530_v57  ;;  %v4645_v15 = vpop.eup %4644  ;;  %v3055_v0 = vmul.bf16 1056980736, %v2975_v24  ;;  %v2976_v61 = vadd.bf16 1065369472, %v4643_v35 }
 0x279   :  { %v3605_v39 = vadd.f32 %v3604_v5, %v3327_v47  ;;  %v5724_v49 = vadd.bf16 %v5676_v9, %v2531_v45  ;;  %v3117_v8 = vmul.bf16 1056980736, %v3037_v19  ;;  %v3038_v6 = vadd.bf16 1065369472, %v4645_v15  ;;  %v2229_v21 = vpop.f32.mrb[76].mxu1 }
 0x27a   :  { %v3618_v1 = vadd.f32 %v3617_v4, %v3328_v12  ;;  %v2835_v34 = vmul.bf16 1056980736, %v5721_v48  ;;  %v3135_v37 = vmul.bf16 %v3055_v0, %v5679_v14  ;;  %v3056_v42 = vmul.bf16 1056980736, %v2976_v61  ;;  %v2231_v40 = vpop.f32.mrb[77].mxu1 }
 0x27b   :  { %v2836_v30 = vmul.bf16 1056980736, %v5724_v49  ;;  %v3197_v22 = vmul.bf16 %v3117_v8, %v5682_v18  ;;  %v3118_v26 = vmul.bf16 1056980736, %v3038_v6  ;;  %v2233_v28 = vpop.f32.mrb[78].mxu1  ;;  %v5734_v38 = vadd.f32 %v3495_v33, %v5696_v53 }
 0x27c   :  { %4654 = vtanh.bf16 %v2835_v34  ;;  %v3136_v60 = vmul.bf16 %v3056_v42, %v5685_v13  ;;  %v5738_v23 = vrot.slane %v5726_v17, %v5150_v41  ;;  %v2540_v16 = vpack.c.bf16 %v2233_v28, %v2229_v21  ;;  %v2235_v36 = vpop.f32.mrb[79].mxu1 }
 0x27d   :  { %4656 = vtanh.bf16 %v2836_v30  ;;  %v3337_v14 = vunpack.c.l.bf16 %v3197_v22  ;;  %v3198_v52 = vmul.bf16 %v3118_v26, %v5688_v27  ;;  %v3485_v18 = vadd.f32 %v3484_v31, %v5701_v59 }
 0x27e   :  { %v3215_v63 = vunpack.c.l.bf16 %v3135_v37  ;;  %v3225_v10 = vunpack.c.h.bf16 %v3135_v37  ;;  %v3347_v20 = vunpack.c.h.bf16 %v3197_v22  ;;  %v2541_v13 = vpack.c.bf16 %v2235_v36, %v2231_v40 }
 0x27f   :  { %v4647_v62 = vpop.eup %4646  ;;  %v3606_v2 = vadd.f32 %v3605_v39, %v3337_v14  ;;  %v3216_v51 = vunpack.c.l.bf16 %v3136_v60  ;;  %v3338_v53 = vunpack.c.l.bf16 %v3198_v52  ;;  %v5743_v33 = vadd.bf16 %v5672_v7, %v2540_v16 }
 0x280   :  { %v4649_v41 = vpop.eup %4648  ;;  %v3226_v47 = vunpack.c.h.bf16 %v3136_v60  ;;  %v3348_v44 = vunpack.c.h.bf16 %v3198_v52  ;;  %v2985_v55 = vadd.bf16 1065369472, %v4647_v62  ;;  %v5746_v27 = vadd.bf16 %v5676_v9, %v2541_v13 }
 0x281   :  { %v4651_v50 = vpop.eup %4650  ;;  %v3607_v59 = vadd.f32 %v3606_v2, %v3347_v20  ;;  %v3619_v31 = vadd.f32 %v3618_v1, %v3338_v53  ;;  %v3047_v3 = vadd.bf16 1065369472, %v4649_v41  ;;  %v2845_v12 = vmul.bf16 1056980736, %v5743_v33  ;;  %v2239_v57 = vpop.f32.mrb[80].mxu1 }
 0x282   :  { %v4653_v54 = vpop.eup %4652  ;;  %v3065_v5 = vmul.bf16 1056980736, %v2985_v55  ;;  %v2986_v24 = vadd.bf16 1065369472, %v4651_v50  ;;  %v2846_v45 = vmul.bf16 1056980736, %v5746_v27  ;;  %v5751_v35 = vmul.f32 %v5738_v23, %v3485_v18 }
 0x283   :  { %v3620_v4 = vadd.f32 %v3619_v31, %v3348_v44  ;;  %v3127_v19 = vmul.bf16 1056980736, %v3047_v3  ;;  %v3048_v15 = vadd.bf16 1065369472, %v4653_v54  ;;  %4658 = vtanh.bf16 %v2845_v12  ;;  %v2241_v39 = vpop.f32.mrb[81].mxu1 }
 0x284   :  { %v3447_v0 = vadd.f32 %v3225_v10, %v3215_v63  ;;  %v3145_v61 = vmul.bf16 %v3065_v5, %v5699_v29  ;;  %v3066_v1 = vmul.bf16 1056980736, %v2986_v24  ;;  %4660 = vtanh.bf16 %v2846_v45  ;;  %v2243_v8 = vpop.f32.mrb[82].mxu1 }
 0x285   :  { %v3460_v6 = vadd.f32 %v3226_v47, %v3216_v51  ;;  %v3207_v34 = vmul.bf16 %v3127_v19, %v5704_v25  ;;  %v3128_v37 = vmul.bf16 1056980736, %v3048_v15  ;;  %v2550_v42 = vpack.c.bf16 %v2243_v8, %v2239_v57  ;;  %v2245_v30 = vpop.f32.mrb[83].mxu1 }
 0x286   :  { %v3235_v22 = vunpack.c.l.bf16 %v3145_v61  ;;  %v3245_v26 = vunpack.c.h.bf16 %v3145_v61  ;;  %v3146_v40 = vmul.bf16 %v3066_v1, %v5707_v11  ;;  %v2551_v60 = vpack.c.bf16 %v2245_v30, %v2241_v39 }
 0x287   :  { %v4655_v21 = vpop.eup %4654  ;;  %v3357_v14 = vunpack.c.l.bf16 %v3207_v34  ;;  %v3367_v52 = vunpack.c.h.bf16 %v3207_v34  ;;  %v3208_v29 = vmul.bf16 %v3128_v37, %v5712_v56  ;;  %v5758_v11 = vadd.bf16 %v5672_v7, %v2550_v42 }
 0x288   :  { %v4657_v28 = vpop.eup %4656  ;;  %v2995_v16 = vadd.bf16 1065369472, %v4655_v21  ;;  %v3448_v36 = vadd.f32 %v3447_v0, %v3235_v22  ;;  %v3236_v18 = vunpack.c.l.bf16 %v3146_v40  ;;  %v3246_v63 = vunpack.c.h.bf16 %v3146_v40 }
 0x289   :  { %v2996_v10 = vadd.bf16 1065369472, %v4657_v28  ;;  %v3608_v25 = vadd.f32 %v3607_v59, %v3357_v14  ;;  %v3358_v20 = vunpack.c.l.bf16 %v3208_v29  ;;  %v3368_v13 = vunpack.c.h.bf16 %v3208_v29  ;;  %v2249_v2 = vpop.f32.mrb[84].mxu1 }
 0x28a   :  { %v3075_v62 = vmul.bf16 1056980736, %v2995_v16  ;;  %v3449_v51 = vadd.f32 %v3448_v36, %v3245_v26  ;;  %v3461_v53 = vadd.f32 %v3460_v6, %v3236_v18  ;;  %v2251_v47 = vpop.f32.mrb[85].mxu1  ;;  %v5762_v50 = vadd.bf16 %v5676_v9, %v2551_v60 }
 0x28b   :  { %v3076_v41 = vmul.bf16 1056980736, %v2996_v10  ;;  %v3609_v44 = vadd.f32 %v3608_v25, %v3367_v52  ;;  %v3621_v55 = vadd.f32 %v3620_v4, %v3358_v20  ;;  %v2253_v31 = vpop.f32.mrb[86].mxu1  ;;  %v2855_v12 = vmul.bf16 1056980736, %v5758_v11 }
 0x28c   :  { %v3155_v56 = vmul.bf16 %v3075_v62, %v5721_v48  ;;  %v3462_v59 = vadd.f32 %v3461_v53, %v3246_v63  ;;  %v2560_v57 = vpack.c.bf16 %v2253_v31, %v2249_v2  ;;  %v2255_v54 = vpop.f32.mrb[87].mxu1  ;;  %v2856_v48 = vmul.bf16 1056980736, %v5762_v50 }
 0x28d   :  { %v3156_v3 = vmul.bf16 %v3076_v41, %v5724_v49  ;;  %v3610_v5 = vrot.slane %v3609_v44, 4  ;;  %v3622_v24 = vadd.f32 %v3621_v55, %v3368_v13  ;;  %4662 = vtanh.bf16 %v2855_v12 }
 0x28e   :  { %v3255_v45 = vunpack.c.l.bf16 %v3155_v56  ;;  %v3265_v19 = vunpack.c.h.bf16 %v3155_v56  ;;  %v4659_v15 = vpop.eup %4658  ;;  %4664 = vtanh.bf16 %v2856_v48  ;;  %v5768_v37 = vadd.bf16 %v5672_v7, %v2560_v57 }
 0x28f   :  { %v3256_v39 = vunpack.c.l.bf16 %v3156_v3  ;;  %v3266_v4 = vunpack.c.h.bf16 %v3156_v3  ;;  %v4661_v0 = vpop.eup %4660  ;;  %v3611_v61 = vadd.f32 %v3610_v5, %v3609_v44  ;;  %v3623_v1 = vrot.slane %v3622_v24, 4 }
 0x290   :  { %v3450_v8 = vadd.f32 %v3449_v51, %v3255_v45  ;;  %v3005_v6 = vadd.bf16 1065369472, %v4659_v15  ;;  %v3006_v34 = vadd.bf16 1065369472, %v4661_v0  ;;  %v2865_v28 = vmul.bf16 1056980736, %v5768_v37 }
 0x291   :  { %v3463_v49 = vadd.f32 %v3462_v59, %v3256_v39  ;;  %v3612_v42 = vrot.slane %v3611_v61, 2  ;;  %v3624_v30 = vadd.f32 %v3623_v1, %v3622_v24  ;;  %v2259_v26 = vpop.f32.mrb[88].mxu1  ;;  %v2561_v14 = vpack.c.bf16 %v2255_v54, %v2251_v47 }
 0x292   :  { %v3451_v21 = vadd.f32 %v3450_v8, %v3265_v19  ;;  %v3085_v22 = vmul.bf16 1056980736, %v3005_v6  ;;  %v3086_v60 = vmul.bf16 1056980736, %v3006_v34  ;;  %v2261_v52 = vpop.f32.mrb[89].mxu1  ;;  %4666 = vtanh.bf16 %v2865_v28 }
 0x293   :  { %v3464_v40 = vadd.f32 %v3463_v49, %v3266_v4  ;;  %v3613_v29 = vadd.f32 %v3612_v42, %v3611_v61  ;;  %v3625_v16 = vrot.slane %v3624_v30, 2  ;;  %v2263_v18 = vpop.f32.mrb[90].mxu1  ;;  %v5774_v10 = vadd.bf16 %v5676_v9, %v2561_v14 }
 0x294   :  { %v3165_v36 = vmul.bf16 %v3085_v22, %v5743_v33  ;;  %v3166_v63 = vmul.bf16 %v3086_v60, %v5746_v27  ;;  %v2570_v25 = vpack.c.bf16 %v2263_v18, %v2259_v26  ;;  %v2265_v20 = vpop.f32.mrb[91].mxu1  ;;  %v3497_v2 = vrot.slane %v5734_v38, 1 }
 0x295   :  { %v2571_v62 = vpack.c.bf16 %v2265_v20, %v2261_v52  ;;  %v3614_v51 = vrot.slane %v3613_v29, 1  ;;  %v2866_v47 = vmul.bf16 1056980736, %v5774_v10  ;;  %v3626_v56 = vadd.f32 %v3625_v16, %v3624_v30 }
 0x296   :  { %v3275_v13 = vunpack.c.l.bf16 %v3165_v36  ;;  %v3285_v53 = vunpack.c.h.bf16 %v3165_v36  ;;  %v3276_v41 = vunpack.c.l.bf16 %v3166_v63  ;;  %v5779_v33 = vadd.bf16 %v5672_v7, %v2570_v25 }
 0x297   :  { %v5782_v27 = vadd.bf16 %v5676_v9, %v2571_v62  ;;  %v3615_v55 = vadd.f32 %v3614_v51, %v3613_v29  ;;  %v3286_v31 = vunpack.c.h.bf16 %v3166_v63  ;;  %4668 = vtanh.bf16 %v2866_v47 }
 0x298   :  { %v3452_v44 = vadd.f32 %v3451_v21, %v3275_v13  ;;  %v3465_v59 = vadd.f32 %v3464_v40, %v3276_v41  ;;  %v2875_v3 = vmul.bf16 1056980736, %v5779_v33  ;;  %v4663_v12 = vpop.eup %4662  ;;  %v3627_v24 = vrot.slane %v3626_v56, 1 }
 0x299   :  { %v2876_v54 = vmul.bf16 1056980736, %v5782_v27  ;;  %v2269_v5 = vpop.f32.mrb[92].mxu1  ;;  %v3701_v45 = vmul.f32 %v5738_v23, %v3615_v55  ;;  %v3015_v15 = vadd.bf16 1065369472, %v4663_v12  ;;  %v4665_v4 = vpop.eup %4664  ;;  %v3672_v61 = vrot.slane %v5726_v17, %v3639_v43 }
 0x29a   :  { %v5785_v57 = vadd.f32 %v3452_v44, %v3285_v53  ;;  %v5789_v19 = vadd.f32 %v3465_v59, %v3286_v31  ;;  %4670 = vtanh.bf16 %v2875_v3  ;;  %v2271_v39 = vpop.f32.mrb[93].mxu1  ;;  %v3628_v0 = vadd.f32 %v3627_v24, %v3626_v56 }
 0x29b   :  { %4672 = vtanh.bf16 %v2876_v54  ;;  %v2273_v48 = vpop.f32.mrb[94].mxu1  ;;  %v3740_v1 = vrot.slane %v3701_v45, 7  ;;  %v3095_v8 = vmul.bf16 1056980736, %v3015_v15  ;;  %v3016_v6 = vadd.bf16 1065369472, %v4665_v4 }
 0x29c   :  { %v2580_v49 = vpack.c.bf16 %v2273_v48, %v2269_v5  ;;  %v2275_v34 = vpop.f32.mrb[95].mxu1  ;;  %v3498_v23 = vadd.f32 %v3497_v2, %v5734_v38  ;;  %v3702_v30 = vmul.f32 %v3672_v61, %v3628_v0 }
 0x29d   :  { %v2581_v42 = vpack.c.bf16 %v2275_v34, %v2271_v39  ;;  %v5797_v21 = vsel %vm3724_vm1, %v3740_v1, %v5751_v35  ;;  %v3175_v22 = vmul.bf16 %v3095_v8, %v5758_v11  ;;  %v3096_v26 = vmul.bf16 1056980736, %v3016_v6  ;;  %v4667_v60 = vpop.eup %4666 }
 0x29e   :  { %v2805_v40 = vadd.bf16 %v5672_v7, %v2580_v49  ;;  %v3742_v17 = vrot.slane %v3702_v30, 7  ;;  %v3025_v28 = vadd.bf16 1065369472, %v4667_v60  ;;  %v3692_v29 = vmul.f32 %v3672_v61, %v3498_v23 }
 0x29f   :  { %v2806_v43 = vadd.bf16 %v5676_v9, %v2581_v42  ;;  %v3295_v16 = vunpack.c.l.bf16 %v3175_v22  ;;  %v3176_v38 = vmul.bf16 %v3096_v26, %v5762_v50  ;;  %v3305_v18 = vunpack.c.h.bf16 %v3175_v22 }
 0x2a0   :  { %v2885_v14 = vmul.bf16 1056980736, %v2805_v40  ;;  %v3105_v35 = vmul.bf16 1056980736, %v3025_v28  ;;  %v5804_v11 = vsel %vm3724_vm1, %v3742_v17, %v3692_v29  ;;  %v3454_v49 = vrot.slane %v5785_v57, 4 }
 0x2a1   :  { %v2886_v52 = vmul.bf16 1056980736, %v2806_v43  ;;  %v3296_v20 = vunpack.c.l.bf16 %v3176_v38  ;;  %v3306_v13 = vunpack.c.h.bf16 %v3176_v38  ;;  %v3577_v51 = vadd.f32 %v3305_v18, %v3295_v16 }
 0x2a2   :  { %v4669_v36 = vpop.eup %4668  ;;  %4674 = vtanh.bf16 %v2885_v14  ;;  %v3185_v9 = vmul.bf16 %v3105_v35, %v5768_v37  ;;  %v3467_v34 = vrot.slane %v5789_v19, 4  ;;  %v3455_v22 = vadd.f32 %v3454_v49, %v5785_v57 }
 0x2a3   :  { %v3026_v63 = vadd.bf16 1065369472, %v4669_v36  ;;  %4676 = vtanh.bf16 %v2886_v52  ;;  %v3590_v31 = vadd.f32 %v3306_v13, %v3296_v20 }
 0x2a4   :  { %v3315_v53 = vunpack.c.l.bf16 %v3185_v9  ;;  %v3325_v44 = vunpack.c.h.bf16 %v3185_v9  ;;  %v3468_v60 = vadd.f32 %v3467_v34, %v5789_v19  ;;  %v3456_v16 = vrot.slane %v3455_v22, 2 }
 0x2a5   :  { %v4671_v7 = vpop.eup %4670  ;;  %v3106_v62 = vmul.bf16 1056980736, %v3026_v63  ;;  %v3659_v19 = vsub.s32 6, %v5103_v58 }
 0x2a6   :  { %v4673_v25 = vpop.eup %4672  ;;  %v3035_v2 = vadd.bf16 1065369472, %v4671_v7  ;;  %v3578_v55 = vadd.f32 %v3577_v51, %v3315_v53  ;;  %v3469_v36 = vrot.slane %v3468_v60, 2  ;;  %v3457_v7 = vadd.f32 %v3456_v16, %v3455_v22 }
 0x2a7   :  { %v3036_v50 = vadd.bf16 1065369472, %v4673_v25  ;;  %v3186_v41 = vmul.bf16 %v3106_v62, %v5774_v10  ;;  %v3663_v51 = vsub.s32 7, %v5103_v58 }
 0x2a8   :  { %v3115_v47 = vmul.bf16 1056980736, %v3035_v2  ;;  %v3579_v12 = vadd.f32 %v3578_v55, %v3325_v44  ;;  %v3458_v20 = vrot.slane %v3457_v7, 1  ;;  %v3660_v44 = vrot.slane %v5613_v32, %v3659_v19 }
 0x2a9   :  { %v3116_v56 = vmul.bf16 1056980736, %v3036_v50  ;;  %v3316_v59 = vunpack.c.l.bf16 %v3186_v41  ;;  %v3326_v54 = vunpack.c.h.bf16 %v3186_v41 }
 0x2aa   :  { %v3195_v3 = vmul.bf16 %v3115_v47, %v5779_v33  ;;  %v3459_v47 = vadd.f32 %v3458_v20, %v3457_v7 }
 0x2ab   :  { %v3196_v37 = vmul.bf16 %v3116_v56, %v5782_v27  ;;  %v3591_v5 = vadd.f32 %v3590_v31, %v3316_v59  ;;  %v3664_v31 = vrot.slane %v5613_v32, %v3663_v51  ;;  %v3770_v32 = vsel %vm3754_vm2, %v5797_v21, 0.0 }
 0x2ac   :  { %v3335_v24 = vunpack.c.l.bf16 %v3195_v3  ;;  %v3345_v4 = vunpack.c.h.bf16 %v3195_v3 }
 0x2ad   :  { %v3336_v45 = vunpack.c.l.bf16 %v3196_v37  ;;  %v4675_v15 = vpop.eup %4674  ;;  %v3592_v39 = vadd.f32 %v3591_v5, %v3326_v54  ;;  %v3346_v1 = vunpack.c.h.bf16 %v3196_v37 }
 0x2ae   :  { %v3580_v48 = vadd.f32 %v3579_v12, %v3335_v24  ;;  %v4677_v10 = vpop.eup %4676  ;;  %v3045_v0 = vadd.bf16 1065369472, %v4675_v15  ;;  %v3689_v12 = vmul.f32 %v3660_v44, %v3459_v47 }
 0x2af   :  { %v3593_v8 = vadd.f32 %v3592_v39, %v3336_v45  ;;  %v3046_v6 = vadd.bf16 1065369472, %v4677_v10  ;;  %v3772_v10 = vsel %vm3754_vm2, %v5804_v11, 0.0 }
 0x2b0   :  { %v3581_v61 = vadd.f32 %v3580_v48, %v3345_v4  ;;  %v3125_v33 = vmul.bf16 1056980736, %v3045_v0 }
 0x2b1   :  { %v3594_v27 = vadd.f32 %v3593_v8, %v3346_v1  ;;  %v3126_v42 = vmul.bf16 1056980736, %v3046_v6  ;;  %v4045_v1 = vld [vmem:[#allocation2] ss:$0 sm:$0xff] }
 0x2b2   :  { %v3205_v23 = vmul.bf16 %v3125_v33, %v2805_v40  ;;  %v3470_v40 = vadd.f32 %v3469_v36, %v3468_v60 }
 0x2b3   :  { %v3206_v30 = vmul.bf16 %v3126_v42, %v2806_v43 }
 0x2b4   :  { %v3355_v26 = vunpack.c.l.bf16 %v3205_v23  ;;  %v3365_v28 = vunpack.c.h.bf16 %v3205_v23  ;;  %v3471_v2 = vrot.slane %v3470_v40, 1 }
 0x2b5   :  { %v3356_v17 = vunpack.c.l.bf16 %v3206_v30  ;;  %v3366_v52 = vunpack.c.h.bf16 %v3206_v30 }
 0x2b6   :  { %v3582_v14 = vadd.f32 %v3581_v61, %v3355_v26  ;;  %v3472_v55 = vadd.f32 %v3471_v2, %v3470_v40 }
 0x2b7   :  { %v3595_v29 = vadd.f32 %v3594_v27, %v3356_v17 }
 0x2b8   :  { %v3583_v38 = vadd.f32 %v3582_v14, %v3365_v28  ;;  %v3690_v54 = vmul.f32 %v3664_v31, %v3472_v55 }
 0x2b9   :  { %v3596_v18 = vadd.f32 %v3595_v29, %v3366_v52 }
 0x2ba   :  { %v3584_v35 = vrot.slane %v3583_v38, 4 }
 0x2bb   :  { %v3597_v63 = vrot.slane %v3596_v18, 4 }
 0x2bc   :  { %v3585_v9 = vadd.f32 %v3584_v35, %v3583_v38 }
 0x2bd   :  { %v3598_v43 = vadd.f32 %v3597_v63, %v3596_v18 }
 0x2be   :  { %v3586_v25 = vrot.slane %v3585_v9, 2 }
 0x2bf   :  { %v3599_v57 = vrot.slane %v3598_v43, 2 }
 0x2c0   :  { %v3587_v13 = vadd.f32 %v3586_v25, %v3585_v9 }
 0x2c1   :  { %v3600_v62 = vadd.f32 %v3599_v57, %v3598_v43 }
 0x2c2   :  { %v3588_v53 = vrot.slane %v3587_v13, 1 }
 0x2c3   :  { %v3601_v50 = vrot.slane %v3600_v62, 1 }
 0x2c4   :  { %v3589_v41 = vadd.f32 %v3588_v53, %v3587_v13 }
 0x2c5   :  { %v3602_v56 = vadd.f32 %v3601_v50, %v3600_v62 }
 0x2c6   :  { %v3699_v59 = vmul.f32 %v3660_v44, %v3589_v41 }
 0x2c7   :  { %v3700_v3 = vmul.f32 %v3664_v31, %v3602_v56 }
 0x2c8   :  { %v3736_v37 = vrot.slane %v3699_v59, 7 }
 0x2c9   :  { %v3738_v5 = vrot.slane %v3700_v3, 7 }
 0x2ca   :  { %v3737_v24 = vsel %vm3724_vm1, %v3736_v37, %v3689_v12 }
 0x2cb   :  { %v3739_v58 = vsel %vm3724_vm1, %v3738_v5, %v3690_v54  ;;  %v3766_v45 = vsel %vm3754_vm2, %v3737_v24, 0.0 }
 0x2cc   :  { %v3767_v15 = vadd.f32 %v3766_v45, %v5646_v46  ;;  %v3768_v39 = vsel %vm3754_vm2, %v3739_v58, 0.0 }
 0x2ce   :  { %v3769_v4 = vadd.f32 %v3768_v39, %v3767_v15 }
 0x2d0   :  { %v3771_v48 = vadd.f32 %v3770_v32, %v3769_v4 }
 0x2d2   :  { %v3773_v0 = vadd.f32 %v3772_v10, %v3771_v48 }
 0x2d4   :  { %3774 = vadd.xlane.f32.xlu0 %v3773_v0 }
 0x361   :  { %v3775_v61 = vpop.xlane.xlu0 %3774 }
 0x362   :  { %v3776_v8 = vmul.f32 0.015625, %v3775_v61 }
 0x364   :  { %v3784_v6 = vadd.f32 %v4045_v1, %v3776_v8 }
 0x366   :  { %3786 = vst.msk [vmem:[#allocation11] sm:$0x3] %vm3785_vm3, %v3784_v6 }
 0x367   :  { %4778 = shalt.err (!%p4775_p8)
}
 0x368   :  { %s4779_s20 = scalar_lea.hbm %s5844_s5, 32 }
 0x369   :  { %p4780_p9 = scmp.ne.s32.totalorder %s5844_s5, %s4779_s20  ;;  %p4783_p10 = scmp.lt.u32.totalorder %s4779_s20, %s5844_s5 }
 0x36b   :  { %p4785_p11 = pnand %p4783_p10, %p4780_p9 }
 0x36d   :  { %4788 = shalt.err (!%p4785_p11)
}
 0x36e   :  { %3796 = dma.vmem_to_hbm [thread:$0]  %s3794_s17, 32, %s5844_s5, [#allocation5]  }
 0x36f   :  { %4795 = dma.done.wait [#allocation5], 32  }
 0x370   :  { %4796 = vsyncadd [#allocation5], 4294967264 }
 0x371   :  { %3800 = vsyncpa [#allocation4], 1 }
 0x372   :  { %3801 = vsyncpa [#allocation7], 1 }
 0x373   :  { %3802 = vsyncpa [#allocation10], 1 }
 0x374   :  { %3803 = vsyncpa [#allocation5], 1 }

</bundles_post_ra>
